<compile_context>
chip_gen: v7x
topology: tpu7x:2x2x1
jax: 0.10.0
libtpu: 0.0.40
codegen_flags: <defaults>
</compile_context>

<pallas_src>
import functools
import math

import jax
import jax.numpy as jnp
from jax.experimental import pallas as pl
from jax.experimental.pallas import tpu as pltpu


# ----------------------------- in-kernel helpers ------------------------------

def _layernorm(x, g, b, eps=1e-5):
    mean = jnp.mean(x, axis=-1, keepdims=True)
    var = jnp.mean((x - mean) ** 2, axis=-1, keepdims=True)
    return (x - mean) * jax.lax.rsqrt(var + eps) * g + b


def _mha_heads(q2d, k2d, v2d, bias_ref, out_scratch_ref, *, B, Sq, Sk, H, dh):
    """Multi-head attention over VMEM-resident values.

    q2d: (B*Sq, H*dh), k2d/v2d: (B*Sk, H*dh), bias_ref: (B, Sq, Sk) additive bias.
    Writes the merged-head result (B*Sq, H*dh) into out_scratch_ref.
    """
    scale = 1.0 / math.sqrt(dh)
    for b in range(B):
        bias_b = bias_ref[b]                                   # (Sq, Sk)
        qb = q2d[b * Sq:(b + 1) * Sq, :]
        kb = k2d[b * Sk:(b + 1) * Sk, :]
        vb = v2d[b * Sk:(b + 1) * Sk, :]
        for h in range(H):
            qh = qb[:, h * dh:(h + 1) * dh]
            kh = kb[:, h * dh:(h + 1) * dh]
            vh = vb[:, h * dh:(h + 1) * dh]
            s = jnp.dot(qh, kh.T, preferred_element_type=jnp.float32) * scale + bias_b
            m = jnp.max(s, axis=-1, keepdims=True)
            p = jnp.exp(s - m)
            denom = jnp.sum(p, axis=-1, keepdims=True)
            p = p * pl.reciprocal(denom, approx=True)
            out_scratch_ref[b * Sq:(b + 1) * Sq, h * dh:(h + 1) * dh] = jnp.dot(
                p, vh, preferred_element_type=jnp.float32)


# ----------------------------- fused stack kernels ------------------------------

def _encoder_stack_kernel(x_ref, bias_ref,
                          wqkv_ref, bqkv_ref, wo_ref, bo_ref,
                          ln1_g_ref, ln1_b_ref,
                          w1_ref, b1_ref, w2_ref, b2_ref,
                          ln2_g_ref, ln2_b_ref,
                          y_ref, act_ref, attn_ref, *, B, S, H, dh):
    """One grid step == one encoder layer; running activation stays in VMEM scratch."""
    l = pl.program_id(0)
    D = H * dh

    @pl.when(l == 0)
    def _():
        act_ref[...] = x_ref[...]

    x = act_ref[...]                                                   # (B*S, D)
    # fused QKV projection
    qkv = jnp.dot(x, wqkv_ref[...], preferred_element_type=jnp.float32) + bqkv_ref[...]
    _mha_heads(qkv[:, :D], qkv[:, D:2 * D], qkv[:, 2 * D:], bias_ref, attn_ref,
               B=B, Sq=S, Sk=S, H=H, dh=dh)
    # output projection + residual + LN epilogue
    a = jnp.dot(attn_ref[...], wo_ref[...], preferred_element_type=jnp.float32) + bo_ref[...]
    x = _layernorm(a + x, ln1_g_ref[...], ln1_b_ref[...])
    # feed-forward + residual + LN epilogue
    h1 = jnp.maximum(
        jnp.dot(x, w1_ref[...], preferred_element_type=jnp.float32) + b1_ref[...], 0.0)
    f = jnp.dot(h1, w2_ref[...], preferred_element_type=jnp.float32) + b2_ref[...]
    out = _layernorm(f + x, ln2_g_ref[...], ln2_b_ref[...])
    act_ref[...] = out
    y_ref[...] = out


def _decoder_stack_kernel(y_ref, enc_ref, trg_bias_ref, src_bias_ref,
                          s_wqkv_ref, s_bqkv_ref, s_wo_ref, s_bo_ref,
                          ln1_g_ref, ln1_b_ref,
                          c_wq_ref, c_bq_ref, c_wkv_ref, c_bkv_ref, c_wo_ref, c_bo_ref,
                          ln2_g_ref, ln2_b_ref,
                          w1_ref, b1_ref, w2_ref, b2_ref,
                          ln3_g_ref, ln3_b_ref,
                          out_ref, act_ref, attn_ref, *, B, S, Sk, H, dh):
    """One grid step == one decoder layer (self-attn + cross-attn + FFN)."""
    l = pl.program_id(0)
    D = H * dh

    @pl.when(l == 0)
    def _():
        act_ref[...] = y_ref[...]

    x = act_ref[...]                                                   # (B*S, D)
    # --- masked self-attention ---
    qkv = jnp.dot(x, s_wqkv_ref[...], preferred_element_type=jnp.float32) + s_bqkv_ref[...]
    _mha_heads(qkv[:, :D], qkv[:, D:2 * D], qkv[:, 2 * D:], trg_bias_ref, attn_ref,
               B=B, Sq=S, Sk=S, H=H, dh=dh)
    a = jnp.dot(attn_ref[...], s_wo_ref[...], preferred_element_type=jnp.float32) + s_bo_ref[...]
    x = _layernorm(a + x, ln1_g_ref[...], ln1_b_ref[...])
    # --- cross attention over encoder outputs ---
    q = jnp.dot(x, c_wq_ref[...], preferred_element_type=jnp.float32) + c_bq_ref[...]
    kv = jnp.dot(enc_ref[...], c_wkv_ref[...], preferred_element_type=jnp.float32) + c_bkv_ref[...]
    _mha_heads(q, kv[:, :D], kv[:, D:], src_bias_ref, attn_ref,
               B=B, Sq=S, Sk=Sk, H=H, dh=dh)
    a = jnp.dot(attn_ref[...], c_wo_ref[...], preferred_element_type=jnp.float32) + c_bo_ref[...]
    x = _layernorm(a + x, ln2_g_ref[...], ln2_b_ref[...])
    # --- feed forward ---
    h1 = jnp.maximum(
        jnp.dot(x, w1_ref[...], preferred_element_type=jnp.float32) + b1_ref[...], 0.0)
    f = jnp.dot(h1, w2_ref[...], preferred_element_type=jnp.float32) + b2_ref[...]
    out = _layernorm(f + x, ln3_g_ref[...], ln3_b_ref[...])
    act_ref[...] = out
    out_ref[...] = out


def _linear_kernel(x_ref, w_ref, b_ref, o_ref):
    o_ref[...] = (jnp.dot(x_ref[...], w_ref[...], preferred_element_type=jnp.float32)
                  + b_ref[...]).astype(o_ref.dtype)


# ----------------------------- pallas_call wrappers ------------------------------

_VMEM = pl.BlockSpec(memory_space=pltpu.MemorySpace.VMEM)


def _full_spec(shape):
    """Whole-array block, same block index every grid step (fetched once)."""
    n = len(shape)
    return pl.BlockSpec(tuple(shape), lambda l, n=n: (0,) * n)


def _layer_spec(shape):
    """Stacked per-layer array (leading layer axis squeezed); layer l per grid step."""
    rest = tuple(shape[1:])
    n = len(rest)
    return pl.BlockSpec((None,) + rest, lambda l, n=n: (l,) + (0,) * n)


_ENC_NAMES = ["wqkv", "bqkv", "wo", "bo", "ln1_g", "ln1_b",
              "w1", "b1", "w2", "b2", "ln2_g", "ln2_b"]

_DEC_NAMES = ["s_wqkv", "s_bqkv", "s_wo", "s_bo", "ln1_g", "ln1_b",
              "c_wq", "c_bq", "c_wkv", "c_bkv", "c_wo", "c_bo",
              "ln2_g", "ln2_b", "w1", "b1", "w2", "b2", "ln3_g", "ln3_b"]


def encoder_stack(p, x2d, src_bias, B, S, n_heads):
    L, D, _ = p["wqkv"].shape
    dh = D // n_heads
    kern = functools.partial(_encoder_stack_kernel, B=B, S=S, H=n_heads, dh=dh)
    in_specs = ([_full_spec(x2d.shape), _full_spec(src_bias.shape)]
                + [_layer_spec(p[n].shape) for n in _ENC_NAMES])
    return pl.pallas_call(
        kern,
        out_shape=jax.ShapeDtypeStruct((B * S, D), jnp.float32),
        grid=(L,),
        in_specs=in_specs,
        out_specs=_full_spec((B * S, D)),
        scratch_shapes=[pltpu.VMEM((B * S, D), jnp.float32),   # running activation
                        pltpu.VMEM((B * S, D), jnp.float32)],  # merged-head attn out
        compiler_params=pltpu.CompilerParams(dimension_semantics=("arbitrary",)),
    )(x2d, src_bias, *[p[n] for n in _ENC_NAMES])


def decoder_stack(p, y2d, enc2d, trg_bias, src_bias, B, S, Sk, n_heads):
    L, D, _ = p["s_wqkv"].shape
    dh = D // n_heads
    kern = functools.partial(_decoder_stack_kernel, B=B, S=S, Sk=Sk, H=n_heads, dh=dh)
    in_specs = ([_full_spec(y2d.shape), _full_spec(enc2d.shape),
                 _full_spec(trg_bias.shape), _full_spec(src_bias.shape)]
                + [_layer_spec(p[n].shape) for n in _DEC_NAMES])
    return pl.pallas_call(
        kern,
        out_shape=jax.ShapeDtypeStruct((B * S, D), jnp.float32),
        grid=(L,),
        in_specs=in_specs,
        out_specs=_full_spec((B * S, D)),
        scratch_shapes=[pltpu.VMEM((B * S, D), jnp.float32),
                        pltpu.VMEM((B * S, D), jnp.float32)],
        compiler_params=pltpu.CompilerParams(dimension_semantics=("arbitrary",)),
    )(y2d, enc2d, trg_bias, src_bias, *[p[n] for n in _DEC_NAMES])


def output_projection(x2d, w, b):
    M = x2d.shape[0]
    N = w.shape[1]
    return pl.pallas_call(
        _linear_kernel,
        out_shape=jax.ShapeDtypeStruct((M, N), jnp.float32),
        in_specs=[_VMEM] * 3,
        out_specs=_VMEM,
    )(x2d, w, b)


# ----------------------------- XLA glue: embeddings & masks ------------------------------

def positional_encoding(seq_len, d_model):
    pos = jnp.arange(seq_len, dtype=jnp.float32)[:, None]
    i = jnp.arange(0, d_model, 2, dtype=jnp.float32)
    angle = pos / jnp.power(10000.0, i / d_model)
    pe = jnp.zeros((seq_len, d_model), jnp.float32)
    pe = pe.at[:, 0::2].set(jnp.sin(angle))
    pe = pe.at[:, 1::2].set(jnp.cos(angle))
    return pe


def pad_bias(q_tokens, k_tokens, pad_idx):
    keep = (q_tokens != pad_idx)[:, :, None] & (k_tokens != pad_idx)[:, None, :]
    return jnp.where(keep, 0.0, -1e9).astype(jnp.float32)          # (B, Sq, Sk)


def causal_pad_bias(q_tokens, k_tokens, pad_idx):
    Sq, Sk = q_tokens.shape[1], k_tokens.shape[1]
    keep = (q_tokens != pad_idx)[:, :, None] & (k_tokens != pad_idx)[:, None, :]
    keep = keep & jnp.tril(jnp.ones((Sq, Sk), dtype=bool))[None]
    return jnp.where(keep, 0.0, -1e9).astype(jnp.float32)          # (B, Sq, Sk)


# ----------------------------- full transformer forward ------------------------------

def transformer_forward(params, src, trg, pad_idx, n_heads):
    B, S_src = src.shape
    S_trg = trg.shape[1]
    D = params["enc"]["emb"].shape[1]

    src_bias = pad_bias(src, src, pad_idx)                       # (B, S_src, S_src)
    trg_bias = causal_pad_bias(trg, trg, pad_idx)                # (B, S_trg, S_trg)
    # note: the reference module builds trg_src_mask but passes src_mask to the
    # decoder's cross attention; we keep that behaviour (S_trg == S_src here).

    pe_src = positional_encoding(S_src, D)
    pe_trg = pe_src if S_trg == S_src else positional_encoding(S_trg, D)

    x = (jnp.take(params["enc"]["emb"], src, axis=0) + pe_src[None]).reshape(B * S_src, D)
    enc2d = encoder_stack(params["enc"]["layers"], x, src_bias, B, S_src, n_heads)

    y = (jnp.take(params["dec"]["emb"], trg, axis=0) + pe_trg[None]).reshape(B * S_trg, D)
    y = decoder_stack(params["dec"]["layers"], y, enc2d, trg_bias, src_bias,
                      B, S_trg, S_src, n_heads)

    logits = output_projection(y, params["out_w"], params["out_b"])
    return logits.reshape(B, S_trg, params["out_w"].shape[1])


# ----------------------------- deterministic init ------------------------------

def _init_linear(key, d_in, d_out):
    w = jax.random.normal(key, (d_in, d_out), jnp.float32) * (1.0 / math.sqrt(d_in))
    b = jnp.zeros((1, d_out), jnp.float32)
    return w, b


def _init_self_attn(key, d_model):
    kq, kk, kv, ko = jax.random.split(key, 4)
    wq, bq = _init_linear(kq, d_model, d_model)
    wk, bk = _init_linear(kk, d_model, d_model)
    wv, bv = _init_linear(kv, d_model, d_model)
    wo, bo = _init_linear(ko, d_model, d_model)
    return {"wqkv": jnp.concatenate([wq, wk, wv], axis=1),
            "bqkv": jnp.concatenate([bq, bk, bv], axis=1),
            "wo": wo, "bo": bo}


def _init_cross_attn(key, d_model):
    kq, kk, kv, ko = jax.random.split(key, 4)
    wq, bq = _init_linear(kq, d_model, d_model)
    wk, bk = _init_linear(kk, d_model, d_model)
    wv, bv = _init_linear(kv, d_model, d_model)
    wo, bo = _init_linear(ko, d_model, d_model)
    return {"wq": wq, "bq": bq,
            "wkv": jnp.concatenate([wk, wv], axis=1),
            "bkv": jnp.concatenate([bk, bv], axis=1),
            "wo": wo, "bo": bo}


def _init_ffn(key, d_model, d_ff):
    k1, k2 = jax.random.split(key)
    w1, b1 = _init_linear(k1, d_model, d_ff)
    w2, b2 = _init_linear(k2, d_ff, d_model)
    return {"w1": w1, "b1": b1, "w2": w2, "b2": b2}


def _init_ln(d_model):
    return jnp.ones((1, d_model), jnp.float32), jnp.zeros((1, d_model), jnp.float32)


def _stack_layers(layer_dicts):
    return {k: jnp.stack([lp[k] for lp in layer_dicts]) for k in layer_dicts[0]}


def init_params(key, src_vocab, trg_vocab, d_model, d_ff, n_layers):
    keys = jax.random.split(key, 8)
    params = {"enc": {}, "dec": {}}
    params["enc"]["emb"] = jax.random.normal(keys[0], (src_vocab, d_model), jnp.float32) * 0.1
    params["dec"]["emb"] = jax.random.normal(keys[1], (trg_vocab, d_model), jnp.float32) * 0.1

    enc_layers = []
    for k in jax.random.split(keys[2], n_layers):
        k1, k2 = jax.random.split(k)
        attn = _init_self_attn(k1, d_model)
        ffn = _init_ffn(k2, d_model, d_ff)
        g1, b1 = _init_ln(d_model)
        g2, b2 = _init_ln(d_model)
        enc_layers.append({**attn, **ffn,
                           "ln1_g": g1, "ln1_b": b1, "ln2_g": g2, "ln2_b": b2})
    params["enc"]["layers"] = _stack_layers(enc_layers)

    dec_layers = []
    for k in jax.random.split(keys[3], n_layers):
        k1, k2, k3 = jax.random.split(k, 3)
        sa = _init_self_attn(k1, d_model)
        ca = _init_cross_attn(k2, d_model)
        ffn = _init_ffn(k3, d_model, d_ff)
        g1, b1 = _init_ln(d_model)
        g2, b2 = _init_ln(d_model)
        g3, b3 = _init_ln(d_model)
        dec_layers.append({"s_wqkv": sa["wqkv"], "s_bqkv": sa["bqkv"],
                           "s_wo": sa["wo"], "s_bo": sa["bo"],
                           "c_wq": ca["wq"], "c_bq": ca["bq"],
                           "c_wkv": ca["wkv"], "c_bkv": ca["bkv"],
                           "c_wo": ca["wo"], "c_bo": ca["bo"],
                           **ffn,
                           "ln1_g": g1, "ln1_b": b1, "ln2_g": g2, "ln2_b": b2,
                           "ln3_g": g3, "ln3_b": b3})
    params["dec"]["layers"] = _stack_layers(dec_layers)

    params["out_w"], params["out_b"] = _init_linear(keys[4], d_model, trg_vocab)
    return params


# ----------------------------- main ------------------------------

if __name__ == "__main__":
    B, S = 2, 8
    D_MODEL, N_HEADS, D_FF, N_LAYERS = 32, 4, 64, 2
    SRC_VOCAB, TRG_VOCAB, PAD_IDX = 32, 32, 0

    key = jax.random.PRNGKey(0)
    kp, ks, kt = jax.random.split(key, 3)

    params = init_params(kp, SRC_VOCAB, TRG_VOCAB, D_MODEL, D_FF, N_LAYERS)

    src = jax.random.randint(ks, (B, S), 1, SRC_VOCAB, dtype=jnp.int32)
    trg = jax.random.randint(kt, (B, S), 1, TRG_VOCAB, dtype=jnp.int32)
    # add some padding tokens to exercise the pad masks
    src = src.at[1, 6:].set(PAD_IDX)
    trg = trg.at[1, 5:].set(PAD_IDX)

    fwd = jax.jit(transformer_forward, static_argnames=("pad_idx", "n_heads"))
    logits = fwd(params, src, trg, pad_idx=PAD_IDX, n_heads=N_HEADS)
    logits = jax.block_until_ready(logits)

    assert logits.shape == (B, S, TRG_VOCAB), logits.shape
    assert logits.dtype == jnp.float32
    assert bool(jnp.all(jnp.isfinite(logits)))
    print("KERNEL_OK")
</pallas_src>

<mosaic_0001>
module attributes {stable_mosaic.version = 11 : i64} {
  func.func @_linear_kernel(%arg0: memref<16x32xf32, #tpu.memory_space<vmem>>, %arg1: memref<32x32xf32, #tpu.memory_space<vmem>>, %arg2: memref<1x32xf32, #tpu.memory_space<vmem>>, %arg3: memref<16x32xf32, #tpu.memory_space<vmem>>) attributes {dimension_semantics = [], scalar_prefetch = 0 : i64, scratch_operands = 0 : i64, tpu.core_type = #tpu.core_type<tc>} {
    %c0 = arith.constant 0 : index
    %c0_0 = arith.constant 0 : index
    %0 = vector.load %arg0[%c0, %c0_0] : memref<16x32xf32, #tpu.memory_space<vmem>>, vector<16x32xf32>
    %c0_1 = arith.constant 0 : index
    %c0_2 = arith.constant 0 : index
    %1 = vector.load %arg1[%c0_1, %c0_2] : memref<32x32xf32, #tpu.memory_space<vmem>>, vector<32x32xf32>
    %cst = arith.constant dense<0.000000e+00> : vector<16x32xf32>
    %2 = tpu.matmul %0, %1, %cst {dimension_numbers = #tpu.dot_dimension_numbers<[1], [0], [0], [1], [0, 0, 1, 1], [], []>} : vector<16x32xf32>, vector<32x32xf32>, vector<16x32xf32> -> vector<16x32xf32>
    %c0_3 = arith.constant 0 : index
    %c0_4 = arith.constant 0 : index
    %3 = vector.load %arg2[%c0_3, %c0_4] : memref<1x32xf32, #tpu.memory_space<vmem>>, vector<1x32xf32>
    %4 = vector.broadcast %3 : vector<1x32xf32> to vector<16x32xf32>
    %5 = arith.addf %2, %4 : vector<16x32xf32>
    %c0_5 = arith.constant 0 : index
    %c0_6 = arith.constant 0 : index
    %6 = vector.load %arg3[%c0_5, %c0_6] : memref<16x32xf32, #tpu.memory_space<vmem>>, vector<16x32xf32>
    tpu.vector_store %arg3[%c0_5, %c0_6], %5 {strides = array<i32>} : memref<16x32xf32, #tpu.memory_space<vmem>>, vector<16x32xf32>,
    return
  }
}

module attributes {stable_mosaic.version = 11 : i64} {
  func.func @_encoder_stack_kernel(%arg0: i32, %arg1: memref<16x32xf32, #tpu.memory_space<vmem>>, %arg2: memref<2x8x8xf32, #tpu.memory_space<vmem>>, %arg3: memref<1x32x96xf32, #tpu.memory_space<vmem>>, %arg4: memref<1x1x96xf32, #tpu.memory_space<vmem>>, %arg5: memref<1x32x32xf32, #tpu.memory_space<vmem>>, %arg6: memref<1x1x32xf32, #tpu.memory_space<vmem>>, %arg7: memref<1x1x32xf32, #tpu.memory_space<vmem>>, %arg8: memref<1x1x32xf32, #tpu.memory_space<vmem>>, %arg9: memref<1x32x64xf32, #tpu.memory_space<vmem>>, %arg10: memref<1x1x64xf32, #tpu.memory_space<vmem>>, %arg11: memref<1x64x32xf32, #tpu.memory_space<vmem>>, %arg12: memref<1x1x32xf32, #tpu.memory_space<vmem>>, %arg13: memref<1x1x32xf32, #tpu.memory_space<vmem>>, %arg14: memref<1x1x32xf32, #tpu.memory_space<vmem>>, %arg15: memref<16x32xf32, #tpu.memory_space<vmem>>, %arg16: memref<16x32xf32, #tpu.memory_space<vmem>>, %arg17: memref<16x32xf32, #tpu.memory_space<vmem>>) attributes {dimension_semantics = [#tpu.dimension_semantics<arbitrary>], iteration_bounds = array<i64: 2>, scalar_prefetch = 0 : i64, scratch_operands = 2 : i64, tpu.core_type = #tpu.core_type<tc>, window_params = [{pipeline_mode = #tpu.pipeline_mode<synchronous>, transform_indices = @transform_0, window_bounds = array<i64: 16, 32>}, {pipeline_mode = #tpu.pipeline_mode<synchronous>, transform_indices = @transform_1, window_bounds = array<i64: 2, 8, 8>}, {transform_indices = @transform_2, window_bounds = array<i64: 1, 32, 96>}, {transform_indices = @transform_3, window_bounds = array<i64: 1, 1, 96>}, {transform_indices = @transform_4, window_bounds = array<i64: 1, 32, 32>}, {transform_indices = @transform_5, window_bounds = array<i64: 1, 1, 32>}, {transform_indices = @transform_6, window_bounds = array<i64: 1, 1, 32>}, {transform_indices = @transform_7, window_bounds = array<i64: 1, 1, 32>}, {transform_indices = @transform_8, window_bounds = array<i64: 1, 32, 64>}, {transform_indices = @transform_9, window_bounds = array<i64: 1, 1, 64>}, {transform_indices = @transform_10, window_bounds = array<i64: 1, 64, 32>}, {transform_indices = @transform_11, window_bounds = array<i64: 1, 1, 32>}, {transform_indices = @transform_12, window_bounds = array<i64: 1, 1, 32>}, {transform_indices = @transform_13, window_bounds = array<i64: 1, 1, 32>}, {pipeline_mode = #tpu.pipeline_mode<synchronous>, transform_indices = @transform_14, window_bounds = array<i64: 16, 32>}]} {
    %c0_i32 = arith.constant 0 : i32
    %0 = arith.cmpi eq, %arg0, %c0_i32 : i32
    %1 = arith.extui %0 : i1 to i32
    %c0_i32_0 = arith.constant 0 : i32
    %2 = arith.cmpi ne, %1, %c0_i32_0 : i32
    scf.if %2 {
      %c0_116 = arith.constant 0 : index
      %c0_117 = arith.constant 0 : index
      %264 = vector.load %arg1[%c0_116, %c0_117] : memref<16x32xf32, #tpu.memory_space<vmem>>, vector<16x32xf32>
      %c0_118 = arith.constant 0 : index
      %c0_119 = arith.constant 0 : index
      %265 = vector.load %arg16[%c0_118, %c0_119] : memref<16x32xf32, #tpu.memory_space<vmem>>, vector<16x32xf32>
      tpu.vector_store %arg16[%c0_118, %c0_119], %264 {strides = array<i32>} : memref<16x32xf32, #tpu.memory_space<vmem>>, vector<16x32xf32>,
    } else {
    }
    %c0 = arith.constant 0 : index
    %c0_1 = arith.constant 0 : index
    %3 = vector.load %arg16[%c0, %c0_1] : memref<16x32xf32, #tpu.memory_space<vmem>>, vector<16x32xf32>
    %c0_2 = arith.constant 0 : index
    %c0_3 = arith.constant 0 : index
    %c0_4 = arith.constant 0 : index
    %4 = vector.load %arg3[%c0_2, %c0_3, %c0_4] : memref<1x32x96xf32, #tpu.memory_space<vmem>>, vector<1x32x96xf32>
    %5 = vector.shape_cast %4 : vector<1x32x96xf32> to vector<32x96xf32>
    %cst = arith.constant dense<0.000000e+00> : vector<16x96xf32>
    %6 = tpu.matmul %3, %5, %cst {dimension_numbers = #tpu.dot_dimension_numbers<[1], [0], [0], [1], [0, 0, 1, 1], [], []>} : vector<16x32xf32>, vector<32x96xf32>, vector<16x96xf32> -> vector<16x96xf32>
    %c0_5 = arith.constant 0 : index
    %c0_6 = arith.constant 0 : index
    %c0_7 = arith.constant 0 : index
    %7 = vector.load %arg4[%c0_5, %c0_6, %c0_7] : memref<1x1x96xf32, #tpu.memory_space<vmem>>, vector<1x1x96xf32>
    %8 = vector.shape_cast %7 : vector<1x1x96xf32> to vector<1x96xf32>
    %9 = vector.broadcast %8 : vector<1x96xf32> to vector<16x96xf32>
    %10 = arith.addf %6, %9 : vector<16x96xf32>
    %11 = vector.extract_strided_slice %10 {offsets = [0, 0], sizes = [16, 32], strides = [1, 1]} : vector<16x96xf32> to vector<16x32xf32>
    %12 = vector.extract_strided_slice %10 {offsets = [0, 32], sizes = [16, 32], strides = [1, 1]} : vector<16x96xf32> to vector<16x32xf32>
    %13 = vector.extract_strided_slice %10 {offsets = [0, 64], sizes = [16, 32], strides = [1, 1]} : vector<16x96xf32> to vector<16x32xf32>
    %c0_8 = arith.constant 0 : index
    %c0_9 = arith.constant 0 : index
    %c0_10 = arith.constant 0 : index
    %14 = vector.load %arg2[%c0_8, %c0_9, %c0_10] : memref<2x8x8xf32, #tpu.memory_space<vmem>>, vector<1x8x8xf32>
    %15 = vector.shape_cast %14 : vector<1x8x8xf32> to vector<8x8xf32>
    %16 = vector.extract_strided_slice %11 {offsets = [0, 0], sizes = [8, 32], strides = [1, 1]} : vector<16x32xf32> to vector<8x32xf32>
    %17 = vector.extract_strided_slice %12 {offsets = [0, 0], sizes = [8, 32], strides = [1, 1]} : vector<16x32xf32> to vector<8x32xf32>
    %18 = vector.extract_strided_slice %13 {offsets = [0, 0], sizes = [8, 32], strides = [1, 1]} : vector<16x32xf32> to vector<8x32xf32>
    %19 = vector.extract_strided_slice %16 {offsets = [0, 0], sizes = [8, 8], strides = [1, 1]} : vector<8x32xf32> to vector<8x8xf32>
    %20 = vector.extract_strided_slice %17 {offsets = [0, 0], sizes = [8, 8], strides = [1, 1]} : vector<8x32xf32> to vector<8x8xf32>
    %21 = vector.extract_strided_slice %18 {offsets = [0, 0], sizes = [8, 8], strides = [1, 1]} : vector<8x32xf32> to vector<8x8xf32>
    %22 = tpu.transpose %20, [1, 0] : vector<8x8xf32> -> vector<8x8xf32>
    %cst_11 = arith.constant dense<0.000000e+00> : vector<8x8xf32>
    %23 = tpu.matmul %19, %22, %cst_11 {dimension_numbers = #tpu.dot_dimension_numbers<[1], [0], [0], [1], [0, 0, 1, 1], [], []>} : vector<8x8xf32>, vector<8x8xf32>, vector<8x8xf32> -> vector<8x8xf32>
    %cst_12 = arith.constant 0.353553385 : f32
    %24 = vector.broadcast %cst_12 : f32 to vector<8x8xf32>
    %25 = arith.mulf %23, %24 : vector<8x8xf32>
    %26 = arith.addf %25, %15 : vector<8x8xf32>
    %cst_13 = arith.constant dense<0xFF800000> : vector<8xf32>
    %27 = vector.multi_reduction <maximumf>, %26, %cst_13 [1] : vector<8x8xf32> to vector<8xf32>
    %28 = vector.shape_cast %27 : vector<8xf32> to vector<8x1xf32>
    %29 = vector.broadcast %28 : vector<8x1xf32> to vector<8x8xf32>
    %30 = arith.subf %26, %29 : vector<8x8xf32>
    %31 = math.exp %30 : vector<8x8xf32>
    %cst_14 = arith.constant dense<0.000000e+00> : vector<8xf32>
    %32 = vector.multi_reduction <add>, %31, %cst_14 [1] : vector<8x8xf32> to vector<8xf32>
    %33 = vector.shape_cast %32 : vector<8xf32> to vector<8x1xf32>
    %34 = tpu.reciprocal %33 {approx = true} : vector<8x1xf32> -> vector<8x1xf32>
    %35 = vector.broadcast %34 : vector<8x1xf32> to vector<8x8xf32>
    %36 = arith.mulf %31, %35 : vector<8x8xf32>
    %cst_15 = arith.constant dense<0.000000e+00> : vector<8x8xf32>
    %37 = tpu.matmul %36, %21, %cst_15 {dimension_numbers = #tpu.dot_dimension_numbers<[1], [0], [0], [1], [0, 0, 1, 1], [], []>} : vector<8x8xf32>, vector<8x8xf32>, vector<8x8xf32> -> vector<8x8xf32>
    %c0_16 = arith.constant 0 : index
    %c0_17 = arith.constant 0 : index
    %38 = vector.load %arg17[%c0_16, %c0_17] : memref<16x32xf32, #tpu.memory_space<vmem>>, vector<8x8xf32>
    tpu.vector_store %arg17[%c0_16, %c0_17], %37 {strides = array<i32>} : memref<16x32xf32, #tpu.memory_space<vmem>>, vector<8x8xf32>,
    %39 = vector.extract_strided_slice %16 {offsets = [0, 8], sizes = [8, 8], strides = [1, 1]} : vector<8x32xf32> to vector<8x8xf32>
    %40 = vector.extract_strided_slice %17 {offsets = [0, 8], sizes = [8, 8], strides = [1, 1]} : vector<8x32xf32> to vector<8x8xf32>
    %41 = vector.extract_strided_slice %18 {offsets = [0, 8], sizes = [8, 8], strides = [1, 1]} : vector<8x32xf32> to vector<8x8xf32>
    %42 = tpu.transpose %40, [1, 0] : vector<8x8xf32> -> vector<8x8xf32>
    %cst_18 = arith.constant dense<0.000000e+00> : vector<8x8xf32>
    %43 = tpu.matmul %39, %42, %cst_18 {dimension_numbers = #tpu.dot_dimension_numbers<[1], [0], [0], [1], [0, 0, 1, 1], [], []>} : vector<8x8xf32>, vector<8x8xf32>, vector<8x8xf32> -> vector<8x8xf32>
    %cst_19 = arith.constant 0.353553385 : f32
    %44 = vector.broadcast %cst_19 : f32 to vector<8x8xf32>
    %45 = arith.mulf %43, %44 : vector<8x8xf32>
    %46 = arith.addf %45, %15 : vector<8x8xf32>
    %cst_20 = arith.constant dense<0xFF800000> : vector<8xf32>
    %47 = vector.multi_reduction <maximumf>, %46, %cst_20 [1] : vector<8x8xf32> to vector<8xf32>
    %48 = vector.shape_cast %47 : vector<8xf32> to vector<8x1xf32>
    %49 = vector.broadcast %48 : vector<8x1xf32> to vector<8x8xf32>
    %50 = arith.subf %46, %49 : vector<8x8xf32>
    %51 = math.exp %50 : vector<8x8xf32>
    %cst_21 = arith.constant dense<0.000000e+00> : vector<8xf32>
    %52 = vector.multi_reduction <add>, %51, %cst_21 [1] : vector<8x8xf32> to vector<8xf32>
    %53 = vector.shape_cast %52 : vector<8xf32> to vector<8x1xf32>
    %54 = tpu.reciprocal %53 {approx = true} : vector<8x1xf32> -> vector<8x1xf32>
    %55 = vector.broadcast %54 : vector<8x1xf32> to vector<8x8xf32>
    %56 = arith.mulf %51, %55 : vector<8x8xf32>
    %cst_22 = arith.constant dense<0.000000e+00> : vector<8x8xf32>
    %57 = tpu.matmul %56, %41, %cst_22 {dimension_numbers = #tpu.dot_dimension_numbers<[1], [0], [0], [1], [0, 0, 1, 1], [], []>} : vector<8x8xf32>, vector<8x8xf32>, vector<8x8xf32> -> vector<8x8xf32>
    %c0_23 = arith.constant 0 : index
    %c8 = arith.constant 8 : index
    %58 = vector.load %arg17[%c0_23, %c8] : memref<16x32xf32, #tpu.memory_space<vmem>>, vector<8x8xf32>
    tpu.vector_store %arg17[%c0_23, %c8], %57 {strides = array<i32>} : memref<16x32xf32, #tpu.memory_space<vmem>>, vector<8x8xf32>,
    %59 = vector.extract_strided_slice %16 {offsets = [0, 16], sizes = [8, 8], strides = [1, 1]} : vector<8x32xf32> to vector<8x8xf32>
    %60 = vector.extract_strided_slice %17 {offsets = [0, 16], sizes = [8, 8], strides = [1, 1]} : vector<8x32xf32> to vector<8x8xf32>
    %61 = vector.extract_strided_slice %18 {offsets = [0, 16], sizes = [8, 8], strides = [1, 1]} : vector<8x32xf32> to vector<8x8xf32>
    %62 = tpu.transpose %60, [1, 0] : vector<8x8xf32> -> vector<8x8xf32>
    %cst_24 = arith.constant dense<0.000000e+00> : vector<8x8xf32>
    %63 = tpu.matmul %59, %62, %cst_24 {dimension_numbers = #tpu.dot_dimension_numbers<[1], [0], [0], [1], [0, 0, 1, 1], [], []>} : vector<8x8xf32>, vector<8x8xf32>, vector<8x8xf32> -> vector<8x8xf32>
    %cst_25 = arith.constant 0.353553385 : f32
    %64 = vector.broadcast %cst_25 : f32 to vector<8x8xf32>
    %65 = arith.mulf %63, %64 : vector<8x8xf32>
    %66 = arith.addf %65, %15 : vector<8x8xf32>
    %cst_26 = arith.constant dense<0xFF800000> : vector<8xf32>
    %67 = vector.multi_reduction <maximumf>, %66, %cst_26 [1] : vector<8x8xf32> to vector<8xf32>
    %68 = vector.shape_cast %67 : vector<8xf32> to vector<8x1xf32>
    %69 = vector.broadcast %68 : vector<8x1xf32> to vector<8x8xf32>
    %70 = arith.subf %66, %69 : vector<8x8xf32>
    %71 = math.exp %70 : vector<8x8xf32>
    %cst_27 = arith.constant dense<0.000000e+00> : vector<8xf32>
    %72 = vector.multi_reduction <add>, %71, %cst_27 [1] : vector<8x8xf32> to vector<8xf32>
    %73 = vector.shape_cast %72 : vector<8xf32> to vector<8x1xf32>
    %74 = tpu.reciprocal %73 {approx = true} : vector<8x1xf32> -> vector<8x1xf32>
    %75 = vector.broadcast %74 : vector<8x1xf32> to vector<8x8xf32>
    %76 = arith.mulf %71, %75 : vector<8x8xf32>
    %cst_28 = arith.constant dense<0.000000e+00> : vector<8x8xf32>
    %77 = tpu.matmul %76, %61, %cst_28 {dimension_numbers = #tpu.dot_dimension_numbers<[1], [0], [0], [1], [0, 0, 1, 1], [], []>} : vector<8x8xf32>, vector<8x8xf32>, vector<8x8xf32> -> vector<8x8xf32>
    %c0_29 = arith.constant 0 : index
    %c16 = arith.constant 16 : index
    %78 = vector.load %arg17[%c0_29, %c16] : memref<16x32xf32, #tpu.memory_space<vmem>>, vector<8x8xf32>
    tpu.vector_store %arg17[%c0_29, %c16], %77 {strides = array<i32>} : memref<16x32xf32, #tpu.memory_space<vmem>>, vector<8x8xf32>,
    %79 = vector.extract_strided_slice %16 {offsets = [0, 24], sizes = [8, 8], strides = [1, 1]} : vector<8x32xf32> to vector<8x8xf32>
    %80 = vector.extract_strided_slice %17 {offsets = [0, 24], sizes = [8, 8], strides = [1, 1]} : vector<8x32xf32> to vector<8x8xf32>
    %81 = vector.extract_strided_slice %18 {offsets = [0, 24], sizes = [8, 8], strides = [1, 1]} : vector<8x32xf32> to vector<8x8xf32>
    %82 = tpu.transpose %80, [1, 0] : vector<8x8xf32> -> vector<8x8xf32>
    %cst_30 = arith.constant dense<0.000000e+00> : vector<8x8xf32>
    %83 = tpu.matmul %79, %82, %cst_30 {dimension_numbers = #tpu.dot_dimension_numbers<[1], [0], [0], [1], [0, 0, 1, 1], [], []>} : vector<8x8xf32>, vector<8x8xf32>, vector<8x8xf32> -> vector<8x8xf32>
    %cst_31 = arith.constant 0.353553385 : f32
    %84 = vector.broadcast %cst_31 : f32 to vector<8x8xf32>
    %85 = arith.mulf %83, %84 : vector<8x8xf32>
    %86 = arith.addf %85, %15 : vector<8x8xf32>
    %cst_32 = arith.constant dense<0xFF800000> : vector<8xf32>
    %87 = vector.multi_reduction <maximumf>, %86, %cst_32 [1] : vector<8x8xf32> to vector<8xf32>
    %88 = vector.shape_cast %87 : vector<8xf32> to vector<8x1xf32>
    %89 = vector.broadcast %88 : vector<8x1xf32> to vector<8x8xf32>
    %90 = arith.subf %86, %89 : vector<8x8xf32>
    %91 = math.exp %90 : vector<8x8xf32>
    %cst_33 = arith.constant dense<0.000000e+00> : vector<8xf32>
    %92 = vector.multi_reduction <add>, %91, %cst_33 [1] : vector<8x8xf32> to vector<8xf32>
    %93 = vector.shape_cast %92 : vector<8xf32> to vector<8x1xf32>
    %94 = tpu.reciprocal %93 {approx = true} : vector<8x1xf32> -> vector<8x1xf32>
    %95 = vector.broadcast %94 : vector<8x1xf32> to vector<8x8xf32>
    %96 = arith.mulf %91, %95 : vector<8x8xf32>
    %cst_34 = arith.constant dense<0.000000e+00> : vector<8x8xf32>
    %97 = tpu.matmul %96, %81, %cst_34 {dimension_numbers = #tpu.dot_dimension_numbers<[1], [0], [0], [1], [0, 0, 1, 1], [], []>} : vector<8x8xf32>, vector<8x8xf32>, vector<8x8xf32> -> vector<8x8xf32>
    %c0_35 = arith.constant 0 : index
    %c24 = arith.constant 24 : index
    %98 = vector.load %arg17[%c0_35, %c24] : memref<16x32xf32, #tpu.memory_space<vmem>>, vector<8x8xf32>
    tpu.vector_store %arg17[%c0_35, %c24], %97 {strides = array<i32>} : memref<16x32xf32, #tpu.memory_space<vmem>>, vector<8x8xf32>,
    %c1 = arith.constant 1 : index
    %c0_36 = arith.constant 0 : index
    %c0_37 = arith.constant 0 : index
    %99 = vector.load %arg2[%c1, %c0_36, %c0_37] : memref<2x8x8xf32, #tpu.memory_space<vmem>>, vector<1x8x8xf32>
    %100 = vector.shape_cast %99 : vector<1x8x8xf32> to vector<8x8xf32>
    %101 = vector.extract_strided_slice %11 {offsets = [8, 0], sizes = [8, 32], strides = [1, 1]} : vector<16x32xf32> to vector<8x32xf32>
    %102 = vector.extract_strided_slice %12 {offsets = [8, 0], sizes = [8, 32], strides = [1, 1]} : vector<16x32xf32> to vector<8x32xf32>
    %103 = vector.extract_strided_slice %13 {offsets = [8, 0], sizes = [8, 32], strides = [1, 1]} : vector<16x32xf32> to vector<8x32xf32>
    %104 = vector.extract_strided_slice %101 {offsets = [0, 0], sizes = [8, 8], strides = [1, 1]} : vector<8x32xf32> to vector<8x8xf32>
    %105 = vector.extract_strided_slice %102 {offsets = [0, 0], sizes = [8, 8], strides = [1, 1]} : vector<8x32xf32> to vector<8x8xf32>
    %106 = vector.extract_strided_slice %103 {offsets = [0, 0], sizes = [8, 8], strides = [1, 1]} : vector<8x32xf32> to vector<8x8xf32>
    %107 = tpu.transpose %105, [1, 0] : vector<8x8xf32> -> vector<8x8xf32>
    %cst_38 = arith.constant dense<0.000000e+00> : vector<8x8xf32>
    %108 = tpu.matmul %104, %107, %cst_38 {dimension_numbers = #tpu.dot_dimension_numbers<[1], [0], [0], [1], [0, 0, 1, 1], [], []>} : vector<8x8xf32>, vector<8x8xf32>, vector<8x8xf32> -> vector<8x8xf32>
    %cst_39 = arith.constant 0.353553385 : f32
    %109 = vector.broadcast %cst_39 : f32 to vector<8x8xf32>
    %110 = arith.mulf %108, %109 : vector<8x8xf32>
    %111 = arith.addf %110, %100 : vector<8x8xf32>
    %cst_40 = arith.constant dense<0xFF800000> : vector<8xf32>
    %112 = vector.multi_reduction <maximumf>, %111, %cst_40 [1] : vector<8x8xf32> to vector<8xf32>
    %113 = vector.shape_cast %112 : vector<8xf32> to vector<8x1xf32>
    %114 = vector.broadcast %113 : vector<8x1xf32> to vector<8x8xf32>
    %115 = arith.subf %111, %114 : vector<8x8xf32>
    %116 = math.exp %115 : vector<8x8xf32>
    %cst_41 = arith.constant dense<0.000000e+00> : vector<8xf32>
    %117 = vector.multi_reduction <add>, %116, %cst_41 [1] : vector<8x8xf32> to vector<8xf32>
    %118 = vector.shape_cast %117 : vector<8xf32> to vector<8x1xf32>
    %119 = tpu.reciprocal %118 {approx = true} : vector<8x1xf32> -> vector<8x1xf32>
    %120 = vector.broadcast %119 : vector<8x1xf32> to vector<8x8xf32>
    %121 = arith.mulf %116, %120 : vector<8x8xf32>
    %cst_42 = arith.constant dense<0.000000e+00> : vector<8x8xf32>
    %122 = tpu.matmul %121, %106, %cst_42 {dimension_numbers = #tpu.dot_dimension_numbers<[1], [0], [0], [1], [0, 0, 1, 1], [], []>} : vector<8x8xf32>, vector<8x8xf32>, vector<8x8xf32> -> vector<8x8xf32>
    %c8_43 = arith.constant 8 : index
    %c0_44 = arith.constant 0 : index
    %123 = vector.load %arg17[%c8_43, %c0_44] : memref<16x32xf32, #tpu.memory_space<vmem>>, vector<8x8xf32>
    tpu.vector_store %arg17[%c8_43, %c0_44], %122 {strides = array<i32>} : memref<16x32xf32, #tpu.memory_space<vmem>>, vector<8x8xf32>,
    %124 = vector.extract_strided_slice %101 {offsets = [0, 8], sizes = [8, 8], strides = [1, 1]} : vector<8x32xf32> to vector<8x8xf32>
    %125 = vector.extract_strided_slice %102 {offsets = [0, 8], sizes = [8, 8], strides = [1, 1]} : vector<8x32xf32> to vector<8x8xf32>
    %126 = vector.extract_strided_slice %103 {offsets = [0, 8], sizes = [8, 8], strides = [1, 1]} : vector<8x32xf32> to vector<8x8xf32>
    %127 = tpu.transpose %125, [1, 0] : vector<8x8xf32> -> vector<8x8xf32>
    %cst_45 = arith.constant dense<0.000000e+00> : vector<8x8xf32>
    %128 = tpu.matmul %124, %127, %cst_45 {dimension_numbers = #tpu.dot_dimension_numbers<[1], [0], [0], [1], [0, 0, 1, 1], [], []>} : vector<8x8xf32>, vector<8x8xf32>, vector<8x8xf32> -> vector<8x8xf32>
    %cst_46 = arith.constant 0.353553385 : f32
    %129 = vector.broadcast %cst_46 : f32 to vector<8x8xf32>
    %130 = arith.mulf %128, %129 : vector<8x8xf32>
    %131 = arith.addf %130, %100 : vector<8x8xf32>
    %cst_47 = arith.constant dense<0xFF800000> : vector<8xf32>
    %132 = vector.multi_reduction <maximumf>, %131, %cst_47 [1] : vector<8x8xf32> to vector<8xf32>
    %133 = vector.shape_cast %132 : vector<8xf32> to vector<8x1xf32>
    %134 = vector.broadcast %133 : vector<8x1xf32> to vector<8x8xf32>
    %135 = arith.subf %131, %134 : vector<8x8xf32>
    %136 = math.exp %135 : vector<8x8xf32>
    %cst_48 = arith.constant dense<0.000000e+00> : vector<8xf32>
    %137 = vector.multi_reduction <add>, %136, %cst_48 [1] : vector<8x8xf32> to vector<8xf32>
    %138 = vector.shape_cast %137 : vector<8xf32> to vector<8x1xf32>
    %139 = tpu.reciprocal %138 {approx = true} : vector<8x1xf32> -> vector<8x1xf32>
    %140 = vector.broadcast %139 : vector<8x1xf32> to vector<8x8xf32>
    %141 = arith.mulf %136, %140 : vector<8x8xf32>
    %cst_49 = arith.constant dense<0.000000e+00> : vector<8x8xf32>
    %142 = tpu.matmul %141, %126, %cst_49 {dimension_numbers = #tpu.dot_dimension_numbers<[1], [0], [0], [1], [0, 0, 1, 1], [], []>} : vector<8x8xf32>, vector<8x8xf32>, vector<8x8xf32> -> vector<8x8xf32>
    %c8_50 = arith.constant 8 : index
    %c8_51 = arith.constant 8 : index
    %143 = vector.load %arg17[%c8_50, %c8_51] : memref<16x32xf32, #tpu.memory_space<vmem>>, vector<8x8xf32>
    tpu.vector_store %arg17[%c8_50, %c8_51], %142 {strides = array<i32>} : memref<16x32xf32, #tpu.memory_space<vmem>>, vector<8x8xf32>,
    %144 = vector.extract_strided_slice %101 {offsets = [0, 16], sizes = [8, 8], strides = [1, 1]} : vector<8x32xf32> to vector<8x8xf32>
    %145 = vector.extract_strided_slice %102 {offsets = [0, 16], sizes = [8, 8], strides = [1, 1]} : vector<8x32xf32> to vector<8x8xf32>
    %146 = vector.extract_strided_slice %103 {offsets = [0, 16], sizes = [8, 8], strides = [1, 1]} : vector<8x32xf32> to vector<8x8xf32>
    %147 = tpu.transpose %145, [1, 0] : vector<8x8xf32> -> vector<8x8xf32>
    %cst_52 = arith.constant dense<0.000000e+00> : vector<8x8xf32>
    %148 = tpu.matmul %144, %147, %cst_52 {dimension_numbers = #tpu.dot_dimension_numbers<[1], [0], [0], [1], [0, 0, 1, 1], [], []>} : vector<8x8xf32>, vector<8x8xf32>, vector<8x8xf32> -> vector<8x8xf32>
    %cst_53 = arith.constant 0.353553385 : f32
    %149 = vector.broadcast %cst_53 : f32 to vector<8x8xf32>
    %150 = arith.mulf %148, %149 : vector<8x8xf32>
    %151 = arith.addf %150, %100 : vector<8x8xf32>
    %cst_54 = arith.constant dense<0xFF800000> : vector<8xf32>
    %152 = vector.multi_reduction <maximumf>, %151, %cst_54 [1] : vector<8x8xf32> to vector<8xf32>
    %153 = vector.shape_cast %152 : vector<8xf32> to vector<8x1xf32>
    %154 = vector.broadcast %153 : vector<8x1xf32> to vector<8x8xf32>
    %155 = arith.subf %151, %154 : vector<8x8xf32>
    %156 = math.exp %155 : vector<8x8xf32>
    %cst_55 = arith.constant dense<0.000000e+00> : vector<8xf32>
    %157 = vector.multi_reduction <add>, %156, %cst_55 [1] : vector<8x8xf32> to vector<8xf32>
    %158 = vector.shape_cast %157 : vector<8xf32> to vector<8x1xf32>
    %159 = tpu.reciprocal %158 {approx = true} : vector<8x1xf32> -> vector<8x1xf32>
    %160 = vector.broadcast %159 : vector<8x1xf32> to vector<8x8xf32>
    %161 = arith.mulf %156, %160 : vector<8x8xf32>
    %cst_56 = arith.constant dense<0.000000e+00> : vector<8x8xf32>
    %162 = tpu.matmul %161, %146, %cst_56 {dimension_numbers = #tpu.dot_dimension_numbers<[1], [0], [0], [1], [0, 0, 1, 1], [], []>} : vector<8x8xf32>, vector<8x8xf32>, vector<8x8xf32> -> vector<8x8xf32>
    %c8_57 = arith.constant 8 : index
    %c16_58 = arith.constant 16 : index
    %163 = vector.load %arg17[%c8_57, %c16_58] : memref<16x32xf32, #tpu.memory_space<vmem>>, vector<8x8xf32>
    tpu.vector_store %arg17[%c8_57, %c16_58], %162 {strides = array<i32>} : memref<16x32xf32, #tpu.memory_space<vmem>>, vector<8x8xf32>,
    %164 = vector.extract_strided_slice %101 {offsets = [0, 24], sizes = [8, 8], strides = [1, 1]} : vector<8x32xf32> to vector<8x8xf32>
    %165 = vector.extract_strided_slice %102 {offsets = [0, 24], sizes = [8, 8], strides = [1, 1]} : vector<8x32xf32> to vector<8x8xf32>
    %166 = vector.extract_strided_slice %103 {offsets = [0, 24], sizes = [8, 8], strides = [1, 1]} : vector<8x32xf32> to vector<8x8xf32>
    %167 = tpu.transpose %165, [1, 0] : vector<8x8xf32> -> vector<8x8xf32>
    %cst_59 = arith.constant dense<0.000000e+00> : vector<8x8xf32>
    %168 = tpu.matmul %164, %167, %cst_59 {dimension_numbers = #tpu.dot_dimension_numbers<[1], [0], [0], [1], [0, 0, 1, 1], [], []>} : vector<8x8xf32>, vector<8x8xf32>, vector<8x8xf32> -> vector<8x8xf32>
    %cst_60 = arith.constant 0.353553385 : f32
    %169 = vector.broadcast %cst_60 : f32 to vector<8x8xf32>
    %170 = arith.mulf %168, %169 : vector<8x8xf32>
    %171 = arith.addf %170, %100 : vector<8x8xf32>
    %cst_61 = arith.constant dense<0xFF800000> : vector<8xf32>
    %172 = vector.multi_reduction <maximumf>, %171, %cst_61 [1] : vector<8x8xf32> to vector<8xf32>
    %173 = vector.shape_cast %172 : vector<8xf32> to vector<8x1xf32>
    %174 = vector.broadcast %173 : vector<8x1xf32> to vector<8x8xf32>
    %175 = arith.subf %171, %174 : vector<8x8xf32>
    %176 = math.exp %175 : vector<8x8xf32>
    %cst_62 = arith.constant dense<0.000000e+00> : vector<8xf32>
    %177 = vector.multi_reduction <add>, %176, %cst_62 [1] : vector<8x8xf32> to vector<8xf32>
    %178 = vector.shape_cast %177 : vector<8xf32> to vector<8x1xf32>
    %179 = tpu.reciprocal %178 {approx = true} : vector<8x1xf32> -> vector<8x1xf32>
    %180 = vector.broadcast %179 : vector<8x1xf32> to vector<8x8xf32>
    %181 = arith.mulf %176, %180 : vector<8x8xf32>
    %cst_63 = arith.constant dense<0.000000e+00> : vector<8x8xf32>
    %182 = tpu.matmul %181, %166, %cst_63 {dimension_numbers = #tpu.dot_dimension_numbers<[1], [0], [0], [1], [0, 0, 1, 1], [], []>} : vector<8x8xf32>, vector<8x8xf32>, vector<8x8xf32> -> vector<8x8xf32>
    %c8_64 = arith.constant 8 : index
    %c24_65 = arith.constant 24 : index
    %183 = vector.load %arg17[%c8_64, %c24_65] : memref<16x32xf32, #tpu.memory_space<vmem>>, vector<8x8xf32>
    tpu.vector_store %arg17[%c8_64, %c24_65], %182 {strides = array<i32>} : memref<16x32xf32, #tpu.memory_space<vmem>>, vector<8x8xf32>,
    %c0_66 = arith.constant 0 : index
    %c0_67 = arith.constant 0 : index
    %184 = vector.load %arg17[%c0_66, %c0_67] : memref<16x32xf32, #tpu.memory_space<vmem>>, vector<16x32xf32>
    %c0_68 = arith.constant 0 : index
    %c0_69 = arith.constant 0 : index
    %c0_70 = arith.constant 0 : index
    %185 = vector.load %arg5[%c0_68, %c0_69, %c0_70] : memref<1x32x32xf32, #tpu.memory_space<vmem>>, vector<1x32x32xf32>
    %186 = vector.shape_cast %185 : vector<1x32x32xf32> to vector<32x32xf32>
    %cst_71 = arith.constant dense<0.000000e+00> : vector<16x32xf32>
    %187 = tpu.matmul %184, %186, %cst_71 {dimension_numbers = #tpu.dot_dimension_numbers<[1], [0], [0], [1], [0, 0, 1, 1], [], []>} : vector<16x32xf32>, vector<32x32xf32>, vector<16x32xf32> -> vector<16x32xf32>
    %c0_72 = arith.constant 0 : index
    %c0_73 = arith.constant 0 : index
    %c0_74 = arith.constant 0 : index
    %188 = vector.load %arg6[%c0_72, %c0_73, %c0_74] : memref<1x1x32xf32, #tpu.memory_space<vmem>>, vector<1x1x32xf32>
    %189 = vector.shape_cast %188 : vector<1x1x32xf32> to vector<1x32xf32>
    %190 = vector.broadcast %189 : vector<1x32xf32> to vector<16x32xf32>
    %191 = arith.addf %187, %190 : vector<16x32xf32>
    %192 = arith.addf %191, %3 : vector<16x32xf32>
    %c0_75 = arith.constant 0 : index
    %c0_76 = arith.constant 0 : index
    %c0_77 = arith.constant 0 : index
    %193 = vector.load %arg7[%c0_75, %c0_76, %c0_77] : memref<1x1x32xf32, #tpu.memory_space<vmem>>, vector<1x1x32xf32>
    %194 = vector.shape_cast %193 : vector<1x1x32xf32> to vector<1x32xf32>
    %c0_78 = arith.constant 0 : index
    %c0_79 = arith.constant 0 : index
    %c0_80 = arith.constant 0 : index
    %195 = vector.load %arg8[%c0_78, %c0_79, %c0_80] : memref<1x1x32xf32, #tpu.memory_space<vmem>>, vector<1x1x32xf32>
    %196 = vector.shape_cast %195 : vector<1x1x32xf32> to vector<1x32xf32>
    %cst_81 = arith.constant dense<0.000000e+00> : vector<16xf32>
    %197 = vector.multi_reduction <add>, %192, %cst_81 [1] : vector<16x32xf32> to vector<16xf32>
    %198 = vector.shape_cast %197 : vector<16xf32> to vector<16x1xf32>
    %cst_82 = arith.constant 3.200000e+01 : f32
    %199 = vector.broadcast %cst_82 : f32 to vector<16x1xf32>
    %200 = arith.divf %198, %199 : vector<16x1xf32>
    %201 = vector.broadcast %200 : vector<16x1xf32> to vector<16x32xf32>
    %202 = arith.subf %192, %201 : vector<16x32xf32>
    %203 = arith.mulf %202, %202 : vector<16x32xf32>
    %cst_83 = arith.constant dense<0.000000e+00> : vector<16xf32>
    %204 = vector.multi_reduction <add>, %203, %cst_83 [1] : vector<16x32xf32> to vector<16xf32>
    %205 = vector.shape_cast %204 : vector<16xf32> to vector<16x1xf32>
    %cst_84 = arith.constant 3.200000e+01 : f32
    %206 = vector.broadcast %cst_84 : f32 to vector<16x1xf32>
    %207 = arith.divf %205, %206 : vector<16x1xf32>
    %208 = vector.broadcast %200 : vector<16x1xf32> to vector<16x32xf32>
    %209 = arith.subf %192, %208 : vector<16x32xf32>
    %cst_85 = arith.constant 9.99999974E-6 : f32
    %210 = vector.broadcast %cst_85 : f32 to vector<16x1xf32>
    %211 = arith.addf %207, %210 : vector<16x1xf32>
    %212 = math.rsqrt %211 : vector<16x1xf32>
    %213 = vector.broadcast %212 : vector<16x1xf32> to vector<16x32xf32>
    %214 = arith.mulf %209, %213 : vector<16x32xf32>
    %215 = vector.broadcast %194 : vector<1x32xf32> to vector<16x32xf32>
    %216 = arith.mulf %214, %215 : vector<16x32xf32>
    %217 = vector.broadcast %196 : vector<1x32xf32> to vector<16x32xf32>
    %218 = arith.addf %216, %217 : vector<16x32xf32>
    %c0_86 = arith.constant 0 : index
    %c0_87 = arith.constant 0 : index
    %c0_88 = arith.constant 0 : index
    %219 = vector.load %arg9[%c0_86, %c0_87, %c0_88] : memref<1x32x64xf32, #tpu.memory_space<vmem>>, vector<1x32x64xf32>
    %220 = vector.shape_cast %219 : vector<1x32x64xf32> to vector<32x64xf32>
    %cst_89 = arith.constant dense<0.000000e+00> : vector<16x64xf32>
    %221 = tpu.matmul %218, %220, %cst_89 {dimension_numbers = #tpu.dot_dimension_numbers<[1], [0], [0], [1], [0, 0, 1, 1], [], []>} : vector<16x32xf32>, vector<32x64xf32>, vector<16x64xf32> -> vector<16x64xf32>
    %c0_90 = arith.constant 0 : index
    %c0_91 = arith.constant 0 : index
    %c0_92 = arith.constant 0 : index
    %222 = vector.load %arg10[%c0_90, %c0_91, %c0_92] : memref<1x1x64xf32, #tpu.memory_space<vmem>>, vector<1x1x64xf32>
    %223 = vector.shape_cast %222 : vector<1x1x64xf32> to vector<1x64xf32>
    %224 = vector.broadcast %223 : vector<1x64xf32> to vector<16x64xf32>
    %225 = arith.addf %221, %224 : vector<16x64xf32>
    %cst_93 = arith.constant 0.000000e+00 : f32
    %226 = vector.broadcast %cst_93 : f32 to vector<16x64xf32>
    %227 = arith.maximumf %225, %226 : vector<16x64xf32>
    %c0_94 = arith.constant 0 : index
    %c0_95 = arith.constant 0 : index
    %c0_96 = arith.constant 0 : index
    %228 = vector.load %arg11[%c0_94, %c0_95, %c0_96] : memref<1x64x32xf32, #tpu.memory_space<vmem>>, vector<1x64x32xf32>
    %229 = vector.shape_cast %228 : vector<1x64x32xf32> to vector<64x32xf32>
    %cst_97 = arith.constant dense<0.000000e+00> : vector<16x32xf32>
    %230 = tpu.matmul %227, %229, %cst_97 {dimension_numbers = #tpu.dot_dimension_numbers<[1], [0], [0], [1], [0, 0, 1, 1], [], []>} : vector<16x64xf32>, vector<64x32xf32>, vector<16x32xf32> -> vector<16x32xf32>
    %c0_98 = arith.constant 0 : index
    %c0_99 = arith.constant 0 : index
    %c0_100 = arith.constant 0 : index
    %231 = vector.load %arg12[%c0_98, %c0_99, %c0_100] : memref<1x1x32xf32, #tpu.memory_space<vmem>>, vector<1x1x32xf32>
    %232 = vector.shape_cast %231 : vector<1x1x32xf32> to vector<1x32xf32>
    %233 = vector.broadcast %232 : vector<1x32xf32> to vector<16x32xf32>
    %234 = arith.addf %230, %233 : vector<16x32xf32>
    %235 = arith.addf %234, %218 : vector<16x32xf32>
    %c0_101 = arith.constant 0 : index
    %c0_102 = arith.constant 0 : index
    %c0_103 = arith.constant 0 : index
    %236 = vector.load %arg13[%c0_101, %c0_102, %c0_103] : memref<1x1x32xf32, #tpu.memory_space<vmem>>, vector<1x1x32xf32>
    %237 = vector.shape_cast %236 : vector<1x1x32xf32> to vector<1x32xf32>
    %c0_104 = arith.constant 0 : index
    %c0_105 = arith.constant 0 : index
    %c0_106 = arith.constant 0 : index
    %238 = vector.load %arg14[%c0_104, %c0_105, %c0_106] : memref<1x1x32xf32, #tpu.memory_space<vmem>>, vector<1x1x32xf32>
    %239 = vector.shape_cast %238 : vector<1x1x32xf32> to vector<1x32xf32>
    %cst_107 = arith.constant dense<0.000000e+00> : vector<16xf32>
    %240 = vector.multi_reduction <add>, %235, %cst_107 [1] : vector<16x32xf32> to vector<16xf32>
    %241 = vector.shape_cast %240 : vector<16xf32> to vector<16x1xf32>
    %cst_108 = arith.constant 3.200000e+01 : f32
    %242 = vector.broadcast %cst_108 : f32 to vector<16x1xf32>
    %243 = arith.divf %241, %242 : vector<16x1xf32>
    %244 = vector.broadcast %243 : vector<16x1xf32> to vector<16x32xf32>
    %245 = arith.subf %235, %244 : vector<16x32xf32>
    %246 = arith.mulf %245, %245 : vector<16x32xf32>
    %cst_109 = arith.constant dense<0.000000e+00> : vector<16xf32>
    %247 = vector.multi_reduction <add>, %246, %cst_109 [1] : vector<16x32xf32> to vector<16xf32>
    %248 = vector.shape_cast %247 : vector<16xf32> to vector<16x1xf32>
    %cst_110 = arith.constant 3.200000e+01 : f32
    %249 = vector.broadcast %cst_110 : f32 to vector<16x1xf32>
    %250 = arith.divf %248, %249 : vector<16x1xf32>
    %251 = vector.broadcast %243 : vector<16x1xf32> to vector<16x32xf32>
    %252 = arith.subf %235, %251 : vector<16x32xf32>
    %cst_111 = arith.constant 9.99999974E-6 : f32
    %253 = vector.broadcast %cst_111 : f32 to vector<16x1xf32>
    %254 = arith.addf %250, %253 : vector<16x1xf32>
    %255 = math.rsqrt %254 : vector<16x1xf32>
    %256 = vector.broadcast %255 : vector<16x1xf32> to vector<16x32xf32>
    %257 = arith.mulf %252, %256 : vector<16x32xf32>
    %258 = vector.broadcast %237 : vector<1x32xf32> to vector<16x32xf32>
    %259 = arith.mulf %257, %258 : vector<16x32xf32>
    %260 = vector.broadcast %239 : vector<1x32xf32> to vector<16x32xf32>
    %261 = arith.addf %259, %260 : vector<16x32xf32>
    %c0_112 = arith.constant 0 : index
    %c0_113 = arith.constant 0 : index
    %262 = vector.load %arg16[%c0_112, %c0_113] : memref<16x32xf32, #tpu.memory_space<vmem>>, vector<16x32xf32>
    tpu.vector_store %arg16[%c0_112, %c0_113], %261 {strides = array<i32>} : memref<16x32xf32, #tpu.memory_space<vmem>>, vector<16x32xf32>,
    %c0_114 = arith.constant 0 : index
    %c0_115 = arith.constant 0 : index
    %263 = vector.load %arg15[%c0_114, %c0_115] : memref<16x32xf32, #tpu.memory_space<vmem>>, vector<16x32xf32>
    tpu.vector_store %arg15[%c0_114, %c0_115], %261 {strides = array<i32>} : memref<16x32xf32, #tpu.memory_space<vmem>>, vector<16x32xf32>,
    return
  }
  func.func @transform_0(%arg0: i32) -> (i32, i32) {
    %c0_i32 = arith.constant 0 : i32
    %c0_i32_0 = arith.constant 0 : i32
    %c0_i32_1 = arith.constant 0 : i32
    return %c0_i32, %c0_i32_0 : i32, i32
  }
  func.func @transform_1(%arg0: i32) -> (i32, i32, i32) {
    %c0_i32 = arith.constant 0 : i32
    %c0_i32_0 = arith.constant 0 : i32
    %c0_i32_1 = arith.constant 0 : i32
    %c0_i32_2 = arith.constant 0 : i32
    return %c0_i32, %c0_i32_0, %c0_i32_1 : i32, i32, i32
  }
  func.func @transform_2(%arg0: i32) -> (i32, i32, i32) {
    %c0_i32 = arith.constant 0 : i32
    %c0_i32_0 = arith.constant 0 : i32
    %c0_i32_1 = arith.constant 0 : i32
    return %arg0, %c0_i32, %c0_i32_0 : i32, i32, i32
  }
  func.func @transform_3(%arg0: i32) -> (i32, i32, i32) {
    %c0_i32 = arith.constant 0 : i32
    %c0_i32_0 = arith.constant 0 : i32
    %c0_i32_1 = arith.constant 0 : i32
    return %arg0, %c0_i32, %c0_i32_0 : i32, i32, i32
  }
  func.func @transform_4(%arg0: i32) -> (i32, i32, i32) {
    %c0_i32 = arith.constant 0 : i32
    %c0_i32_0 = arith.constant 0 : i32
    %c0_i32_1 = arith.constant 0 : i32
    return %arg0, %c0_i32, %c0_i32_0 : i32, i32, i32
  }
  func.func @transform_5(%arg0: i32) -> (i32, i32, i32) {
    %c0_i32 = arith.constant 0 : i32
    %c0_i32_0 = arith.constant 0 : i32
    %c0_i32_1 = arith.constant 0 : i32
    return %arg0, %c0_i32, %c0_i32_0 : i32, i32, i32
  }
  func.func @transform_6(%arg0: i32) -> (i32, i32, i32) {
    %c0_i32 = arith.constant 0 : i32
    %c0_i32_0 = arith.constant 0 : i32
    %c0_i32_1 = arith.constant 0 : i32
    return %arg0, %c0_i32, %c0_i32_0 : i32, i32, i32
  }
  func.func @transform_7(%arg0: i32) -> (i32, i32, i32) {
    %c0_i32 = arith.constant 0 : i32
    %c0_i32_0 = arith.constant 0 : i32
    %c0_i32_1 = arith.constant 0 : i32
    return %arg0, %c0_i32, %c0_i32_0 : i32, i32, i32
  }
  func.func @transform_8(%arg0: i32) -> (i32, i32, i32) {
    %c0_i32 = arith.constant 0 : i32
    %c0_i32_0 = arith.constant 0 : i32
    %c0_i32_1 = arith.constant 0 : i32
    return %arg0, %c0_i32, %c0_i32_0 : i32, i32, i32
  }
  func.func @transform_9(%arg0: i32) -> (i32, i32, i32) {
    %c0_i32 = arith.constant 0 : i32
    %c0_i32_0 = arith.constant 0 : i32
    %c0_i32_1 = arith.constant 0 : i32
    return %arg0, %c0_i32, %c0_i32_0 : i32, i32, i32
  }
  func.func @transform_10(%arg0: i32) -> (i32, i32, i32) {
    %c0_i32 = arith.constant 0 : i32
    %c0_i32_0 = arith.constant 0 : i32
    %c0_i32_1 = arith.constant 0 : i32
    return %arg0, %c0_i32, %c0_i32_0 : i32, i32, i32
  }
  func.func @transform_11(%arg0: i32) -> (i32, i32, i32) {
    %c0_i32 = arith.constant 0 : i32
    %c0_i32_0 = arith.constant 0 : i32
    %c0_i32_1 = arith.constant 0 : i32
    return %arg0, %c0_i32, %c0_i32_0 : i32, i32, i32
  }
  func.func @transform_12(%arg0: i32) -> (i32, i32, i32) {
    %c0_i32 = arith.constant 0 : i32
    %c0_i32_0 = arith.constant 0 : i32
    %c0_i32_1 = arith.constant 0 : i32
    return %arg0, %c0_i32, %c0_i32_0 : i32, i32, i32
  }
  func.func @transform_13(%arg0: i32) -> (i32, i32, i32) {
    %c0_i32 = arith.constant 0 : i32
    %c0_i32_0 = arith.constant 0 : i32
    %c0_i32_1 = arith.constant 0 : i32
    return %arg0, %c0_i32, %c0_i32_0 : i32, i32, i32
  }
  func.func @transform_14(%arg0: i32) -> (i32, i32) {
    %c0_i32 = arith.constant 0 : i32
    %c0_i32_0 = arith.constant 0 : i32
    %c0_i32_1 = arith.constant 0 : i32
    return %c0_i32, %c0_i32_0 : i32, i32
  }
}

module attributes {stable_mosaic.version = 11 : i64} {
  func.func @_decoder_stack_kernel(%arg0: i32, %arg1: memref<16x32xf32, #tpu.memory_space<vmem>>, %arg2: memref<16x32xf32, #tpu.memory_space<vmem>>, %arg3: memref<2x8x8xf32, #tpu.memory_space<vmem>>, %arg4: memref<2x8x8xf32, #tpu.memory_space<vmem>>, %arg5: memref<1x32x96xf32, #tpu.memory_space<vmem>>, %arg6: memref<1x1x96xf32, #tpu.memory_space<vmem>>, %arg7: memref<1x32x32xf32, #tpu.memory_space<vmem>>, %arg8: memref<1x1x32xf32, #tpu.memory_space<vmem>>, %arg9: memref<1x1x32xf32, #tpu.memory_space<vmem>>, %arg10: memref<1x1x32xf32, #tpu.memory_space<vmem>>, %arg11: memref<1x32x32xf32, #tpu.memory_space<vmem>>, %arg12: memref<1x1x32xf32, #tpu.memory_space<vmem>>, %arg13: memref<1x32x64xf32, #tpu.memory_space<vmem>>, %arg14: memref<1x1x64xf32, #tpu.memory_space<vmem>>, %arg15: memref<1x32x32xf32, #tpu.memory_space<vmem>>, %arg16: memref<1x1x32xf32, #tpu.memory_space<vmem>>, %arg17: memref<1x1x32xf32, #tpu.memory_space<vmem>>, %arg18: memref<1x1x32xf32, #tpu.memory_space<vmem>>, %arg19: memref<1x32x64xf32, #tpu.memory_space<vmem>>, %arg20: memref<1x1x64xf32, #tpu.memory_space<vmem>>, %arg21: memref<1x64x32xf32, #tpu.memory_space<vmem>>, %arg22: memref<1x1x32xf32, #tpu.memory_space<vmem>>, %arg23: memref<1x1x32xf32, #tpu.memory_space<vmem>>, %arg24: memref<1x1x32xf32, #tpu.memory_space<vmem>>, %arg25: memref<16x32xf32, #tpu.memory_space<vmem>>, %arg26: memref<16x32xf32, #tpu.memory_space<vmem>>, %arg27: memref<16x32xf32, #tpu.memory_space<vmem>>) attributes {dimension_semantics = [#tpu.dimension_semantics<arbitrary>], iteration_bounds = array<i64: 2>, scalar_prefetch = 0 : i64, scratch_operands = 2 : i64, tpu.core_type = #tpu.core_type<tc>, window_params = [{pipeline_mode = #tpu.pipeline_mode<synchronous>, transform_indices = @transform_0, window_bounds = array<i64: 16, 32>}, {pipeline_mode = #tpu.pipeline_mode<synchronous>, transform_indices = @transform_1, window_bounds = array<i64: 16, 32>}, {pipeline_mode = #tpu.pipeline_mode<synchronous>, transform_indices = @transform_2, window_bounds = array<i64: 2, 8, 8>}, {pipeline_mode = #tpu.pipeline_mode<synchronous>, transform_indices = @transform_3, window_bounds = array<i64: 2, 8, 8>}, {transform_indices = @transform_4, window_bounds = array<i64: 1, 32, 96>}, {transform_indices = @transform_5, window_bounds = array<i64: 1, 1, 96>}, {transform_indices = @transform_6, window_bounds = array<i64: 1, 32, 32>}, {transform_indices = @transform_7, window_bounds = array<i64: 1, 1, 32>}, {transform_indices = @transform_8, window_bounds = array<i64: 1, 1, 32>}, {transform_indices = @transform_9, window_bounds = array<i64: 1, 1, 32>}, {transform_indices = @transform_10, window_bounds = array<i64: 1, 32, 32>}, {transform_indices = @transform_11, window_bounds = array<i64: 1, 1, 32>}, {transform_indices = @transform_12, window_bounds = array<i64: 1, 32, 64>}, {transform_indices = @transform_13, window_bounds = array<i64: 1, 1, 64>}, {transform_indices = @transform_14, window_bounds = array<i64: 1, 32, 32>}, {transform_indices = @transform_15, window_bounds = array<i64: 1, 1, 32>}, {transform_indices = @transform_16, window_bounds = array<i64: 1, 1, 32>}, {transform_indices = @transform_17, window_bounds = array<i64: 1, 1, 32>}, {transform_indices = @transform_18, window_bounds = array<i64: 1, 32, 64>}, {transform_indices = @transform_19, window_bounds = array<i64: 1, 1, 64>}, {transform_indices = @transform_20, window_bounds = array<i64: 1, 64, 32>}, {transform_indices = @transform_21, window_bounds = array<i64: 1, 1, 32>}, {transform_indices = @transform_22, window_bounds = array<i64: 1, 1, 32>}, {transform_indices = @transform_23, window_bounds = array<i64: 1, 1, 32>}, {pipeline_mode = #tpu.pipeline_mode<synchronous>, transform_indices = @transform_24, window_bounds = array<i64: 16, 32>}]} {
    %c0_i32 = arith.constant 0 : i32
    %0 = arith.cmpi eq, %arg0, %c0_i32 : i32
    %1 = arith.extui %0 : i1 to i32
    %c0_i32_0 = arith.constant 0 : i32
    %2 = arith.cmpi ne, %1, %c0_i32_0 : i32
    scf.if %2 {
      %c0_214 = arith.constant 0 : index
      %c0_215 = arith.constant 0 : index
      %486 = vector.load %arg1[%c0_214, %c0_215] : memref<16x32xf32, #tpu.memory_space<vmem>>, vector<16x32xf32>
      %c0_216 = arith.constant 0 : index
      %c0_217 = arith.constant 0 : index
      %487 = vector.load %arg26[%c0_216, %c0_217] : memref<16x32xf32, #tpu.memory_space<vmem>>, vector<16x32xf32>
      tpu.vector_store %arg26[%c0_216, %c0_217], %486 {strides = array<i32>} : memref<16x32xf32, #tpu.memory_space<vmem>>, vector<16x32xf32>,
    } else {
    }
    %c0 = arith.constant 0 : index
    %c0_1 = arith.constant 0 : index
    %3 = vector.load %arg26[%c0, %c0_1] : memref<16x32xf32, #tpu.memory_space<vmem>>, vector<16x32xf32>
    %c0_2 = arith.constant 0 : index
    %c0_3 = arith.constant 0 : index
    %c0_4 = arith.constant 0 : index
    %4 = vector.load %arg5[%c0_2, %c0_3, %c0_4] : memref<1x32x96xf32, #tpu.memory_space<vmem>>, vector<1x32x96xf32>
    %5 = vector.shape_cast %4 : vector<1x32x96xf32> to vector<32x96xf32>
    %cst = arith.constant dense<0.000000e+00> : vector<16x96xf32>
    %6 = tpu.matmul %3, %5, %cst {dimension_numbers = #tpu.dot_dimension_numbers<[1], [0], [0], [1], [0, 0, 1, 1], [], []>} : vector<16x32xf32>, vector<32x96xf32>, vector<16x96xf32> -> vector<16x96xf32>
    %c0_5 = arith.constant 0 : index
    %c0_6 = arith.constant 0 : index
    %c0_7 = arith.constant 0 : index
    %7 = vector.load %arg6[%c0_5, %c0_6, %c0_7] : memref<1x1x96xf32, #tpu.memory_space<vmem>>, vector<1x1x96xf32>
    %8 = vector.shape_cast %7 : vector<1x1x96xf32> to vector<1x96xf32>
    %9 = vector.broadcast %8 : vector<1x96xf32> to vector<16x96xf32>
    %10 = arith.addf %6, %9 : vector<16x96xf32>
    %11 = vector.extract_strided_slice %10 {offsets = [0, 0], sizes = [16, 32], strides = [1, 1]} : vector<16x96xf32> to vector<16x32xf32>
    %12 = vector.extract_strided_slice %10 {offsets = [0, 32], sizes = [16, 32], strides = [1, 1]} : vector<16x96xf32> to vector<16x32xf32>
    %13 = vector.extract_strided_slice %10 {offsets = [0, 64], sizes = [16, 32], strides = [1, 1]} : vector<16x96xf32> to vector<16x32xf32>
    %c0_8 = arith.constant 0 : index
    %c0_9 = arith.constant 0 : index
    %c0_10 = arith.constant 0 : index
    %14 = vector.load %arg3[%c0_8, %c0_9, %c0_10] : memref<2x8x8xf32, #tpu.memory_space<vmem>>, vector<1x8x8xf32>
    %15 = vector.shape_cast %14 : vector<1x8x8xf32> to vector<8x8xf32>
    %16 = vector.extract_strided_slice %11 {offsets = [0, 0], sizes = [8, 32], strides = [1, 1]} : vector<16x32xf32> to vector<8x32xf32>
    %17 = vector.extract_strided_slice %12 {offsets = [0, 0], sizes = [8, 32], strides = [1, 1]} : vector<16x32xf32> to vector<8x32xf32>
    %18 = vector.extract_strided_slice %13 {offsets = [0, 0], sizes = [8, 32], strides = [1, 1]} : vector<16x32xf32> to vector<8x32xf32>
    %19 = vector.extract_strided_slice %16 {offsets = [0, 0], sizes = [8, 8], strides = [1, 1]} : vector<8x32xf32> to vector<8x8xf32>
    %20 = vector.extract_strided_slice %17 {offsets = [0, 0], sizes = [8, 8], strides = [1, 1]} : vector<8x32xf32> to vector<8x8xf32>
    %21 = vector.extract_strided_slice %18 {offsets = [0, 0], sizes = [8, 8], strides = [1, 1]} : vector<8x32xf32> to vector<8x8xf32>
    %22 = tpu.transpose %20, [1, 0] : vector<8x8xf32> -> vector<8x8xf32>
    %cst_11 = arith.constant dense<0.000000e+00> : vector<8x8xf32>
    %23 = tpu.matmul %19, %22, %cst_11 {dimension_numbers = #tpu.dot_dimension_numbers<[1], [0], [0], [1], [0, 0, 1, 1], [], []>} : vector<8x8xf32>, vector<8x8xf32>, vector<8x8xf32> -> vector<8x8xf32>
    %cst_12 = arith.constant 0.353553385 : f32
    %24 = vector.broadcast %cst_12 : f32 to vector<8x8xf32>
    %25 = arith.mulf %23, %24 : vector<8x8xf32>
    %26 = arith.addf %25, %15 : vector<8x8xf32>
    %cst_13 = arith.constant dense<0xFF800000> : vector<8xf32>
    %27 = vector.multi_reduction <maximumf>, %26, %cst_13 [1] : vector<8x8xf32> to vector<8xf32>
    %28 = vector.shape_cast %27 : vector<8xf32> to vector<8x1xf32>
    %29 = vector.broadcast %28 : vector<8x1xf32> to vector<8x8xf32>
    %30 = arith.subf %26, %29 : vector<8x8xf32>
    %31 = math.exp %30 : vector<8x8xf32>
    %cst_14 = arith.constant dense<0.000000e+00> : vector<8xf32>
    %32 = vector.multi_reduction <add>, %31, %cst_14 [1] : vector<8x8xf32> to vector<8xf32>
    %33 = vector.shape_cast %32 : vector<8xf32> to vector<8x1xf32>
    %34 = tpu.reciprocal %33 {approx = true} : vector<8x1xf32> -> vector<8x1xf32>
    %35 = vector.broadcast %34 : vector<8x1xf32> to vector<8x8xf32>
    %36 = arith.mulf %31, %35 : vector<8x8xf32>
    %cst_15 = arith.constant dense<0.000000e+00> : vector<8x8xf32>
    %37 = tpu.matmul %36, %21, %cst_15 {dimension_numbers = #tpu.dot_dimension_numbers<[1], [0], [0], [1], [0, 0, 1, 1], [], []>} : vector<8x8xf32>, vector<8x8xf32>, vector<8x8xf32> -> vector<8x8xf32>
    %c0_16 = arith.constant 0 : index
    %c0_17 = arith.constant 0 : index
    %38 = vector.load %arg27[%c0_16, %c0_17] : memref<16x32xf32, #tpu.memory_space<vmem>>, vector<8x8xf32>
    tpu.vector_store %arg27[%c0_16, %c0_17], %37 {strides = array<i32>} : memref<16x32xf32, #tpu.memory_space<vmem>>, vector<8x8xf32>,
    %39 = vector.extract_strided_slice %16 {offsets = [0, 8], sizes = [8, 8], strides = [1, 1]} : vector<8x32xf32> to vector<8x8xf32>
    %40 = vector.extract_strided_slice %17 {offsets = [0, 8], sizes = [8, 8], strides = [1, 1]} : vector<8x32xf32> to vector<8x8xf32>
    %41 = vector.extract_strided_slice %18 {offsets = [0, 8], sizes = [8, 8], strides = [1, 1]} : vector<8x32xf32> to vector<8x8xf32>
    %42 = tpu.transpose %40, [1, 0] : vector<8x8xf32> -> vector<8x8xf32>
    %cst_18 = arith.constant dense<0.000000e+00> : vector<8x8xf32>
    %43 = tpu.matmul %39, %42, %cst_18 {dimension_numbers = #tpu.dot_dimension_numbers<[1], [0], [0], [1], [0, 0, 1, 1], [], []>} : vector<8x8xf32>, vector<8x8xf32>, vector<8x8xf32> -> vector<8x8xf32>
    %cst_19 = arith.constant 0.353553385 : f32
    %44 = vector.broadcast %cst_19 : f32 to vector<8x8xf32>
    %45 = arith.mulf %43, %44 : vector<8x8xf32>
    %46 = arith.addf %45, %15 : vector<8x8xf32>
    %cst_20 = arith.constant dense<0xFF800000> : vector<8xf32>
    %47 = vector.multi_reduction <maximumf>, %46, %cst_20 [1] : vector<8x8xf32> to vector<8xf32>
    %48 = vector.shape_cast %47 : vector<8xf32> to vector<8x1xf32>
    %49 = vector.broadcast %48 : vector<8x1xf32> to vector<8x8xf32>
    %50 = arith.subf %46, %49 : vector<8x8xf32>
    %51 = math.exp %50 : vector<8x8xf32>
    %cst_21 = arith.constant dense<0.000000e+00> : vector<8xf32>
    %52 = vector.multi_reduction <add>, %51, %cst_21 [1] : vector<8x8xf32> to vector<8xf32>
    %53 = vector.shape_cast %52 : vector<8xf32> to vector<8x1xf32>
    %54 = tpu.reciprocal %53 {approx = true} : vector<8x1xf32> -> vector<8x1xf32>
    %55 = vector.broadcast %54 : vector<8x1xf32> to vector<8x8xf32>
    %56 = arith.mulf %51, %55 : vector<8x8xf32>
    %cst_22 = arith.constant dense<0.000000e+00> : vector<8x8xf32>
    %57 = tpu.matmul %56, %41, %cst_22 {dimension_numbers = #tpu.dot_dimension_numbers<[1], [0], [0], [1], [0, 0, 1, 1], [], []>} : vector<8x8xf32>, vector<8x8xf32>, vector<8x8xf32> -> vector<8x8xf32>
    %c0_23 = arith.constant 0 : index
    %c8 = arith.constant 8 : index
    %58 = vector.load %arg27[%c0_23, %c8] : memref<16x32xf32, #tpu.memory_space<vmem>>, vector<8x8xf32>
    tpu.vector_store %arg27[%c0_23, %c8], %57 {strides = array<i32>} : memref<16x32xf32, #tpu.memory_space<vmem>>, vector<8x8xf32>,
    %59 = vector.extract_strided_slice %16 {offsets = [0, 16], sizes = [8, 8], strides = [1, 1]} : vector<8x32xf32> to vector<8x8xf32>
    %60 = vector.extract_strided_slice %17 {offsets = [0, 16], sizes = [8, 8], strides = [1, 1]} : vector<8x32xf32> to vector<8x8xf32>
    %61 = vector.extract_strided_slice %18 {offsets = [0, 16], sizes = [8, 8], strides = [1, 1]} : vector<8x32xf32> to vector<8x8xf32>
    %62 = tpu.transpose %60, [1, 0] : vector<8x8xf32> -> vector<8x8xf32>
    %cst_24 = arith.constant dense<0.000000e+00> : vector<8x8xf32>
    %63 = tpu.matmul %59, %62, %cst_24 {dimension_numbers = #tpu.dot_dimension_numbers<[1], [0], [0], [1], [0, 0, 1, 1], [], []>} : vector<8x8xf32>, vector<8x8xf32>, vector<8x8xf32> -> vector<8x8xf32>
    %cst_25 = arith.constant 0.353553385 : f32
    %64 = vector.broadcast %cst_25 : f32 to vector<8x8xf32>
    %65 = arith.mulf %63, %64 : vector<8x8xf32>
    %66 = arith.addf %65, %15 : vector<8x8xf32>
    %cst_26 = arith.constant dense<0xFF800000> : vector<8xf32>
    %67 = vector.multi_reduction <maximumf>, %66, %cst_26 [1] : vector<8x8xf32> to vector<8xf32>
    %68 = vector.shape_cast %67 : vector<8xf32> to vector<8x1xf32>
    %69 = vector.broadcast %68 : vector<8x1xf32> to vector<8x8xf32>
    %70 = arith.subf %66, %69 : vector<8x8xf32>
    %71 = math.exp %70 : vector<8x8xf32>
    %cst_27 = arith.constant dense<0.000000e+00> : vector<8xf32>
    %72 = vector.multi_reduction <add>, %71, %cst_27 [1] : vector<8x8xf32> to vector<8xf32>
    %73 = vector.shape_cast %72 : vector<8xf32> to vector<8x1xf32>
    %74 = tpu.reciprocal %73 {approx = true} : vector<8x1xf32> -> vector<8x1xf32>
    %75 = vector.broadcast %74 : vector<8x1xf32> to vector<8x8xf32>
    %76 = arith.mulf %71, %75 : vector<8x8xf32>
    %cst_28 = arith.constant dense<0.000000e+00> : vector<8x8xf32>
    %77 = tpu.matmul %76, %61, %cst_28 {dimension_numbers = #tpu.dot_dimension_numbers<[1], [0], [0], [1], [0, 0, 1, 1], [], []>} : vector<8x8xf32>, vector<8x8xf32>, vector<8x8xf32> -> vector<8x8xf32>
    %c0_29 = arith.constant 0 : index
    %c16 = arith.constant 16 : index
    %78 = vector.load %arg27[%c0_29, %c16] : memref<16x32xf32, #tpu.memory_space<vmem>>, vector<8x8xf32>
    tpu.vector_store %arg27[%c0_29, %c16], %77 {strides = array<i32>} : memref<16x32xf32, #tpu.memory_space<vmem>>, vector<8x8xf32>,
    %79 = vector.extract_strided_slice %16 {offsets = [0, 24], sizes = [8, 8], strides = [1, 1]} : vector<8x32xf32> to vector<8x8xf32>
    %80 = vector.extract_strided_slice %17 {offsets = [0, 24], sizes = [8, 8], strides = [1, 1]} : vector<8x32xf32> to vector<8x8xf32>
    %81 = vector.extract_strided_slice %18 {offsets = [0, 24], sizes = [8, 8], strides = [1, 1]} : vector<8x32xf32> to vector<8x8xf32>
    %82 = tpu.transpose %80, [1, 0] : vector<8x8xf32> -> vector<8x8xf32>
    %cst_30 = arith.constant dense<0.000000e+00> : vector<8x8xf32>
    %83 = tpu.matmul %79, %82, %cst_30 {dimension_numbers = #tpu.dot_dimension_numbers<[1], [0], [0], [1], [0, 0, 1, 1], [], []>} : vector<8x8xf32>, vector<8x8xf32>, vector<8x8xf32> -> vector<8x8xf32>
    %cst_31 = arith.constant 0.353553385 : f32
    %84 = vector.broadcast %cst_31 : f32 to vector<8x8xf32>
    %85 = arith.mulf %83, %84 : vector<8x8xf32>
    %86 = arith.addf %85, %15 : vector<8x8xf32>
    %cst_32 = arith.constant dense<0xFF800000> : vector<8xf32>
    %87 = vector.multi_reduction <maximumf>, %86, %cst_32 [1] : vector<8x8xf32> to vector<8xf32>
    %88 = vector.shape_cast %87 : vector<8xf32> to vector<8x1xf32>
    %89 = vector.broadcast %88 : vector<8x1xf32> to vector<8x8xf32>
    %90 = arith.subf %86, %89 : vector<8x8xf32>
    %91 = math.exp %90 : vector<8x8xf32>
    %cst_33 = arith.constant dense<0.000000e+00> : vector<8xf32>
    %92 = vector.multi_reduction <add>, %91, %cst_33 [1] : vector<8x8xf32> to vector<8xf32>
    %93 = vector.shape_cast %92 : vector<8xf32> to vector<8x1xf32>
    %94 = tpu.reciprocal %93 {approx = true} : vector<8x1xf32> -> vector<8x1xf32>
    %95 = vector.broadcast %94 : vector<8x1xf32> to vector<8x8xf32>
    %96 = arith.mulf %91, %95 : vector<8x8xf32>
    %cst_34 = arith.constant dense<0.000000e+00> : vector<8x8xf32>
    %97 = tpu.matmul %96, %81, %cst_34 {dimension_numbers = #tpu.dot_dimension_numbers<[1], [0], [0], [1], [0, 0, 1, 1], [], []>} : vector<8x8xf32>, vector<8x8xf32>, vector<8x8xf32> -> vector<8x8xf32>
    %c0_35 = arith.constant 0 : index
    %c24 = arith.constant 24 : index
    %98 = vector.load %arg27[%c0_35, %c24] : memref<16x32xf32, #tpu.memory_space<vmem>>, vector<8x8xf32>
    tpu.vector_store %arg27[%c0_35, %c24], %97 {strides = array<i32>} : memref<16x32xf32, #tpu.memory_space<vmem>>, vector<8x8xf32>,
    %c1 = arith.constant 1 : index
    %c0_36 = arith.constant 0 : index
    %c0_37 = arith.constant 0 : index
    %99 = vector.load %arg3[%c1, %c0_36, %c0_37] : memref<2x8x8xf32, #tpu.memory_space<vmem>>, vector<1x8x8xf32>
    %100 = vector.shape_cast %99 : vector<1x8x8xf32> to vector<8x8xf32>
    %101 = vector.extract_strided_slice %11 {offsets = [8, 0], sizes = [8, 32], strides = [1, 1]} : vector<16x32xf32> to vector<8x32xf32>
    %102 = vector.extract_strided_slice %12 {offsets = [8, 0], sizes = [8, 32], strides = [1, 1]} : vector<16x32xf32> to vector<8x32xf32>
    %103 = vector.extract_strided_slice %13 {offsets = [8, 0], sizes = [8, 32], strides = [1, 1]} : vector<16x32xf32> to vector<8x32xf32>
    %104 = vector.extract_strided_slice %101 {offsets = [0, 0], sizes = [8, 8], strides = [1, 1]} : vector<8x32xf32> to vector<8x8xf32>
    %105 = vector.extract_strided_slice %102 {offsets = [0, 0], sizes = [8, 8], strides = [1, 1]} : vector<8x32xf32> to vector<8x8xf32>
    %106 = vector.extract_strided_slice %103 {offsets = [0, 0], sizes = [8, 8], strides = [1, 1]} : vector<8x32xf32> to vector<8x8xf32>
    %107 = tpu.transpose %105, [1, 0] : vector<8x8xf32> -> vector<8x8xf32>
    %cst_38 = arith.constant dense<0.000000e+00> : vector<8x8xf32>
    %108 = tpu.matmul %104, %107, %cst_38 {dimension_numbers = #tpu.dot_dimension_numbers<[1], [0], [0], [1], [0, 0, 1, 1], [], []>} : vector<8x8xf32>, vector<8x8xf32>, vector<8x8xf32> -> vector<8x8xf32>
    %cst_39 = arith.constant 0.353553385 : f32
    %109 = vector.broadcast %cst_39 : f32 to vector<8x8xf32>
    %110 = arith.mulf %108, %109 : vector<8x8xf32>
    %111 = arith.addf %110, %100 : vector<8x8xf32>
    %cst_40 = arith.constant dense<0xFF800000> : vector<8xf32>
    %112 = vector.multi_reduction <maximumf>, %111, %cst_40 [1] : vector<8x8xf32> to vector<8xf32>
    %113 = vector.shape_cast %112 : vector<8xf32> to vector<8x1xf32>
    %114 = vector.broadcast %113 : vector<8x1xf32> to vector<8x8xf32>
    %115 = arith.subf %111, %114 : vector<8x8xf32>
    %116 = math.exp %115 : vector<8x8xf32>
    %cst_41 = arith.constant dense<0.000000e+00> : vector<8xf32>
    %117 = vector.multi_reduction <add>, %116, %cst_41 [1] : vector<8x8xf32> to vector<8xf32>
    %118 = vector.shape_cast %117 : vector<8xf32> to vector<8x1xf32>
    %119 = tpu.reciprocal %118 {approx = true} : vector<8x1xf32> -> vector<8x1xf32>
    %120 = vector.broadcast %119 : vector<8x1xf32> to vector<8x8xf32>
    %121 = arith.mulf %116, %120 : vector<8x8xf32>
    %cst_42 = arith.constant dense<0.000000e+00> : vector<8x8xf32>
    %122 = tpu.matmul %121, %106, %cst_42 {dimension_numbers = #tpu.dot_dimension_numbers<[1], [0], [0], [1], [0, 0, 1, 1], [], []>} : vector<8x8xf32>, vector<8x8xf32>, vector<8x8xf32> -> vector<8x8xf32>
    %c8_43 = arith.constant 8 : index
    %c0_44 = arith.constant 0 : index
    %123 = vector.load %arg27[%c8_43, %c0_44] : memref<16x32xf32, #tpu.memory_space<vmem>>, vector<8x8xf32>
    tpu.vector_store %arg27[%c8_43, %c0_44], %122 {strides = array<i32>} : memref<16x32xf32, #tpu.memory_space<vmem>>, vector<8x8xf32>,
    %124 = vector.extract_strided_slice %101 {offsets = [0, 8], sizes = [8, 8], strides = [1, 1]} : vector<8x32xf32> to vector<8x8xf32>
    %125 = vector.extract_strided_slice %102 {offsets = [0, 8], sizes = [8, 8], strides = [1, 1]} : vector<8x32xf32> to vector<8x8xf32>
    %126 = vector.extract_strided_slice %103 {offsets = [0, 8], sizes = [8, 8], strides = [1, 1]} : vector<8x32xf32> to vector<8x8xf32>
    %127 = tpu.transpose %125, [1, 0] : vector<8x8xf32> -> vector<8x8xf32>
    %cst_45 = arith.constant dense<0.000000e+00> : vector<8x8xf32>
    %128 = tpu.matmul %124, %127, %cst_45 {dimension_numbers = #tpu.dot_dimension_numbers<[1], [0], [0], [1], [0, 0, 1, 1], [], []>} : vector<8x8xf32>, vector<8x8xf32>, vector<8x8xf32> -> vector<8x8xf32>
    %cst_46 = arith.constant 0.353553385 : f32
    %129 = vector.broadcast %cst_46 : f32 to vector<8x8xf32>
    %130 = arith.mulf %128, %129 : vector<8x8xf32>
    %131 = arith.addf %130, %100 : vector<8x8xf32>
    %cst_47 = arith.constant dense<0xFF800000> : vector<8xf32>
    %132 = vector.multi_reduction <maximumf>, %131, %cst_47 [1] : vector<8x8xf32> to vector<8xf32>
    %133 = vector.shape_cast %132 : vector<8xf32> to vector<8x1xf32>
    %134 = vector.broadcast %133 : vector<8x1xf32> to vector<8x8xf32>
    %135 = arith.subf %131, %134 : vector<8x8xf32>
    %136 = math.exp %135 : vector<8x8xf32>
    %cst_48 = arith.constant dense<0.000000e+00> : vector<8xf32>
    %137 = vector.multi_reduction <add>, %136, %cst_48 [1] : vector<8x8xf32> to vector<8xf32>
    %138 = vector.shape_cast %137 : vector<8xf32> to vector<8x1xf32>
    %139 = tpu.reciprocal %138 {approx = true} : vector<8x1xf32> -> vector<8x1xf32>
    %140 = vector.broadcast %139 : vector<8x1xf32> to vector<8x8xf32>
    %141 = arith.mulf %136, %140 : vector<8x8xf32>
    %cst_49 = arith.constant dense<0.000000e+00> : vector<8x8xf32>
    %142 = tpu.matmul %141, %126, %cst_49 {dimension_numbers = #tpu.dot_dimension_numbers<[1], [0], [0], [1], [0, 0, 1, 1], [], []>} : vector<8x8xf32>, vector<8x8xf32>, vector<8x8xf32> -> vector<8x8xf32>
    %c8_50 = arith.constant 8 : index
    %c8_51 = arith.constant 8 : index
    %143 = vector.load %arg27[%c8_50, %c8_51] : memref<16x32xf32, #tpu.memory_space<vmem>>, vector<8x8xf32>
    tpu.vector_store %arg27[%c8_50, %c8_51], %142 {strides = array<i32>} : memref<16x32xf32, #tpu.memory_space<vmem>>, vector<8x8xf32>,
    %144 = vector.extract_strided_slice %101 {offsets = [0, 16], sizes = [8, 8], strides = [1, 1]} : vector<8x32xf32> to vector<8x8xf32>
    %145 = vector.extract_strided_slice %102 {offsets = [0, 16], sizes = [8, 8], strides = [1, 1]} : vector<8x32xf32> to vector<8x8xf32>
    %146 = vector.extract_strided_slice %103 {offsets = [0, 16], sizes = [8, 8], strides = [1, 1]} : vector<8x32xf32> to vector<8x8xf32>
    %147 = tpu.transpose %145, [1, 0] : vector<8x8xf32> -> vector<8x8xf32>
    %cst_52 = arith.constant dense<0.000000e+00> : vector<8x8xf32>
    %148 = tpu.matmul %144, %147, %cst_52 {dimension_numbers = #tpu.dot_dimension_numbers<[1], [0], [0], [1], [0, 0, 1, 1], [], []>} : vector<8x8xf32>, vector<8x8xf32>, vector<8x8xf32> -> vector<8x8xf32>
    %cst_53 = arith.constant 0.353553385 : f32
    %149 = vector.broadcast %cst_53 : f32 to vector<8x8xf32>
    %150 = arith.mulf %148, %149 : vector<8x8xf32>
    %151 = arith.addf %150, %100 : vector<8x8xf32>
    %cst_54 = arith.constant dense<0xFF800000> : vector<8xf32>
    %152 = vector.multi_reduction <maximumf>, %151, %cst_54 [1] : vector<8x8xf32> to vector<8xf32>
    %153 = vector.shape_cast %152 : vector<8xf32> to vector<8x1xf32>
    %154 = vector.broadcast %153 : vector<8x1xf32> to vector<8x8xf32>
    %155 = arith.subf %151, %154 : vector<8x8xf32>
    %156 = math.exp %155 : vector<8x8xf32>
    %cst_55 = arith.constant dense<0.000000e+00> : vector<8xf32>
    %157 = vector.multi_reduction <add>, %156, %cst_55 [1] : vector<8x8xf32> to vector<8xf32>
    %158 = vector.shape_cast %157 : vector<8xf32> to vector<8x1xf32>
    %159 = tpu.reciprocal %158 {approx = true} : vector<8x1xf32> -> vector<8x1xf32>
    %160 = vector.broadcast %159 : vector<8x1xf32> to vector<8x8xf32>
    %161 = arith.mulf %156, %160 : vector<8x8xf32>
    %cst_56 = arith.constant dense<0.000000e+00> : vector<8x8xf32>
    %162 = tpu.matmul %161, %146, %cst_56 {dimension_numbers = #tpu.dot_dimension_numbers<[1], [0], [0], [1], [0, 0, 1, 1], [], []>} : vector<8x8xf32>, vector<8x8xf32>, vector<8x8xf32> -> vector<8x8xf32>
    %c8_57 = arith.constant 8 : index
    %c16_58 = arith.constant 16 : index
    %163 = vector.load %arg27[%c8_57, %c16_58] : memref<16x32xf32, #tpu.memory_space<vmem>>, vector<8x8xf32>
    tpu.vector_store %arg27[%c8_57, %c16_58], %162 {strides = array<i32>} : memref<16x32xf32, #tpu.memory_space<vmem>>, vector<8x8xf32>,
    %164 = vector.extract_strided_slice %101 {offsets = [0, 24], sizes = [8, 8], strides = [1, 1]} : vector<8x32xf32> to vector<8x8xf32>
    %165 = vector.extract_strided_slice %102 {offsets = [0, 24], sizes = [8, 8], strides = [1, 1]} : vector<8x32xf32> to vector<8x8xf32>
    %166 = vector.extract_strided_slice %103 {offsets = [0, 24], sizes = [8, 8], strides = [1, 1]} : vector<8x32xf32> to vector<8x8xf32>
    %167 = tpu.transpose %165, [1, 0] : vector<8x8xf32> -> vector<8x8xf32>
    %cst_59 = arith.constant dense<0.000000e+00> : vector<8x8xf32>
    %168 = tpu.matmul %164, %167, %cst_59 {dimension_numbers = #tpu.dot_dimension_numbers<[1], [0], [0], [1], [0, 0, 1, 1], [], []>} : vector<8x8xf32>, vector<8x8xf32>, vector<8x8xf32> -> vector<8x8xf32>
    %cst_60 = arith.constant 0.353553385 : f32
    %169 = vector.broadcast %cst_60 : f32 to vector<8x8xf32>
    %170 = arith.mulf %168, %169 : vector<8x8xf32>
    %171 = arith.addf %170, %100 : vector<8x8xf32>
    %cst_61 = arith.constant dense<0xFF800000> : vector<8xf32>
    %172 = vector.multi_reduction <maximumf>, %171, %cst_61 [1] : vector<8x8xf32> to vector<8xf32>
    %173 = vector.shape_cast %172 : vector<8xf32> to vector<8x1xf32>
    %174 = vector.broadcast %173 : vector<8x1xf32> to vector<8x8xf32>
    %175 = arith.subf %171, %174 : vector<8x8xf32>
    %176 = math.exp %175 : vector<8x8xf32>
    %cst_62 = arith.constant dense<0.000000e+00> : vector<8xf32>
    %177 = vector.multi_reduction <add>, %176, %cst_62 [1] : vector<8x8xf32> to vector<8xf32>
    %178 = vector.shape_cast %177 : vector<8xf32> to vector<8x1xf32>
    %179 = tpu.reciprocal %178 {approx = true} : vector<8x1xf32> -> vector<8x1xf32>
    %180 = vector.broadcast %179 : vector<8x1xf32> to vector<8x8xf32>
    %181 = arith.mulf %176, %180 : vector<8x8xf32>
    %cst_63 = arith.constant dense<0.000000e+00> : vector<8x8xf32>
    %182 = tpu.matmul %181, %166, %cst_63 {dimension_numbers = #tpu.dot_dimension_numbers<[1], [0], [0], [1], [0, 0, 1, 1], [], []>} : vector<8x8xf32>, vector<8x8xf32>, vector<8x8xf32> -> vector<8x8xf32>
    %c8_64 = arith.constant 8 : index
    %c24_65 = arith.constant 24 : index
    %183 = vector.load %arg27[%c8_64, %c24_65] : memref<16x32xf32, #tpu.memory_space<vmem>>, vector<8x8xf32>
    tpu.vector_store %arg27[%c8_64, %c24_65], %182 {strides = array<i32>} : memref<16x32xf32, #tpu.memory_space<vmem>>, vector<8x8xf32>,
    %c0_66 = arith.constant 0 : index
    %c0_67 = arith.constant 0 : index
    %184 = vector.load %arg27[%c0_66, %c0_67] : memref<16x32xf32, #tpu.memory_space<vmem>>, vector<16x32xf32>
    %c0_68 = arith.constant 0 : index
    %c0_69 = arith.constant 0 : index
    %c0_70 = arith.constant 0 : index
    %185 = vector.load %arg7[%c0_68, %c0_69, %c0_70] : memref<1x32x32xf32, #tpu.memory_space<vmem>>, vector<1x32x32xf32>
    %186 = vector.shape_cast %185 : vector<1x32x32xf32> to vector<32x32xf32>
    %cst_71 = arith.constant dense<0.000000e+00> : vector<16x32xf32>
    %187 = tpu.matmul %184, %186, %cst_71 {dimension_numbers = #tpu.dot_dimension_numbers<[1], [0], [0], [1], [0, 0, 1, 1], [], []>} : vector<16x32xf32>, vector<32x32xf32>, vector<16x32xf32> -> vector<16x32xf32>
    %c0_72 = arith.constant 0 : index
    %c0_73 = arith.constant 0 : index
    %c0_74 = arith.constant 0 : index
    %188 = vector.load %arg8[%c0_72, %c0_73, %c0_74] : memref<1x1x32xf32, #tpu.memory_space<vmem>>, vector<1x1x32xf32>
    %189 = vector.shape_cast %188 : vector<1x1x32xf32> to vector<1x32xf32>
    %190 = vector.broadcast %189 : vector<1x32xf32> to vector<16x32xf32>
    %191 = arith.addf %187, %190 : vector<16x32xf32>
    %192 = arith.addf %191, %3 : vector<16x32xf32>
    %c0_75 = arith.constant 0 : index
    %c0_76 = arith.constant 0 : index
    %c0_77 = arith.constant 0 : index
    %193 = vector.load %arg9[%c0_75, %c0_76, %c0_77] : memref<1x1x32xf32, #tpu.memory_space<vmem>>, vector<1x1x32xf32>
    %194 = vector.shape_cast %193 : vector<1x1x32xf32> to vector<1x32xf32>
    %c0_78 = arith.constant 0 : index
    %c0_79 = arith.constant 0 : index
    %c0_80 = arith.constant 0 : index
    %195 = vector.load %arg10[%c0_78, %c0_79, %c0_80] : memref<1x1x32xf32, #tpu.memory_space<vmem>>, vector<1x1x32xf32>
    %196 = vector.shape_cast %195 : vector<1x1x32xf32> to vector<1x32xf32>
    %cst_81 = arith.constant dense<0.000000e+00> : vector<16xf32>
    %197 = vector.multi_reduction <add>, %192, %cst_81 [1] : vector<16x32xf32> to vector<16xf32>
    %198 = vector.shape_cast %197 : vector<16xf32> to vector<16x1xf32>
    %cst_82 = arith.constant 3.200000e+01 : f32
    %199 = vector.broadcast %cst_82 : f32 to vector<16x1xf32>
    %200 = arith.divf %198, %199 : vector<16x1xf32>
    %201 = vector.broadcast %200 : vector<16x1xf32> to vector<16x32xf32>
    %202 = arith.subf %192, %201 : vector<16x32xf32>
    %203 = arith.mulf %202, %202 : vector<16x32xf32>
    %cst_83 = arith.constant dense<0.000000e+00> : vector<16xf32>
    %204 = vector.multi_reduction <add>, %203, %cst_83 [1] : vector<16x32xf32> to vector<16xf32>
    %205 = vector.shape_cast %204 : vector<16xf32> to vector<16x1xf32>
    %cst_84 = arith.constant 3.200000e+01 : f32
    %206 = vector.broadcast %cst_84 : f32 to vector<16x1xf32>
    %207 = arith.divf %205, %206 : vector<16x1xf32>
    %208 = vector.broadcast %200 : vector<16x1xf32> to vector<16x32xf32>
    %209 = arith.subf %192, %208 : vector<16x32xf32>
    %cst_85 = arith.constant 9.99999974E-6 : f32
    %210 = vector.broadcast %cst_85 : f32 to vector<16x1xf32>
    %211 = arith.addf %207, %210 : vector<16x1xf32>
    %212 = math.rsqrt %211 : vector<16x1xf32>
    %213 = vector.broadcast %212 : vector<16x1xf32> to vector<16x32xf32>
    %214 = arith.mulf %209, %213 : vector<16x32xf32>
    %215 = vector.broadcast %194 : vector<1x32xf32> to vector<16x32xf32>
    %216 = arith.mulf %214, %215 : vector<16x32xf32>
    %217 = vector.broadcast %196 : vector<1x32xf32> to vector<16x32xf32>
    %218 = arith.addf %216, %217 : vector<16x32xf32>
    %c0_86 = arith.constant 0 : index
    %c0_87 = arith.constant 0 : index
    %c0_88 = arith.constant 0 : index
    %219 = vector.load %arg11[%c0_86, %c0_87, %c0_88] : memref<1x32x32xf32, #tpu.memory_space<vmem>>, vector<1x32x32xf32>
    %220 = vector.shape_cast %219 : vector<1x32x32xf32> to vector<32x32xf32>
    %cst_89 = arith.constant dense<0.000000e+00> : vector<16x32xf32>
    %221 = tpu.matmul %218, %220, %cst_89 {dimension_numbers = #tpu.dot_dimension_numbers<[1], [0], [0], [1], [0, 0, 1, 1], [], []>} : vector<16x32xf32>, vector<32x32xf32>, vector<16x32xf32> -> vector<16x32xf32>
    %c0_90 = arith.constant 0 : index
    %c0_91 = arith.constant 0 : index
    %c0_92 = arith.constant 0 : index
    %222 = vector.load %arg12[%c0_90, %c0_91, %c0_92] : memref<1x1x32xf32, #tpu.memory_space<vmem>>, vector<1x1x32xf32>
    %223 = vector.shape_cast %222 : vector<1x1x32xf32> to vector<1x32xf32>
    %224 = vector.broadcast %223 : vector<1x32xf32> to vector<16x32xf32>
    %225 = arith.addf %221, %224 : vector<16x32xf32>
    %c0_93 = arith.constant 0 : index
    %c0_94 = arith.constant 0 : index
    %226 = vector.load %arg2[%c0_93, %c0_94] : memref<16x32xf32, #tpu.memory_space<vmem>>, vector<16x32xf32>
    %c0_95 = arith.constant 0 : index
    %c0_96 = arith.constant 0 : index
    %c0_97 = arith.constant 0 : index
    %227 = vector.load %arg13[%c0_95, %c0_96, %c0_97] : memref<1x32x64xf32, #tpu.memory_space<vmem>>, vector<1x32x64xf32>
    %228 = vector.shape_cast %227 : vector<1x32x64xf32> to vector<32x64xf32>
    %cst_98 = arith.constant dense<0.000000e+00> : vector<16x64xf32>
    %229 = tpu.matmul %226, %228, %cst_98 {dimension_numbers = #tpu.dot_dimension_numbers<[1], [0], [0], [1], [0, 0, 1, 1], [], []>} : vector<16x32xf32>, vector<32x64xf32>, vector<16x64xf32> -> vector<16x64xf32>
    %c0_99 = arith.constant 0 : index
    %c0_100 = arith.constant 0 : index
    %c0_101 = arith.constant 0 : index
    %230 = vector.load %arg14[%c0_99, %c0_100, %c0_101] : memref<1x1x64xf32, #tpu.memory_space<vmem>>, vector<1x1x64xf32>
    %231 = vector.shape_cast %230 : vector<1x1x64xf32> to vector<1x64xf32>
    %232 = vector.broadcast %231 : vector<1x64xf32> to vector<16x64xf32>
    %233 = arith.addf %229, %232 : vector<16x64xf32>
    %234 = vector.extract_strided_slice %233 {offsets = [0, 0], sizes = [16, 32], strides = [1, 1]} : vector<16x64xf32> to vector<16x32xf32>
    %235 = vector.extract_strided_slice %233 {offsets = [0, 32], sizes = [16, 32], strides = [1, 1]} : vector<16x64xf32> to vector<16x32xf32>
    %c0_102 = arith.constant 0 : index
    %c0_103 = arith.constant 0 : index
    %c0_104 = arith.constant 0 : index
    %236 = vector.load %arg4[%c0_102, %c0_103, %c0_104] : memref<2x8x8xf32, #tpu.memory_space<vmem>>, vector<1x8x8xf32>
    %237 = vector.shape_cast %236 : vector<1x8x8xf32> to vector<8x8xf32>
    %238 = vector.extract_strided_slice %225 {offsets = [0, 0], sizes = [8, 32], strides = [1, 1]} : vector<16x32xf32> to vector<8x32xf32>
    %239 = vector.extract_strided_slice %234 {offsets = [0, 0], sizes = [8, 32], strides = [1, 1]} : vector<16x32xf32> to vector<8x32xf32>
    %240 = vector.extract_strided_slice %235 {offsets = [0, 0], sizes = [8, 32], strides = [1, 1]} : vector<16x32xf32> to vector<8x32xf32>
    %241 = vector.extract_strided_slice %238 {offsets = [0, 0], sizes = [8, 8], strides = [1, 1]} : vector<8x32xf32> to vector<8x8xf32>
    %242 = vector.extract_strided_slice %239 {offsets = [0, 0], sizes = [8, 8], strides = [1, 1]} : vector<8x32xf32> to vector<8x8xf32>
    %243 = vector.extract_strided_slice %240 {offsets = [0, 0], sizes = [8, 8], strides = [1, 1]} : vector<8x32xf32> to vector<8x8xf32>
    %244 = tpu.transpose %242, [1, 0] : vector<8x8xf32> -> vector<8x8xf32>
    %cst_105 = arith.constant dense<0.000000e+00> : vector<8x8xf32>
    %245 = tpu.matmul %241, %244, %cst_105 {dimension_numbers = #tpu.dot_dimension_numbers<[1], [0], [0], [1], [0, 0, 1, 1], [], []>} : vector<8x8xf32>, vector<8x8xf32>, vector<8x8xf32> -> vector<8x8xf32>
    %cst_106 = arith.constant 0.353553385 : f32
    %246 = vector.broadcast %cst_106 : f32 to vector<8x8xf32>
    %247 = arith.mulf %245, %246 : vector<8x8xf32>
    %248 = arith.addf %247, %237 : vector<8x8xf32>
    %cst_107 = arith.constant dense<0xFF800000> : vector<8xf32>
    %249 = vector.multi_reduction <maximumf>, %248, %cst_107 [1] : vector<8x8xf32> to vector<8xf32>
    %250 = vector.shape_cast %249 : vector<8xf32> to vector<8x1xf32>
    %251 = vector.broadcast %250 : vector<8x1xf32> to vector<8x8xf32>
    %252 = arith.subf %248, %251 : vector<8x8xf32>
    %253 = math.exp %252 : vector<8x8xf32>
    %cst_108 = arith.constant dense<0.000000e+00> : vector<8xf32>
    %254 = vector.multi_reduction <add>, %253, %cst_108 [1] : vector<8x8xf32> to vector<8xf32>
    %255 = vector.shape_cast %254 : vector<8xf32> to vector<8x1xf32>
    %256 = tpu.reciprocal %255 {approx = true} : vector<8x1xf32> -> vector<8x1xf32>
    %257 = vector.broadcast %256 : vector<8x1xf32> to vector<8x8xf32>
    %258 = arith.mulf %253, %257 : vector<8x8xf32>
    %cst_109 = arith.constant dense<0.000000e+00> : vector<8x8xf32>
    %259 = tpu.matmul %258, %243, %cst_109 {dimension_numbers = #tpu.dot_dimension_numbers<[1], [0], [0], [1], [0, 0, 1, 1], [], []>} : vector<8x8xf32>, vector<8x8xf32>, vector<8x8xf32> -> vector<8x8xf32>
    %c0_110 = arith.constant 0 : index
    %c0_111 = arith.constant 0 : index
    %260 = vector.load %arg27[%c0_110, %c0_111] : memref<16x32xf32, #tpu.memory_space<vmem>>, vector<8x8xf32>
    tpu.vector_store %arg27[%c0_110, %c0_111], %259 {strides = array<i32>} : memref<16x32xf32, #tpu.memory_space<vmem>>, vector<8x8xf32>,
    %261 = vector.extract_strided_slice %238 {offsets = [0, 8], sizes = [8, 8], strides = [1, 1]} : vector<8x32xf32> to vector<8x8xf32>
    %262 = vector.extract_strided_slice %239 {offsets = [0, 8], sizes = [8, 8], strides = [1, 1]} : vector<8x32xf32> to vector<8x8xf32>
    %263 = vector.extract_strided_slice %240 {offsets = [0, 8], sizes = [8, 8], strides = [1, 1]} : vector<8x32xf32> to vector<8x8xf32>
    %264 = tpu.transpose %262, [1, 0] : vector<8x8xf32> -> vector<8x8xf32>
    %cst_112 = arith.constant dense<0.000000e+00> : vector<8x8xf32>
    %265 = tpu.matmul %261, %264, %cst_112 {dimension_numbers = #tpu.dot_dimension_numbers<[1], [0], [0], [1], [0, 0, 1, 1], [], []>} : vector<8x8xf32>, vector<8x8xf32>, vector<8x8xf32> -> vector<8x8xf32>
    %cst_113 = arith.constant 0.353553385 : f32
    %266 = vector.broadcast %cst_113 : f32 to vector<8x8xf32>
    %267 = arith.mulf %265, %266 : vector<8x8xf32>
    %268 = arith.addf %267, %237 : vector<8x8xf32>
    %cst_114 = arith.constant dense<0xFF800000> : vector<8xf32>
    %269 = vector.multi_reduction <maximumf>, %268, %cst_114 [1] : vector<8x8xf32> to vector<8xf32>
    %270 = vector.shape_cast %269 : vector<8xf32> to vector<8x1xf32>
    %271 = vector.broadcast %270 : vector<8x1xf32> to vector<8x8xf32>
    %272 = arith.subf %268, %271 : vector<8x8xf32>
    %273 = math.exp %272 : vector<8x8xf32>
    %cst_115 = arith.constant dense<0.000000e+00> : vector<8xf32>
    %274 = vector.multi_reduction <add>, %273, %cst_115 [1] : vector<8x8xf32> to vector<8xf32>
    %275 = vector.shape_cast %274 : vector<8xf32> to vector<8x1xf32>
    %276 = tpu.reciprocal %275 {approx = true} : vector<8x1xf32> -> vector<8x1xf32>
    %277 = vector.broadcast %276 : vector<8x1xf32> to vector<8x8xf32>
    %278 = arith.mulf %273, %277 : vector<8x8xf32>
    %cst_116 = arith.constant dense<0.000000e+00> : vector<8x8xf32>
    %279 = tpu.matmul %278, %263, %cst_116 {dimension_numbers = #tpu.dot_dimension_numbers<[1], [0], [0], [1], [0, 0, 1, 1], [], []>} : vector<8x8xf32>, vector<8x8xf32>, vector<8x8xf32> -> vector<8x8xf32>
    %c0_117 = arith.constant 0 : index
    %c8_118 = arith.constant 8 : index
    %280 = vector.load %arg27[%c0_117, %c8_118] : memref<16x32xf32, #tpu.memory_space<vmem>>, vector<8x8xf32>
    tpu.vector_store %arg27[%c0_117, %c8_118], %279 {strides = array<i32>} : memref<16x32xf32, #tpu.memory_space<vmem>>, vector<8x8xf32>,
    %281 = vector.extract_strided_slice %238 {offsets = [0, 16], sizes = [8, 8], strides = [1, 1]} : vector<8x32xf32> to vector<8x8xf32>
    %282 = vector.extract_strided_slice %239 {offsets = [0, 16], sizes = [8, 8], strides = [1, 1]} : vector<8x32xf32> to vector<8x8xf32>
    %283 = vector.extract_strided_slice %240 {offsets = [0, 16], sizes = [8, 8], strides = [1, 1]} : vector<8x32xf32> to vector<8x8xf32>
    %284 = tpu.transpose %282, [1, 0] : vector<8x8xf32> -> vector<8x8xf32>
    %cst_119 = arith.constant dense<0.000000e+00> : vector<8x8xf32>
    %285 = tpu.matmul %281, %284, %cst_119 {dimension_numbers = #tpu.dot_dimension_numbers<[1], [0], [0], [1], [0, 0, 1, 1], [], []>} : vector<8x8xf32>, vector<8x8xf32>, vector<8x8xf32> -> vector<8x8xf32>
    %cst_120 = arith.constant 0.353553385 : f32
    %286 = vector.broadcast %cst_120 : f32 to vector<8x8xf32>
    %287 = arith.mulf %285, %286 : vector<8x8xf32>
    %288 = arith.addf %287, %237 : vector<8x8xf32>
    %cst_121 = arith.constant dense<0xFF800000> : vector<8xf32>
    %289 = vector.multi_reduction <maximumf>, %288, %cst_121 [1] : vector<8x8xf32> to vector<8xf32>
    %290 = vector.shape_cast %289 : vector<8xf32> to vector<8x1xf32>
    %291 = vector.broadcast %290 : vector<8x1xf32> to vector<8x8xf32>
    %292 = arith.subf %288, %291 : vector<8x8xf32>
    %293 = math.exp %292 : vector<8x8xf32>
    %cst_122 = arith.constant dense<0.000000e+00> : vector<8xf32>
    %294 = vector.multi_reduction <add>, %293, %cst_122 [1] : vector<8x8xf32> to vector<8xf32>
    %295 = vector.shape_cast %294 : vector<8xf32> to vector<8x1xf32>
    %296 = tpu.reciprocal %295 {approx = true} : vector<8x1xf32> -> vector<8x1xf32>
    %297 = vector.broadcast %296 : vector<8x1xf32> to vector<8x8xf32>
    %298 = arith.mulf %293, %297 : vector<8x8xf32>
    %cst_123 = arith.constant dense<0.000000e+00> : vector<8x8xf32>
    %299 = tpu.matmul %298, %283, %cst_123 {dimension_numbers = #tpu.dot_dimension_numbers<[1], [0], [0], [1], [0, 0, 1, 1], [], []>} : vector<8x8xf32>, vector<8x8xf32>, vector<8x8xf32> -> vector<8x8xf32>
    %c0_124 = arith.constant 0 : index
    %c16_125 = arith.constant 16 : index
    %300 = vector.load %arg27[%c0_124, %c16_125] : memref<16x32xf32, #tpu.memory_space<vmem>>, vector<8x8xf32>
    tpu.vector_store %arg27[%c0_124, %c16_125], %299 {strides = array<i32>} : memref<16x32xf32, #tpu.memory_space<vmem>>, vector<8x8xf32>,
    %301 = vector.extract_strided_slice %238 {offsets = [0, 24], sizes = [8, 8], strides = [1, 1]} : vector<8x32xf32> to vector<8x8xf32>
    %302 = vector.extract_strided_slice %239 {offsets = [0, 24], sizes = [8, 8], strides = [1, 1]} : vector<8x32xf32> to vector<8x8xf32>
    %303 = vector.extract_strided_slice %240 {offsets = [0, 24], sizes = [8, 8], strides = [1, 1]} : vector<8x32xf32> to vector<8x8xf32>
    %304 = tpu.transpose %302, [1, 0] : vector<8x8xf32> -> vector<8x8xf32>
    %cst_126 = arith.constant dense<0.000000e+00> : vector<8x8xf32>
    %305 = tpu.matmul %301, %304, %cst_126 {dimension_numbers = #tpu.dot_dimension_numbers<[1], [0], [0], [1], [0, 0, 1, 1], [], []>} : vector<8x8xf32>, vector<8x8xf32>, vector<8x8xf32> -> vector<8x8xf32>
    %cst_127 = arith.constant 0.353553385 : f32
    %306 = vector.broadcast %cst_127 : f32 to vector<8x8xf32>
    %307 = arith.mulf %305, %306 : vector<8x8xf32>
    %308 = arith.addf %307, %237 : vector<8x8xf32>
    %cst_128 = arith.constant dense<0xFF800000> : vector<8xf32>
    %309 = vector.multi_reduction <maximumf>, %308, %cst_128 [1] : vector<8x8xf32> to vector<8xf32>
    %310 = vector.shape_cast %309 : vector<8xf32> to vector<8x1xf32>
    %311 = vector.broadcast %310 : vector<8x1xf32> to vector<8x8xf32>
    %312 = arith.subf %308, %311 : vector<8x8xf32>
    %313 = math.exp %312 : vector<8x8xf32>
    %cst_129 = arith.constant dense<0.000000e+00> : vector<8xf32>
    %314 = vector.multi_reduction <add>, %313, %cst_129 [1] : vector<8x8xf32> to vector<8xf32>
    %315 = vector.shape_cast %314 : vector<8xf32> to vector<8x1xf32>
    %316 = tpu.reciprocal %315 {approx = true} : vector<8x1xf32> -> vector<8x1xf32>
    %317 = vector.broadcast %316 : vector<8x1xf32> to vector<8x8xf32>
    %318 = arith.mulf %313, %317 : vector<8x8xf32>
    %cst_130 = arith.constant dense<0.000000e+00> : vector<8x8xf32>
    %319 = tpu.matmul %318, %303, %cst_130 {dimension_numbers = #tpu.dot_dimension_numbers<[1], [0], [0], [1], [0, 0, 1, 1], [], []>} : vector<8x8xf32>, vector<8x8xf32>, vector<8x8xf32> -> vector<8x8xf32>
    %c0_131 = arith.constant 0 : index
    %c24_132 = arith.constant 24 : index
    %320 = vector.load %arg27[%c0_131, %c24_132] : memref<16x32xf32, #tpu.memory_space<vmem>>, vector<8x8xf32>
    tpu.vector_store %arg27[%c0_131, %c24_132], %319 {strides = array<i32>} : memref<16x32xf32, #tpu.memory_space<vmem>>, vector<8x8xf32>,
    %c1_133 = arith.constant 1 : index
    %c0_134 = arith.constant 0 : index
    %c0_135 = arith.constant 0 : index
    %321 = vector.load %arg4[%c1_133, %c0_134, %c0_135] : memref<2x8x8xf32, #tpu.memory_space<vmem>>, vector<1x8x8xf32>
    %322 = vector.shape_cast %321 : vector<1x8x8xf32> to vector<8x8xf32>
    %323 = vector.extract_strided_slice %225 {offsets = [8, 0], sizes = [8, 32], strides = [1, 1]} : vector<16x32xf32> to vector<8x32xf32>
    %324 = vector.extract_strided_slice %234 {offsets = [8, 0], sizes = [8, 32], strides = [1, 1]} : vector<16x32xf32> to vector<8x32xf32>
    %325 = vector.extract_strided_slice %235 {offsets = [8, 0], sizes = [8, 32], strides = [1, 1]} : vector<16x32xf32> to vector<8x32xf32>
    %326 = vector.extract_strided_slice %323 {offsets = [0, 0], sizes = [8, 8], strides = [1, 1]} : vector<8x32xf32> to vector<8x8xf32>
    %327 = vector.extract_strided_slice %324 {offsets = [0, 0], sizes = [8, 8], strides = [1, 1]} : vector<8x32xf32> to vector<8x8xf32>
    %328 = vector.extract_strided_slice %325 {offsets = [0, 0], sizes = [8, 8], strides = [1, 1]} : vector<8x32xf32> to vector<8x8xf32>
    %329 = tpu.transpose %327, [1, 0] : vector<8x8xf32> -> vector<8x8xf32>
    %cst_136 = arith.constant dense<0.000000e+00> : vector<8x8xf32>
    %330 = tpu.matmul %326, %329, %cst_136 {dimension_numbers = #tpu.dot_dimension_numbers<[1], [0], [0], [1], [0, 0, 1, 1], [], []>} : vector<8x8xf32>, vector<8x8xf32>, vector<8x8xf32> -> vector<8x8xf32>
    %cst_137 = arith.constant 0.353553385 : f32
    %331 = vector.broadcast %cst_137 : f32 to vector<8x8xf32>
    %332 = arith.mulf %330, %331 : vector<8x8xf32>
    %333 = arith.addf %332, %322 : vector<8x8xf32>
    %cst_138 = arith.constant dense<0xFF800000> : vector<8xf32>
    %334 = vector.multi_reduction <maximumf>, %333, %cst_138 [1] : vector<8x8xf32> to vector<8xf32>
    %335 = vector.shape_cast %334 : vector<8xf32> to vector<8x1xf32>
    %336 = vector.broadcast %335 : vector<8x1xf32> to vector<8x8xf32>
    %337 = arith.subf %333, %336 : vector<8x8xf32>
    %338 = math.exp %337 : vector<8x8xf32>
    %cst_139 = arith.constant dense<0.000000e+00> : vector<8xf32>
    %339 = vector.multi_reduction <add>, %338, %cst_139 [1] : vector<8x8xf32> to vector<8xf32>
    %340 = vector.shape_cast %339 : vector<8xf32> to vector<8x1xf32>
    %341 = tpu.reciprocal %340 {approx = true} : vector<8x1xf32> -> vector<8x1xf32>
    %342 = vector.broadcast %341 : vector<8x1xf32> to vector<8x8xf32>
    %343 = arith.mulf %338, %342 : vector<8x8xf32>
    %cst_140 = arith.constant dense<0.000000e+00> : vector<8x8xf32>
    %344 = tpu.matmul %343, %328, %cst_140 {dimension_numbers = #tpu.dot_dimension_numbers<[1], [0], [0], [1], [0, 0, 1, 1], [], []>} : vector<8x8xf32>, vector<8x8xf32>, vector<8x8xf32> -> vector<8x8xf32>
    %c8_141 = arith.constant 8 : index
    %c0_142 = arith.constant 0 : index
    %345 = vector.load %arg27[%c8_141, %c0_142] : memref<16x32xf32, #tpu.memory_space<vmem>>, vector<8x8xf32>
    tpu.vector_store %arg27[%c8_141, %c0_142], %344 {strides = array<i32>} : memref<16x32xf32, #tpu.memory_space<vmem>>, vector<8x8xf32>,
    %346 = vector.extract_strided_slice %323 {offsets = [0, 8], sizes = [8, 8], strides = [1, 1]} : vector<8x32xf32> to vector<8x8xf32>
    %347 = vector.extract_strided_slice %324 {offsets = [0, 8], sizes = [8, 8], strides = [1, 1]} : vector<8x32xf32> to vector<8x8xf32>
    %348 = vector.extract_strided_slice %325 {offsets = [0, 8], sizes = [8, 8], strides = [1, 1]} : vector<8x32xf32> to vector<8x8xf32>
    %349 = tpu.transpose %347, [1, 0] : vector<8x8xf32> -> vector<8x8xf32>
    %cst_143 = arith.constant dense<0.000000e+00> : vector<8x8xf32>
    %350 = tpu.matmul %346, %349, %cst_143 {dimension_numbers = #tpu.dot_dimension_numbers<[1], [0], [0], [1], [0, 0, 1, 1], [], []>} : vector<8x8xf32>, vector<8x8xf32>, vector<8x8xf32> -> vector<8x8xf32>
    %cst_144 = arith.constant 0.353553385 : f32
    %351 = vector.broadcast %cst_144 : f32 to vector<8x8xf32>
    %352 = arith.mulf %350, %351 : vector<8x8xf32>
    %353 = arith.addf %352, %322 : vector<8x8xf32>
    %cst_145 = arith.constant dense<0xFF800000> : vector<8xf32>
    %354 = vector.multi_reduction <maximumf>, %353, %cst_145 [1] : vector<8x8xf32> to vector<8xf32>
    %355 = vector.shape_cast %354 : vector<8xf32> to vector<8x1xf32>
    %356 = vector.broadcast %355 : vector<8x1xf32> to vector<8x8xf32>
    %357 = arith.subf %353, %356 : vector<8x8xf32>
    %358 = math.exp %357 : vector<8x8xf32>
    %cst_146 = arith.constant dense<0.000000e+00> : vector<8xf32>
    %359 = vector.multi_reduction <add>, %358, %cst_146 [1] : vector<8x8xf32> to vector<8xf32>
    %360 = vector.shape_cast %359 : vector<8xf32> to vector<8x1xf32>
    %361 = tpu.reciprocal %360 {approx = true} : vector<8x1xf32> -> vector<8x1xf32>
    %362 = vector.broadcast %361 : vector<8x1xf32> to vector<8x8xf32>
    %363 = arith.mulf %358, %362 : vector<8x8xf32>
    %cst_147 = arith.constant dense<0.000000e+00> : vector<8x8xf32>
    %364 = tpu.matmul %363, %348, %cst_147 {dimension_numbers = #tpu.dot_dimension_numbers<[1], [0], [0], [1], [0, 0, 1, 1], [], []>} : vector<8x8xf32>, vector<8x8xf32>, vector<8x8xf32> -> vector<8x8xf32>
    %c8_148 = arith.constant 8 : index
    %c8_149 = arith.constant 8 : index
    %365 = vector.load %arg27[%c8_148, %c8_149] : memref<16x32xf32, #tpu.memory_space<vmem>>, vector<8x8xf32>
    tpu.vector_store %arg27[%c8_148, %c8_149], %364 {strides = array<i32>} : memref<16x32xf32, #tpu.memory_space<vmem>>, vector<8x8xf32>,
    %366 = vector.extract_strided_slice %323 {offsets = [0, 16], sizes = [8, 8], strides = [1, 1]} : vector<8x32xf32> to vector<8x8xf32>
    %367 = vector.extract_strided_slice %324 {offsets = [0, 16], sizes = [8, 8], strides = [1, 1]} : vector<8x32xf32> to vector<8x8xf32>
    %368 = vector.extract_strided_slice %325 {offsets = [0, 16], sizes = [8, 8], strides = [1, 1]} : vector<8x32xf32> to vector<8x8xf32>
    %369 = tpu.transpose %367, [1, 0] : vector<8x8xf32> -> vector<8x8xf32>
    %cst_150 = arith.constant dense<0.000000e+00> : vector<8x8xf32>
    %370 = tpu.matmul %366, %369, %cst_150 {dimension_numbers = #tpu.dot_dimension_numbers<[1], [0], [0], [1], [0, 0, 1, 1], [], []>} : vector<8x8xf32>, vector<8x8xf32>, vector<8x8xf32> -> vector<8x8xf32>
    %cst_151 = arith.constant 0.353553385 : f32
    %371 = vector.broadcast %cst_151 : f32 to vector<8x8xf32>
    %372 = arith.mulf %370, %371 : vector<8x8xf32>
    %373 = arith.addf %372, %322 : vector<8x8xf32>
    %cst_152 = arith.constant dense<0xFF800000> : vector<8xf32>
    %374 = vector.multi_reduction <maximumf>, %373, %cst_152 [1] : vector<8x8xf32> to vector<8xf32>
    %375 = vector.shape_cast %374 : vector<8xf32> to vector<8x1xf32>
    %376 = vector.broadcast %375 : vector<8x1xf32> to vector<8x8xf32>
    %377 = arith.subf %373, %376 : vector<8x8xf32>
    %378 = math.exp %377 : vector<8x8xf32>
    %cst_153 = arith.constant dense<0.000000e+00> : vector<8xf32>
    %379 = vector.multi_reduction <add>, %378, %cst_153 [1] : vector<8x8xf32> to vector<8xf32>
    %380 = vector.shape_cast %379 : vector<8xf32> to vector<8x1xf32>
    %381 = tpu.reciprocal %380 {approx = true} : vector<8x1xf32> -> vector<8x1xf32>
    %382 = vector.broadcast %381 : vector<8x1xf32> to vector<8x8xf32>
    %383 = arith.mulf %378, %382 : vector<8x8xf32>
    %cst_154 = arith.constant dense<0.000000e+00> : vector<8x8xf32>
    %384 = tpu.matmul %383, %368, %cst_154 {dimension_numbers = #tpu.dot_dimension_numbers<[1], [0], [0], [1], [0, 0, 1, 1], [], []>} : vector<8x8xf32>, vector<8x8xf32>, vector<8x8xf32> -> vector<8x8xf32>
    %c8_155 = arith.constant 8 : index
    %c16_156 = arith.constant 16 : index
    %385 = vector.load %arg27[%c8_155, %c16_156] : memref<16x32xf32, #tpu.memory_space<vmem>>, vector<8x8xf32>
    tpu.vector_store %arg27[%c8_155, %c16_156], %384 {strides = array<i32>} : memref<16x32xf32, #tpu.memory_space<vmem>>, vector<8x8xf32>,
    %386 = vector.extract_strided_slice %323 {offsets = [0, 24], sizes = [8, 8], strides = [1, 1]} : vector<8x32xf32> to vector<8x8xf32>
    %387 = vector.extract_strided_slice %324 {offsets = [0, 24], sizes = [8, 8], strides = [1, 1]} : vector<8x32xf32> to vector<8x8xf32>
    %388 = vector.extract_strided_slice %325 {offsets = [0, 24], sizes = [8, 8], strides = [1, 1]} : vector<8x32xf32> to vector<8x8xf32>
    %389 = tpu.transpose %387, [1, 0] : vector<8x8xf32> -> vector<8x8xf32>
    %cst_157 = arith.constant dense<0.000000e+00> : vector<8x8xf32>
    %390 = tpu.matmul %386, %389, %cst_157 {dimension_numbers = #tpu.dot_dimension_numbers<[1], [0], [0], [1], [0, 0, 1, 1], [], []>} : vector<8x8xf32>, vector<8x8xf32>, vector<8x8xf32> -> vector<8x8xf32>
    %cst_158 = arith.constant 0.353553385 : f32
    %391 = vector.broadcast %cst_158 : f32 to vector<8x8xf32>
    %392 = arith.mulf %390, %391 : vector<8x8xf32>
    %393 = arith.addf %392, %322 : vector<8x8xf32>
    %cst_159 = arith.constant dense<0xFF800000> : vector<8xf32>
    %394 = vector.multi_reduction <maximumf>, %393, %cst_159 [1] : vector<8x8xf32> to vector<8xf32>
    %395 = vector.shape_cast %394 : vector<8xf32> to vector<8x1xf32>
    %396 = vector.broadcast %395 : vector<8x1xf32> to vector<8x8xf32>
    %397 = arith.subf %393, %396 : vector<8x8xf32>
    %398 = math.exp %397 : vector<8x8xf32>
    %cst_160 = arith.constant dense<0.000000e+00> : vector<8xf32>
    %399 = vector.multi_reduction <add>, %398, %cst_160 [1] : vector<8x8xf32> to vector<8xf32>
    %400 = vector.shape_cast %399 : vector<8xf32> to vector<8x1xf32>
    %401 = tpu.reciprocal %400 {approx = true} : vector<8x1xf32> -> vector<8x1xf32>
    %402 = vector.broadcast %401 : vector<8x1xf32> to vector<8x8xf32>
    %403 = arith.mulf %398, %402 : vector<8x8xf32>
    %cst_161 = arith.constant dense<0.000000e+00> : vector<8x8xf32>
    %404 = tpu.matmul %403, %388, %cst_161 {dimension_numbers = #tpu.dot_dimension_numbers<[1], [0], [0], [1], [0, 0, 1, 1], [], []>} : vector<8x8xf32>, vector<8x8xf32>, vector<8x8xf32> -> vector<8x8xf32>
    %c8_162 = arith.constant 8 : index
    %c24_163 = arith.constant 24 : index
    %405 = vector.load %arg27[%c8_162, %c24_163] : memref<16x32xf32, #tpu.memory_space<vmem>>, vector<8x8xf32>
    tpu.vector_store %arg27[%c8_162, %c24_163], %404 {strides = array<i32>} : memref<16x32xf32, #tpu.memory_space<vmem>>, vector<8x8xf32>,
    %c0_164 = arith.constant 0 : index
    %c0_165 = arith.constant 0 : index
    %406 = vector.load %arg27[%c0_164, %c0_165] : memref<16x32xf32, #tpu.memory_space<vmem>>, vector<16x32xf32>
    %c0_166 = arith.constant 0 : index
    %c0_167 = arith.constant 0 : index
    %c0_168 = arith.constant 0 : index
    %407 = vector.load %arg15[%c0_166, %c0_167, %c0_168] : memref<1x32x32xf32, #tpu.memory_space<vmem>>, vector<1x32x32xf32>
    %408 = vector.shape_cast %407 : vector<1x32x32xf32> to vector<32x32xf32>
    %cst_169 = arith.constant dense<0.000000e+00> : vector<16x32xf32>
    %409 = tpu.matmul %406, %408, %cst_169 {dimension_numbers = #tpu.dot_dimension_numbers<[1], [0], [0], [1], [0, 0, 1, 1], [], []>} : vector<16x32xf32>, vector<32x32xf32>, vector<16x32xf32> -> vector<16x32xf32>
    %c0_170 = arith.constant 0 : index
    %c0_171 = arith.constant 0 : index
    %c0_172 = arith.constant 0 : index
    %410 = vector.load %arg16[%c0_170, %c0_171, %c0_172] : memref<1x1x32xf32, #tpu.memory_space<vmem>>, vector<1x1x32xf32>
    %411 = vector.shape_cast %410 : vector<1x1x32xf32> to vector<1x32xf32>
    %412 = vector.broadcast %411 : vector<1x32xf32> to vector<16x32xf32>
    %413 = arith.addf %409, %412 : vector<16x32xf32>
    %414 = arith.addf %413, %218 : vector<16x32xf32>
    %c0_173 = arith.constant 0 : index
    %c0_174 = arith.constant 0 : index
    %c0_175 = arith.constant 0 : index
    %415 = vector.load %arg17[%c0_173, %c0_174, %c0_175] : memref<1x1x32xf32, #tpu.memory_space<vmem>>, vector<1x1x32xf32>
    %416 = vector.shape_cast %415 : vector<1x1x32xf32> to vector<1x32xf32>
    %c0_176 = arith.constant 0 : index
    %c0_177 = arith.constant 0 : index
    %c0_178 = arith.constant 0 : index
    %417 = vector.load %arg18[%c0_176, %c0_177, %c0_178] : memref<1x1x32xf32, #tpu.memory_space<vmem>>, vector<1x1x32xf32>
    %418 = vector.shape_cast %417 : vector<1x1x32xf32> to vector<1x32xf32>
    %cst_179 = arith.constant dense<0.000000e+00> : vector<16xf32>
    %419 = vector.multi_reduction <add>, %414, %cst_179 [1] : vector<16x32xf32> to vector<16xf32>
    %420 = vector.shape_cast %419 : vector<16xf32> to vector<16x1xf32>
    %cst_180 = arith.constant 3.200000e+01 : f32
    %421 = vector.broadcast %cst_180 : f32 to vector<16x1xf32>
    %422 = arith.divf %420, %421 : vector<16x1xf32>
    %423 = vector.broadcast %422 : vector<16x1xf32> to vector<16x32xf32>
    %424 = arith.subf %414, %423 : vector<16x32xf32>
    %425 = arith.mulf %424, %424 : vector<16x32xf32>
    %cst_181 = arith.constant dense<0.000000e+00> : vector<16xf32>
    %426 = vector.multi_reduction <add>, %425, %cst_181 [1] : vector<16x32xf32> to vector<16xf32>
    %427 = vector.shape_cast %426 : vector<16xf32> to vector<16x1xf32>
    %cst_182 = arith.constant 3.200000e+01 : f32
    %428 = vector.broadcast %cst_182 : f32 to vector<16x1xf32>
    %429 = arith.divf %427, %428 : vector<16x1xf32>
    %430 = vector.broadcast %422 : vector<16x1xf32> to vector<16x32xf32>
    %431 = arith.subf %414, %430 : vector<16x32xf32>
    %cst_183 = arith.constant 9.99999974E-6 : f32
    %432 = vector.broadcast %cst_183 : f32 to vector<16x1xf32>
    %433 = arith.addf %429, %432 : vector<16x1xf32>
    %434 = math.rsqrt %433 : vector<16x1xf32>
    %435 = vector.broadcast %434 : vector<16x1xf32> to vector<16x32xf32>
    %436 = arith.mulf %431, %435 : vector<16x32xf32>
    %437 = vector.broadcast %416 : vector<1x32xf32> to vector<16x32xf32>
    %438 = arith.mulf %436, %437 : vector<16x32xf32>
    %439 = vector.broadcast %418 : vector<1x32xf32> to vector<16x32xf32>
    %440 = arith.addf %438, %439 : vector<16x32xf32>
    %c0_184 = arith.constant 0 : index
    %c0_185 = arith.constant 0 : index
    %c0_186 = arith.constant 0 : index
    %441 = vector.load %arg19[%c0_184, %c0_185, %c0_186] : memref<1x32x64xf32, #tpu.memory_space<vmem>>, vector<1x32x64xf32>
    %442 = vector.shape_cast %441 : vector<1x32x64xf32> to vector<32x64xf32>
    %cst_187 = arith.constant dense<0.000000e+00> : vector<16x64xf32>
    %443 = tpu.matmul %440, %442, %cst_187 {dimension_numbers = #tpu.dot_dimension_numbers<[1], [0], [0], [1], [0, 0, 1, 1], [], []>} : vector<16x32xf32>, vector<32x64xf32>, vector<16x64xf32> -> vector<16x64xf32>
    %c0_188 = arith.constant 0 : index
    %c0_189 = arith.constant 0 : index
    %c0_190 = arith.constant 0 : index
    %444 = vector.load %arg20[%c0_188, %c0_189, %c0_190] : memref<1x1x64xf32, #tpu.memory_space<vmem>>, vector<1x1x64xf32>
    %445 = vector.shape_cast %444 : vector<1x1x64xf32> to vector<1x64xf32>
    %446 = vector.broadcast %445 : vector<1x64xf32> to vector<16x64xf32>
    %447 = arith.addf %443, %446 : vector<16x64xf32>
    %cst_191 = arith.constant 0.000000e+00 : f32
    %448 = vector.broadcast %cst_191 : f32 to vector<16x64xf32>
    %449 = arith.maximumf %447, %448 : vector<16x64xf32>
    %c0_192 = arith.constant 0 : index
    %c0_193 = arith.constant 0 : index
    %c0_194 = arith.constant 0 : index
    %450 = vector.load %arg21[%c0_192, %c0_193, %c0_194] : memref<1x64x32xf32, #tpu.memory_space<vmem>>, vector<1x64x32xf32>
    %451 = vector.shape_cast %450 : vector<1x64x32xf32> to vector<64x32xf32>
    %cst_195 = arith.constant dense<0.000000e+00> : vector<16x32xf32>
    %452 = tpu.matmul %449, %451, %cst_195 {dimension_numbers = #tpu.dot_dimension_numbers<[1], [0], [0], [1], [0, 0, 1, 1], [], []>} : vector<16x64xf32>, vector<64x32xf32>, vector<16x32xf32> -> vector<16x32xf32>
    %c0_196 = arith.constant 0 : index
    %c0_197 = arith.constant 0 : index
    %c0_198 = arith.constant 0 : index
    %453 = vector.load %arg22[%c0_196, %c0_197, %c0_198] : memref<1x1x32xf32, #tpu.memory_space<vmem>>, vector<1x1x32xf32>
    %454 = vector.shape_cast %453 : vector<1x1x32xf32> to vector<1x32xf32>
    %455 = vector.broadcast %454 : vector<1x32xf32> to vector<16x32xf32>
    %456 = arith.addf %452, %455 : vector<16x32xf32>
    %457 = arith.addf %456, %440 : vector<16x32xf32>
    %c0_199 = arith.constant 0 : index
    %c0_200 = arith.constant 0 : index
    %c0_201 = arith.constant 0 : index
    %458 = vector.load %arg23[%c0_199, %c0_200, %c0_201] : memref<1x1x32xf32, #tpu.memory_space<vmem>>, vector<1x1x32xf32>
    %459 = vector.shape_cast %458 : vector<1x1x32xf32> to vector<1x32xf32>
    %c0_202 = arith.constant 0 : index
    %c0_203 = arith.constant 0 : index
    %c0_204 = arith.constant 0 : index
    %460 = vector.load %arg24[%c0_202, %c0_203, %c0_204] : memref<1x1x32xf32, #tpu.memory_space<vmem>>, vector<1x1x32xf32>
    %461 = vector.shape_cast %460 : vector<1x1x32xf32> to vector<1x32xf32>
    %cst_205 = arith.constant dense<0.000000e+00> : vector<16xf32>
    %462 = vector.multi_reduction <add>, %457, %cst_205 [1] : vector<16x32xf32> to vector<16xf32>
    %463 = vector.shape_cast %462 : vector<16xf32> to vector<16x1xf32>
    %cst_206 = arith.constant 3.200000e+01 : f32
    %464 = vector.broadcast %cst_206 : f32 to vector<16x1xf32>
    %465 = arith.divf %463, %464 : vector<16x1xf32>
    %466 = vector.broadcast %465 : vector<16x1xf32> to vector<16x32xf32>
    %467 = arith.subf %457, %466 : vector<16x32xf32>
    %468 = arith.mulf %467, %467 : vector<16x32xf32>
    %cst_207 = arith.constant dense<0.000000e+00> : vector<16xf32>
    %469 = vector.multi_reduction <add>, %468, %cst_207 [1] : vector<16x32xf32> to vector<16xf32>
    %470 = vector.shape_cast %469 : vector<16xf32> to vector<16x1xf32>
    %cst_208 = arith.constant 3.200000e+01 : f32
    %471 = vector.broadcast %cst_208 : f32 to vector<16x1xf32>
    %472 = arith.divf %470, %471 : vector<16x1xf32>
    %473 = vector.broadcast %465 : vector<16x1xf32> to vector<16x32xf32>
    %474 = arith.subf %457, %473 : vector<16x32xf32>
    %cst_209 = arith.constant 9.99999974E-6 : f32
    %475 = vector.broadcast %cst_209 : f32 to vector<16x1xf32>
    %476 = arith.addf %472, %475 : vector<16x1xf32>
    %477 = math.rsqrt %476 : vector<16x1xf32>
    %478 = vector.broadcast %477 : vector<16x1xf32> to vector<16x32xf32>
    %479 = arith.mulf %474, %478 : vector<16x32xf32>
    %480 = vector.broadcast %459 : vector<1x32xf32> to vector<16x32xf32>
    %481 = arith.mulf %479, %480 : vector<16x32xf32>
    %482 = vector.broadcast %461 : vector<1x32xf32> to vector<16x32xf32>
    %483 = arith.addf %481, %482 : vector<16x32xf32>
    %c0_210 = arith.constant 0 : index
    %c0_211 = arith.constant 0 : index
    %484 = vector.load %arg26[%c0_210, %c0_211] : memref<16x32xf32, #tpu.memory_space<vmem>>, vector<16x32xf32>
    tpu.vector_store %arg26[%c0_210, %c0_211], %483 {strides = array<i32>} : memref<16x32xf32, #tpu.memory_space<vmem>>, vector<16x32xf32>,
    %c0_212 = arith.constant 0 : index
    %c0_213 = arith.constant 0 : index
    %485 = vector.load %arg25[%c0_212, %c0_213] : memref<16x32xf32, #tpu.memory_space<vmem>>, vector<16x32xf32>
    tpu.vector_store %arg25[%c0_212, %c0_213], %483 {strides = array<i32>} : memref<16x32xf32, #tpu.memory_space<vmem>>, vector<16x32xf32>,
    return
  }
  func.func @transform_0(%arg0: i32) -> (i32, i32) {
    %c0_i32 = arith.constant 0 : i32
    %c0_i32_0 = arith.constant 0 : i32
    %c0_i32_1 = arith.constant 0 : i32
    return %c0_i32, %c0_i32_0 : i32, i32
  }
  func.func @transform_1(%arg0: i32) -> (i32, i32) {
    %c0_i32 = arith.constant 0 : i32
    %c0_i32_0 = arith.constant 0 : i32
    %c0_i32_1 = arith.constant 0 : i32
    return %c0_i32, %c0_i32_0 : i32, i32
  }
  func.func @transform_2(%arg0: i32) -> (i32, i32, i32) {
    %c0_i32 = arith.constant 0 : i32
    %c0_i32_0 = arith.constant 0 : i32
    %c0_i32_1 = arith.constant 0 : i32
    %c0_i32_2 = arith.constant 0 : i32
    return %c0_i32, %c0_i32_0, %c0_i32_1 : i32, i32, i32
  }
  func.func @transform_3(%arg0: i32) -> (i32, i32, i32) {
    %c0_i32 = arith.constant 0 : i32
    %c0_i32_0 = arith.constant 0 : i32
    %c0_i32_1 = arith.constant 0 : i32
    %c0_i32_2 = arith.constant 0 : i32
    return %c0_i32, %c0_i32_0, %c0_i32_1 : i32, i32, i32
  }
  func.func @transform_4(%arg0: i32) -> (i32, i32, i32) {
    %c0_i32 = arith.constant 0 : i32
    %c0_i32_0 = arith.constant 0 : i32
    %c0_i32_1 = arith.constant 0 : i32
    return %arg0, %c0_i32, %c0_i32_0 : i32, i32, i32
  }
  func.func @transform_5(%arg0: i32) -> (i32, i32, i32) {
    %c0_i32 = arith.constant 0 : i32
    %c0_i32_0 = arith.constant 0 : i32
    %c0_i32_1 = arith.constant 0 : i32
    return %arg0, %c0_i32, %c0_i32_0 : i32, i32, i32
  }
  func.func @transform_6(%arg0: i32) -> (i32, i32, i32) {
    %c0_i32 = arith.constant 0 : i32
    %c0_i32_0 = arith.constant 0 : i32
    %c0_i32_1 = arith.constant 0 : i32
    return %arg0, %c0_i32, %c0_i32_0 : i32, i32, i32
  }
  func.func @transform_7(%arg0: i32) -> (i32, i32, i32) {
    %c0_i32 = arith.constant 0 : i32
    %c0_i32_0 = arith.constant 0 : i32
    %c0_i32_1 = arith.constant 0 : i32
    return %arg0, %c0_i32, %c0_i32_0 : i32, i32, i32
  }
  func.func @transform_8(%arg0: i32) -> (i32, i32, i32) {
    %c0_i32 = arith.constant 0 : i32
    %c0_i32_0 = arith.constant 0 : i32
    %c0_i32_1 = arith.constant 0 : i32
    return %arg0, %c0_i32, %c0_i32_0 : i32, i32, i32
  }
  func.func @transform_9(%arg0: i32) -> (i32, i32, i32) {
    %c0_i32 = arith.constant 0 : i32
    %c0_i32_0 = arith.constant 0 : i32
    %c0_i32_1 = arith.constant 0 : i32
    return %arg0, %c0_i32, %c0_i32_0 : i32, i32, i32
  }
  func.func @transform_10(%arg0: i32) -> (i32, i32, i32) {
    %c0_i32 = arith.constant 0 : i32
    %c0_i32_0 = arith.constant 0 : i32
    %c0_i32_1 = arith.constant 0 : i32
    return %arg0, %c0_i32, %c0_i32_0 : i32, i32, i32
  }
  func.func @transform_11(%arg0: i32) -> (i32, i32, i32) {
    %c0_i32 = arith.constant 0 : i32
    %c0_i32_0 = arith.constant 0 : i32
    %c0_i32_1 = arith.constant 0 : i32
    return %arg0, %c0_i32, %c0_i32_0 : i32, i32, i32
  }
  func.func @transform_12(%arg0: i32) -> (i32, i32, i32) {
    %c0_i32 = arith.constant 0 : i32
    %c0_i32_0 = arith.constant 0 : i32
    %c0_i32_1 = arith.constant 0 : i32
    return %arg0, %c0_i32, %c0_i32_0 : i32, i32, i32
  }
  func.func @transform_13(%arg0: i32) -> (i32, i32, i32) {
    %c0_i32 = arith.constant 0 : i32
    %c0_i32_0 = arith.constant 0 : i32
    %c0_i32_1 = arith.constant 0 : i32
    return %arg0, %c0_i32, %c0_i32_0 : i32, i32, i32
  }
  func.func @transform_14(%arg0: i32) -> (i32, i32, i32) {
    %c0_i32 = arith.constant 0 : i32
    %c0_i32_0 = arith.constant 0 : i32
    %c0_i32_1 = arith.constant 0 : i32
    return %arg0, %c0_i32, %c0_i32_0 : i32, i32, i32
  }
  func.func @transform_15(%arg0: i32) -> (i32, i32, i32) {
    %c0_i32 = arith.constant 0 : i32
    %c0_i32_0 = arith.constant 0 : i32
    %c0_i32_1 = arith.constant 0 : i32
    return %arg0, %c0_i32, %c0_i32_0 : i32, i32, i32
  }
  func.func @transform_16(%arg0: i32) -> (i32, i32, i32) {
    %c0_i32 = arith.constant 0 : i32
    %c0_i32_0 = arith.constant 0 : i32
    %c0_i32_1 = arith.constant 0 : i32
    return %arg0, %c0_i32, %c0_i32_0 : i32, i32, i32
  }
  func.func @transform_17(%arg0: i32) -> (i32, i32, i32) {
    %c0_i32 = arith.constant 0 : i32
    %c0_i32_0 = arith.constant 0 : i32
    %c0_i32_1 = arith.constant 0 : i32
    return %arg0, %c0_i32, %c0_i32_0 : i32, i32, i32
  }
  func.func @transform_18(%arg0: i32) -> (i32, i32, i32) {
    %c0_i32 = arith.constant 0 : i32
    %c0_i32_0 = arith.constant 0 : i32
    %c0_i32_1 = arith.constant 0 : i32
    return %arg0, %c0_i32, %c0_i32_0 : i32, i32, i32
  }
  func.func @transform_19(%arg0: i32) -> (i32, i32, i32) {
    %c0_i32 = arith.constant 0 : i32
    %c0_i32_0 = arith.constant 0 : i32
    %c0_i32_1 = arith.constant 0 : i32
    return %arg0, %c0_i32, %c0_i32_0 : i32, i32, i32
  }
  func.func @transform_20(%arg0: i32) -> (i32, i32, i32) {
    %c0_i32 = arith.constant 0 : i32
    %c0_i32_0 = arith.constant 0 : i32
    %c0_i32_1 = arith.constant 0 : i32
    return %arg0, %c0_i32, %c0_i32_0 : i32, i32, i32
  }
  func.func @transform_21(%arg0: i32) -> (i32, i32, i32) {
    %c0_i32 = arith.constant 0 : i32
    %c0_i32_0 = arith.constant 0 : i32
    %c0_i32_1 = arith.constant 0 : i32
    return %arg0, %c0_i32, %c0_i32_0 : i32, i32, i32
  }
  func.func @transform_22(%arg0: i32) -> (i32, i32, i32) {
    %c0_i32 = arith.constant 0 : i32
    %c0_i32_0 = arith.constant 0 : i32
    %c0_i32_1 = arith.constant 0 : i32
    return %arg0, %c0_i32, %c0_i32_0 : i32, i32, i32
  }
  func.func @transform_23(%arg0: i32) -> (i32, i32, i32) {
    %c0_i32 = arith.constant 0 : i32
    %c0_i32_0 = arith.constant 0 : i32
    %c0_i32_1 = arith.constant 0 : i32
    return %arg0, %c0_i32, %c0_i32_0 : i32, i32, i32
  }
  func.func @transform_24(%arg0: i32) -> (i32, i32) {
    %c0_i32 = arith.constant 0 : i32
    %c0_i32_0 = arith.constant 0 : i32
    %c0_i32_1 = arith.constant 0 : i32
    return %c0_i32, %c0_i32_0 : i32, i32
  }
}

</mosaic_0001>

<bundles_post_ra>
// kernel: transformer_forward.5
= control target key start
LH: loop header
LB: loop body
LE: loop exit
PB: predicated region body
PF: predicated region fallthrough
CT: control target
= control target key end

     0   :  { %vm28_vm0 = vcmask 261120   ;;  %s243_s0 = inlined_call_operand.vmem [shape: f32[16,32], index: 0, kind: input, shape index: {}]   ;;  %s244_s1 = inlined_call_operand.vmem [shape: f32[32,32], index: 1, kind: input, shape index: {}]   ;;  %s245_s2 = inlined_call_operand.vmem [shape: f32[1,32], index: 2, kind: input, shape index: {}]   ;;  %s246_s3 = inlined_call_operand.hbm [shape: f32[16,32], index: 3, kind: output, shape index: {}]  }
   0x1   :  { %v17_v0 = vld [vmem:[%s244_s1] sm:$0xff]  ;;  %v18_v1 = vld [vmem:[%s244_s1 + $0x8] sm:$0xff]  ;;  %v19_v2 = vld [vmem:[%s244_s1 + $0x10] sm:$0xff] }
   0x2   :  { %v148_v3 = vpack.c.bf16 %v18_v1, %v17_v0  ;;  %v20_v4 = vld [vmem:[%s244_s1 + $0x18] sm:$0xff]  ;;  %v15_v5 = vld [vmem:[%s243_s0] sm:$0xff] }
   0x3   :  { %v152_v6 = vpack.c.bf16 %v20_v4, %v19_v2  ;;  %145 = vmatprep.mubr.msk.f32.mxu0 %vm28_vm0, %v15_v5 }
   0x4   :  { %8 = vsyncpa [#allocation3], 0  ;;  %149 = vmatprep.subr.bf16.mxu0 %v148_v3  ;;  %v16_v7 = vld [vmem:[%s243_s0 + $0x8] sm:$0xff]  ;;  %v128_v8 = vld [vmem:[%s245_s2] ss:$0 sm:$0xff]  ;;  %s183_s25 = smov [#allocation2]  }
   0x5   :  { %151 = vmatpush3.bf16.msra.mxu0 %v148_v3  ;;  %s117_s26 = sshll.u32 %s183_s25, 4  ;;  %s118_s26 = int_to_ptr.vmem [resolvable:$true] %s117_s26 }
   0x6   :  { %153 = vmatprep.subr.bf16.mxu0 %v152_v6  ;;  %s159_s27 = scalar_lea.vmem %s118_s26, 256  ;;  %p164_p1 = scmp.lt.s32.totalorder %s118_s26, %s118_s26 }
   0x7   :  { %p160_p0 = scmp.ne.s32.totalorder %s118_s26, %s159_s27  ;;  %p165_p2 = scmp.lt.s32.totalorder %s159_s27, %s159_s27 }
   0x9   :  { %155 = vmatpush3.bf16.msra.mxu0 %v152_v6  ;;  %p166_p3 = por %p165_p2, %p164_p1 }
   0xb   :  { %p167_p4 = pnand %p166_p3, %p160_p0 }
   0xc   :  { %146 = vmatmul.mubr.msk.f32.vlgmr.msra.gmra.mrb[0].mxu0 %vm28_vm0, %v16_v7 }
  0xdf   :  { %v147_v9 = vpop.f32.mrb[0].mxu0 }
  0xe0   :  { %v107_v10 = vadd.f32 %v147_v9, %v128_v8  ;;  %v101_v11 = vpop.f32.mrb[1].mxu0 }
  0xe1   :  { %v102_v12 = vadd.f32 %v128_v8, %v101_v11 }
  0xe2   :  { %111 = vst.msk [vmem:[#allocation2 + $0x8] sm:$0xff] %vm28_vm0, %v107_v10 }
  0xe3   :  { %110 = vst.msk [vmem:[#allocation2] sm:$0xff] %vm28_vm0, %v102_v12 }
  0xe4   :  { %170 = shalt.err (!%p167_p4)
}
  0xe5   :  { %s171_s28 = scalar_lea.hbm %s246_s3, 256 }
  0xe6   :  { %p172_p5 = scmp.ne.s32.totalorder %s246_s3, %s171_s28  ;;  %p175_p6 = scmp.lt.u32.totalorder %s171_s28, %s246_s3 }
  0xe8   :  { %p177_p7 = pnand %p175_p6, %p172_p5 }
  0xea   :  { %180 = shalt.err (!%p177_p7)
}
  0xeb   :  { %s184_s6 = smov 128   ;;  %s185_s7 = smov 8  }
  0xec   :  { %123 = dma.vmem_to_hbm [thread:$0]  %s118_s26, 256, %s246_s3, [#allocation3], %s184_s6, %s184_s6, %s185_s7  }
  0xed   :  { %181 = dma.done.wait [#allocation3], 256  }
  0xee   :  { %182 = vsyncadd [#allocation3], 4294967040 }
  0xef   :  { %127 = vsyncpa [#allocation3], 1 }

// kernel: transformer_forward.3
= control target key start
LH: loop header
LB: loop body
LE: loop exit
PB: predicated region body
PF: predicated region fallthrough
CT: control target
= control target key end

     0   :  { %s3075_s29 = smov 0   ;;  %s3385_s0 = inlined_call_operand.vmem [shape: f32[16,32], index: 0, kind: input, shape index: {}]   ;;  %s3386_s1 = inlined_call_operand.vmem [shape: f32[2,8,8], index: 1, kind: input, shape index: {}]   ;;  %s3387_s2 = inlined_call_operand.vmem [shape: f32[2,32,96], index: 2, kind: input, shape index: {}]   ;;  %s3388_s3 = inlined_call_operand.vmem [shape: f32[2,1,96], index: 3, kind: input, shape index: {}]   ;;  %s3389_s4 = inlined_call_operand.vmem [shape: f32[2,32,32], index: 4, kind: input, shape index: {}]   ;;  %s3390_s5 = inlined_call_operand.vmem [shape: f32[2,1,32], index: 5, kind: input, shape index: {}]   ;;  %s3391_s6 = inlined_call_operand.vmem [shape: f32[2,1,32], index: 6, kind: input, shape index: {}]   ;;  %s3392_s7 = inlined_call_operand.vmem [shape: f32[2,1,32], index: 7, kind: input, shape index: {}]   ;;  %s3393_s8 = inlined_call_operand.vmem [shape: f32[2,32,64], index: 8, kind: input, shape index: {}]   ;;  %s3394_s9 = inlined_call_operand.vmem [shape: f32[2,1,64], index: 9, kind: input, shape index: {}]   ;;  %s3395_s10 = inlined_call_operand.vmem [shape: f32[2,64,32], index: 10, kind: input, shape index: {}]   ;;  %s3396_s11 = inlined_call_operand.vmem [shape: f32[2,1,32], index: 11, kind: input, shape index: {}]   ;;  %s3397_s12 = inlined_call_operand.vmem [shape: f32[2,1,32], index: 12, kind: input, shape index: {}]   ;;  %s3398_s13 = inlined_call_operand.vmem [shape: f32[2,1,32], index: 13, kind: input, shape index: {}]   ;;  %s3399_s14 = inlined_call_operand.vmem [shape: f32[16,32], index: 14, kind: output, shape index: {}]  }
   0x1   :  { %3404 = sst [smem:[#allocation5_spill]] %s3385_s0 }
   0x2   :  { %3405 = sst [smem:[#allocation6_spill]] %s3386_s1 }
   0x3   :  { %3406 = sst [smem:[#allocation7_spill]] %s3387_s2 }
   0x4   :  { %3407 = sst [smem:[#allocation8_spill]] %s3389_s4 }
   0x5   :  { %3408 = sst [smem:[#allocation9_spill]] %s3399_s14 }
   0x6 LB: > { %3409 = sst [smem:[#allocation4_spill]] %s2982_s29  ;;  %s2620_s30 = sadd.s32 4294967295, %s2982_s29   ;;  %s2982_s29 = sphi %s3075_s29, %s24_s29  }
   0x7   : > { %p2623_p0 = scmp.ge.s32.totalorder %s2982_s29, 1  ;;  %p501_p1 = scmp.lt.s32.totalorder %s2982_s29, 3 }
   0x9   : > { %p502_p2 = pnand %p2623_p0, %p501_p1 }
   0xa   : > { %p581_p3 = scmp.lt.s32.totalorder (!%p502_p2), %s2620_s30, 1  ;;  %s3410_s2 = sld [smem:[#allocation7_spill]] (!%p502_p2) }
   0xb   : > { %505 = sbr.rel (%p502_p2) target bundleno = 2597 (0xa25), region = 76  ;;  %s3411_s4 = sld [smem:[#allocation8_spill]] (!%p502_p2) }
   0xc   : > { %p2632_p4 = scmp.ne.s32.totalorder (!%p502_p2), %s2620_s30, 0 }
  0x12   : > { %s3083_s15 = scalar_select %p581_p3, %s2620_s30, 1 }
  0x13   : > { %628 = sbr.rel (%p2632_p4) target bundleno = 32 (0x20), region = 80  ;;  %vm631_vm0 = vcmask (!%p2632_p4), 261120  }
  0x14   : > { %s2676_s16 = sshll.u32 %s3083_s15, 5  ;;  %s618_s0 = scalar_lea.vmem %s3396_s11, %s3083_s15 }
  0x15   : > { %s585_s22 = scalar_lea.vmem %s3410_s2, %s2676_s16  ;;  %s3096_s25 = scalar_lea.vmem %s3411_s4, %s2676_s16 }
  0x16   : > { %s3113_s21 = scalar_lea.vmem %s3393_s8, %s2676_s16  ;;  %s2679_s4 = sshll.u32 %s3083_s15, 6 }
  0x17   : > { %s3123_s28 = scalar_lea.vmem %s3395_s10, %s2679_s4  ;;  %s621_s19 = scalar_lea.vmem %s3397_s12, %s3083_s15 }
  0x18   : > { %s624_s1 = scalar_lea.vmem %s3398_s13, %s3083_s15  ;;  %s3412_s2 = sld [smem:[#allocation5_spill]] (!%p2632_p4) }
  0x1e   : > { %v629_v0 = vld [vmem:[%s3412_s2] sm:$0xff]  ;;  %v630_v1 = vld [vmem:[%s3412_s2 + $0x8] sm:$0xff] }
  0x1f   : > { %632 = vst.msk [vmem:[#allocation2] sm:$0xff] %vm631_vm0, %v629_v0  ;;  %633 = vst.msk [vmem:[#allocation2 + $0x8] sm:$0xff] %vm631_vm0, %v630_v1 }
  0x20 PF: > { %v636_v2 = vld [vmem:[%s585_s22] sm:$0xff]  ;;  %v637_v3 = vld [vmem:[%s585_s22 + $0x8] sm:$0xff]  ;;  %v638_v4 = vld [vmem:[%s585_s22 + $0x10] sm:$0xff]  ;;  %vm647_vm1 = vcmask 261120   ;;  %v2984_v10 = vmov 0.0   ;;  %vm2985_vm2 = vmmov 0   ;;  %s3413_s18 = scalar_lea.vmem %s3388_s3, %s3083_s15  ;;  %s3416_s26 = scalar_lea.vmem %s3391_s6, %s3083_s15 }
  0x21   : > { %v2872_v5 = vpack.c.bf16 %v637_v3, %v636_v2  ;;  %v639_v6 = vld [vmem:[%s585_s22 + $0x18] sm:$0xff]  ;;  %2761 = vmatprep.subr.mxu0 %v2984_v10  ;;  %2763 = vmatprep.mubr.msk.f32.mxu0 %vm2985_vm2, %v2984_v10  ;;  %v2633_v11 = vld [vmem:[%s3413_s18] ss:$0 sm:$0xff]  ;;  %s2986_s27 = smov 120   ;;  %s2987_s14 = smov 96   ;;  %vm733_vm3 = vcmask 64512  }
  0x22   : > { %v2876_v8 = vpack.c.bf16 %v639_v6, %v638_v4  ;;  %s2988_s29 = smov 80   ;;  %s2989_s17 = smov 88   ;;  %vm1069_vm4 = vcmask 130112   ;;  %vm1242_vm5 = vcmask 195712   ;;  %vm1415_vm6 = vcmask 261312  }
  0x23   : > { %2873 = vmatprep.subr.bf16.mxu1 %v2872_v5  ;;  %s2990_s16 = smov 72   ;;  %s2991_s20 = smov 112   ;;  %vm2352_vm7 = vcmask 523264  }
  0x24   : > { %2875 = vmatpush3.bf16.msra.mxu1 %v2872_v5  ;;  %s2992_s23 = smov 104   ;;  %s2993_s24 = smov 56  }
  0x25   : > { %2877 = vmatprep.subr.bf16.mxu1 %v2876_v8  ;;  %s2994_s4 = smov 64   ;;  %s3414_s22 = sld [smem:[#allocation6_spill]] }
  0x26   : > { %v3143_v7 = vld [vmem:[#allocation2] sm:$0xff]  ;;  %v3147_v9 = vld [vmem:[#allocation2 + $0x8] sm:$0xff] }
  0x27   : > { %2748 = vmatprep.mubr.msk.f32.mxu1 %vm647_vm1, %v3143_v7 }
  0x28   : > { %2879 = vmatpush3.bf16.msra.mxu1 %v2876_v8 }
  0x29   : > { %2751 = vmatprep.subr.mxu1 %v2984_v10 }
  0x2b   : > { %2749 = vmatmul.mubr.msk.f32.vlgmr.msra.gmra.mrb[0].mxu1 %vm647_vm1, %v3147_v9  ;;  %v729_v32 = vld [vmem:[%s3414_s22] sm:$0xff]  ;;  %v2648_v52 = vld [vmem:[%s3414_s22 + $0x8] sm:$0xff] }
  0x2c   : > { %2753 = vmatprep.mubr.msk.f32.mxu1 %vm2985_vm2, %v2984_v10 }
  0xfe   : > { %v2750_v12 = vpop.f32.mrb[0].mxu1 }
  0xff   : > { %v720_v13 = vpop.f32.mrb[1].mxu1  ;;  %v3170_v15 = vadd.f32 %v2750_v12, %v2633_v11 }
 0x100   : > { %v3162_v14 = vadd.f32 %v2633_v11, %v720_v13 }
 0x102   : > { %898 = vrot.lane.b32.xlu1 %v3162_v14, %s2986_s27  ;;  %731 = vrot.lane.b32.xlu0 %v3162_v14, %s2987_s14 }
 0x106   : > { %1073 = vrot.lane.b32.xlu1 %v3162_v14, %s2988_s29  ;;  %900 = vrot.lane.b32.xlu0 %v3162_v14, %s2989_s17 }
 0x10a   : > { %1246 = vrot.lane.b32.xlu1 %v3162_v14, %s2990_s16  ;;  %1071 = vrot.lane.b32.xlu0 %v3162_v14, %s2991_s20 }
 0x10e   : > { %1420 = vrot.lane.b32.xlu1 %v3170_v15, %s2987_s14  ;;  %1244 = vrot.lane.b32.xlu0 %v3162_v14, %s2992_s23  ;;  %s2995_s14 = smov 40  }
 0x112   : > { %1586 = vrot.lane.b32.xlu1 %v3170_v15, %s2986_s27  ;;  %1588 = vrot.lane.b32.xlu0 %v3170_v15, %s2989_s17  ;;  %s2997_s17 = smov 8   ;;  %s3417_s27 = scalar_lea.vmem %s3392_s7, %s3083_s15 }
 0x116   : > { %1758 = vrot.lane.b32.xlu1 %v3170_v15, %s2991_s20  ;;  %1760 = vrot.lane.b32.xlu0 %v3170_v15, %s2988_s29  ;;  %s2996_s29 = smov 48   ;;  %s2999_s20 = smov 24  }
 0x11a   : > { %1930 = vrot.lane.b32.xlu1 %v3170_v15, %s2992_s23  ;;  %1932 = vrot.lane.b32.xlu0 %v3170_v15, %s2990_s16  ;;  %s2998_s16 = smov 16  }
 0x11e   : > { %989 = vrot.lane.b32.xlu1 %v3162_v14, %s2993_s24  ;;  %821 = vrot.lane.b32.xlu0 %v3162_v14, %s2994_s4 }
 0x174   : > { %v899_v16 = vpop.permute.xlu1 %898  ;;  %v732_v17 = vpop.permute.xlu0 %731 }
 0x175   : > { %2752 = vmatpush3.xpose.msk.msra.mxu1 %vm733_vm3, %v732_v17 }
 0x176   : > { %2756 = vmatprep.subr.mxu1 %v2984_v10 }
 0x178   : > { %v1074_v18 = vpop.permute.xlu1 %1073  ;;  %2754 = vmatmul.mubr.msk.f32.vlgmr.msra.gmra.mrb[2].mxu1 %vm733_vm3, %v3162_v14  ;;  %v901_v19 = vpop.permute.xlu0 %900 }
 0x179   : > { %2762 = vmatpush3.xpose.msk.msra.mxu0 %vm733_vm3, %v901_v19  ;;  %2758 = vmatprep.mubr.msk.f32.mxu1 %vm2985_vm2, %v2984_v10 }
 0x17a   : > { %2771 = vmatprep.subr.mxu0 %v2984_v10 }
 0x17c   : > { %v1247_v20 = vpop.permute.xlu1 %1246  ;;  %2764 = vmatmul.mubr.msk.f32.vlgmr.msra.gmra.mrb[0].mxu0 %vm733_vm3, %v899_v16  ;;  %v1072_v21 = vpop.permute.xlu0 %1071 }
 0x17d   : > { %2772 = vmatpush3.xpose.msk.msra.mxu0 %vm733_vm3, %v1074_v18  ;;  %2773 = vmatprep.mubr.msk.f32.mxu0 %vm2985_vm2, %v2984_v10 }
 0x17e   : > { %2781 = vmatprep.subr.mxu0 %v2984_v10 }
 0x180   : > { %2774 = vmatmul.mubr.msk.f32.vlgmr.msra.gmra.mrb[2].mxu0 %vm733_vm3, %v1072_v21  ;;  %v1245_v22 = vpop.permute.xlu0 %1244  ;;  %v1421_v23 = vpop.permute.xlu1 %1420 }
 0x181   : > { %2782 = vmatpush3.xpose.msk.msra.mxu0 %vm733_vm3, %v1247_v20  ;;  %2783 = vmatprep.mubr.msk.f32.mxu0 %vm2985_vm2, %v2984_v10 }
 0x182   : > { %2791 = vmatprep.subr.mxu0 %v2984_v10 }
 0x184   : > { %2784 = vmatmul.mubr.msk.f32.vlgmr.msra.gmra.mrb[4].mxu0 %vm733_vm3, %v1245_v22  ;;  %v1589_v24 = vpop.permute.xlu0 %1588  ;;  %v1587_v25 = vpop.permute.xlu1 %1586 }
 0x185   : > { %2792 = vmatpush3.xpose.msk.msra.mxu0 %vm733_vm3, %v1421_v23  ;;  %2793 = vmatprep.mubr.msk.f32.mxu0 %vm2985_vm2, %v2984_v10 }
 0x186   : > { %2801 = vmatprep.subr.mxu0 %v2984_v10 }
 0x188   : > { %2794 = vmatmul.mubr.msk.f32.vlgmr.msra.gmra.mrb[6].mxu0 %vm733_vm3, %v3170_v15  ;;  %v1761_v26 = vpop.permute.xlu0 %1760  ;;  %v1759_v28 = vpop.permute.xlu1 %1758 }
 0x189   : > { %2802 = vmatpush3.xpose.msk.msra.mxu0 %vm733_vm3, %v1589_v24  ;;  %2803 = vmatprep.mubr.msk.f32.mxu0 %vm2985_vm2, %v2984_v10 }
 0x18a   : > { %2811 = vmatprep.subr.mxu0 %v2984_v10 }
 0x18c   : > { %2804 = vmatmul.mubr.msk.f32.vlgmr.msra.gmra.mrb[8].mxu0 %vm733_vm3, %v1587_v25  ;;  %v1933_v27 = vpop.permute.xlu0 %1932  ;;  %v1931_v30 = vpop.permute.xlu1 %1930 }
 0x18d   : > { %2812 = vmatpush3.xpose.msk.msra.mxu0 %vm733_vm3, %v1761_v26  ;;  %2813 = vmatprep.mubr.msk.f32.mxu0 %vm2985_vm2, %v2984_v10 }
 0x18e   : > { %2821 = vmatprep.subr.mxu0 %v2984_v10 }
 0x190   : > { %2814 = vmatmul.mubr.msk.f32.vlgmr.msra.gmra.mrb[10].mxu0 %vm733_vm3, %v1759_v28  ;;  %v822_v29 = vpop.permute.xlu0 %821  ;;  %v3242_v12 = vpop.permute.xlu1 %989 }
 0x191   : > { %2757 = vmatpush3.msra.mxu1 %v822_v29  ;;  %2822 = vmatpush3.xpose.msk.msra.mxu0 %vm733_vm3, %v1933_v27 }
 0x192   : > { %2823 = vmatprep.mubr.msk.f32.mxu0 %vm2985_vm2, %v2984_v10  ;;  %2766 = vmatprep.subr.mxu1 %v2984_v10 }
 0x194   : > { %2824 = vmatmul.mubr.msk.f32.vlgmr.msra.gmra.mrb[12].mxu0 %vm733_vm3, %v1931_v30 }
 0x24b   : > { %v804_v31 = vpop.f32.mrb[2].mxu1 }
 0x24c   : > { %v808_v33 = vmul.f32 0.35355338, %v804_v31  ;;  %v2755_v34 = vpop.f32.mrb[3].mxu1 }
 0x24e   : > { %v809_v35 = vadd.f32 %v808_v33, %v729_v32 }
 0x24f   : > { %v972_v36 = vpop.f32.mrb[0].mxu0 }
 0x250   : > { %v976_v37 = vmul.f32 0.35355338, %v972_v36  ;;  %v2765_v38 = vpop.f32.mrb[1].mxu0  ;;  %v810_v39 = vsel %vm733_vm3, %v809_v35, -inf }
 0x251   : > { %811 = vmax.xlane.f32.xlu0 %v810_v39 }
 0x252   : > { %v977_v40 = vadd.f32 %v976_v37, %v729_v32 }
 0x253   : > { %v1145_v41 = vpop.f32.mrb[2].mxu0 }
 0x254   : > { %v1149_v42 = vmul.f32 0.35355338, %v1145_v41  ;;  %v2775_v43 = vpop.f32.mrb[3].mxu0  ;;  %v978_v44 = vsel %vm733_vm3, %v977_v40, -inf }
 0x255   : > { %979 = vmax.xlane.f32.xlu1 %v978_v44 }
 0x256   : > { %v1150_v45 = vadd.f32 %v1149_v42, %v729_v32 }
 0x257   : > { %v1318_v46 = vpop.f32.mrb[4].mxu0 }
 0x258   : > { %v1322_v47 = vmul.f32 0.35355338, %v1318_v46  ;;  %v2785_v48 = vpop.f32.mrb[5].mxu0  ;;  %v1151_v49 = vsel %vm733_vm3, %v1150_v45, -inf }
 0x259   : > { %1152 = vmax.xlane.f32.xlu0 %v1151_v49 }
 0x25a   : > { %v1323_v50 = vadd.f32 %v1322_v47, %v729_v32 }
 0x25b   : > { %v1492_v51 = vpop.f32.mrb[6].mxu0 }
 0x25c   : > { %v1496_v53 = vmul.f32 0.35355338, %v1492_v51  ;;  %v2795_v54 = vpop.f32.mrb[7].mxu0  ;;  %v1324_v55 = vsel %vm733_vm3, %v1323_v50, -inf }
 0x25d   : > { %1325 = vmax.xlane.f32.xlu0 %v1324_v55 }
 0x25e   : > { %v1497_v56 = vadd.f32 %v2648_v52, %v1496_v53 }
 0x25f   : > { %v1660_v57 = vpop.f32.mrb[8].mxu0 }
 0x260   : > { %v1664_v58 = vmul.f32 0.35355338, %v1660_v57  ;;  %v2805_v59 = vpop.f32.mrb[9].mxu0  ;;  %v1498_v60 = vsel %vm733_vm3, %v1497_v56, -inf }
 0x261   : > { %1499 = vmax.xlane.f32.xlu1 %v1498_v60 }
 0x262   : > { %v1665_v61 = vadd.f32 %v2648_v52, %v1664_v58 }
 0x263   : > { %v1832_v62 = vpop.f32.mrb[10].mxu0 }
 0x264   : > { %v1836_v63 = vmul.f32 0.35355338, %v1832_v62  ;;  %v2815_v0 = vpop.f32.mrb[11].mxu0  ;;  %v1666_v1 = vsel %vm733_vm3, %v1665_v61, -inf }
 0x265   : > { %1667 = vmax.xlane.f32.xlu0 %v1666_v1 }
 0x266   : > { %v1837_v2 = vadd.f32 %v2648_v52, %v1836_v63 }
 0x267   : > { %v2004_v3 = vpop.f32.mrb[12].mxu0 }
 0x268   : > { %v2008_v4 = vmul.f32 0.35355338, %v2004_v3  ;;  %v2825_v5 = vpop.f32.mrb[13].mxu0  ;;  %v1838_v6 = vsel %vm733_vm3, %v1837_v2, -inf }
 0x269   : > { %1839 = vmax.xlane.f32.xlu1 %v1838_v6 }
 0x26a   : > { %v2009_v8 = vadd.f32 %v2648_v52, %v2008_v4 }
 0x26c   : > { %v2010_v11 = vsel %vm733_vm3, %v2009_v8, -inf }
 0x26d   : > { %2011 = vmax.xlane.f32.xlu0 %v2010_v11 }
 0x27a   : > { %1335 = vrot.lane.b32.xlu1 %v3162_v14, %s2995_s14 }
 0x283   : > { %1162 = vrot.lane.b32.xlu0 %v3162_v14, %s2996_s29 }
 0x2de   : > { %v812_v13 = vpop.xlane.xlu0 %811 }
 0x2df   : > { %v813_v16 = vsub.f32 %v809_v35, %v812_v13 }
 0x2e1   : > { %v814_v17 = vmul.f32 1.442695, %v813_v16 }
 0x2e2   : > { %v980_v18 = vpop.xlane.xlu1 %979 }
 0x2e3   : > { %2936 = vpow2.f32 %v814_v17  ;;  %v981_v19 = vsub.f32 %v977_v40, %v980_v18 }
 0x2e5   : > { %v982_v20 = vmul.f32 1.442695, %v981_v19 }
 0x2e6   : > { %v1153_v21 = vpop.xlane.xlu0 %1152 }
 0x2e7   : > { %2938 = vpow2.f32 %v982_v20  ;;  %v1154_v22 = vsub.f32 %v1150_v45, %v1153_v21 }
 0x2e9   : > { %v1155_v23 = vmul.f32 1.442695, %v1154_v22 }
 0x2ea   : > { %v1326_v24 = vpop.xlane.xlu0 %1325 }
 0x2eb   : > { %2940 = vpow2.f32 %v1155_v23  ;;  %v1327_v25 = vsub.f32 %v1323_v50, %v1326_v24 }
 0x2ed   : > { %v2937_v26 = vpop.eup %2936  ;;  %v1328_v27 = vmul.f32 1.442695, %v1327_v25 }
 0x2ee   : > { %v816_v14 = vsel %vm733_vm3, %v2937_v26, 0.0  ;;  %v1500_v34 = vpop.xlane.xlu1 %1499 }
 0x2ef   : > { %2942 = vpow2.f32 %v1328_v27  ;;  %817 = vadd.xlane.f32.xlu1 %v816_v14  ;;  %v1501_v35 = vsub.f32 %v1497_v56, %v1500_v34 }
 0x2f1   : > { %v2939_v28 = vpop.eup %2938  ;;  %v1502_v39 = vmul.f32 1.442695, %v1501_v35  ;;  %v2106_v35 = vld [vmem:[%s3096_s25 + $0x10] sm:$0xff] }
 0x2f2   : > { %v984_v29 = vsel %vm733_vm3, %v2939_v28, 0.0  ;;  %v1668_v36 = vpop.xlane.xlu0 %1667 }
 0x2f3   : > { %985 = vadd.xlane.f32.xlu0 %v984_v29  ;;  %v1669_v38 = vsub.f32 %v1665_v61, %v1668_v36  ;;  %2944 = vpow2.f32 %v1502_v39  ;;  %v2107_v36 = vld [vmem:[%s3096_s25 + $0x18] sm:$0xff] }
 0x2f5   : > { %v2941_v30 = vpop.eup %2940  ;;  %v1670_v42 = vmul.f32 1.442695, %v1669_v38 }
 0x2f6   : > { %v1157_v31 = vsel %vm733_vm3, %v2941_v30, 0.0  ;;  %v1840_v37 = vpop.xlane.xlu1 %1839 }
 0x2f7   : > { %1158 = vadd.xlane.f32.xlu1 %v1157_v31  ;;  %v1841_v40 = vsub.f32 %v1837_v2, %v1840_v37  ;;  %2946 = vpow2.f32 %v1670_v42  ;;  %v2105_v31 = vld [vmem:[%s3096_s25 + $0x8] sm:$0xff]  ;;  %v2884_v37 = vpack.c.bf16 %v2107_v36, %v2106_v35 }
 0x2f9   : > { %v3247_v32 = vpop.eup %2942  ;;  %v1842_v43 = vmul.f32 1.442695, %v1841_v40 }
 0x2fa   : > { %v1330_v33 = vsel %vm733_vm3, %v3247_v32, 0.0  ;;  %v2012_v41 = vpop.xlane.xlu0 %2011  ;;  %v1336_v54 = vpop.permute.xlu1 %1335 }
 0x2fb   : > { %1331 = vadd.xlane.f32.xlu0 %v1330_v33  ;;  %v2013_v44 = vsub.f32 %v2009_v8, %v2012_v41  ;;  %2948 = vpow2.f32 %v1842_v43 }
 0x2fd   : > { %v2014_v45 = vmul.f32 1.442695, %v2013_v44  ;;  %v2945_v46 = vpop.eup %2944 }
 0x2fe   : > { %v1504_v48 = vsel %vm733_vm3, %v2945_v46, 0.0  ;;  %v1163_v55 = vpop.permute.xlu0 %1162 }
 0x2ff   : > { %2950 = vpow2.f32 %v2014_v45 }
 0x301   : > { %v3255_v47 = vpop.eup %2946 }
 0x302   : > { %v1672_v51 = vsel %vm733_vm3, %v3255_v47, 0.0 }
 0x305   : > { %v3258_v49 = vpop.eup %2948 }
 0x306   : > { %v1844_v50 = vsel %vm733_vm3, %v3258_v49, 0.0 }
 0x308   : > { %1677 = vrot.lane.b32.xlu1 %v3170_v15, %s2993_s24  ;;  %s3415_s24 = scalar_lea.vmem %s3390_s5, %s3083_s15 }
 0x309   : > { %v3264_v52 = vpop.eup %2950 }
 0x30a   : > { %v2016_v53 = vsel %vm733_vm3, %v3264_v52, 0.0 }
 0x311   : > { %1509 = vrot.lane.b32.xlu0 %v3170_v15, %s2994_s4  ;;  %s3419_s4 = sld [smem:[#allocation9_spill]] }
 0x32c   : > { %1505 = vadd.xlane.f32.xlu1 %v1504_v48 }
 0x330   : > { %1845 = vadd.xlane.f32.xlu1 %v1844_v50  ;;  %1673 = vadd.xlane.f32.xlu0 %v1672_v51 }
 0x334   : > { %2017 = vadd.xlane.f32.xlu1 %v2016_v53 }
 0x345   : > { %2021 = vrot.lane.b32.xlu1 %v3170_v15, %s2995_s14 }
 0x346   : > { %1849 = vrot.lane.b32.xlu0 %v3170_v15, %s2996_s29 }
 0x37c   : > { %v818_v56 = vpop.xlane.xlu1 %817 }
 0x37d   : > { %2952 = vrcp.f32 %v818_v56 }
 0x380   : > { %v986_v57 = vpop.xlane.xlu0 %985 }
 0x381   : > { %2954 = vrcp.f32 %v986_v57 }
 0x384   : > { %v1159_v58 = vpop.xlane.xlu1 %1158 }
 0x385   : > { %2956 = vrcp.f32 %v1159_v58 }
 0x387   : > { %v2953_v59 = vpop.eup %2952 }
 0x388   : > { %v820_v60 = vmul.f32 %v2953_v59, %v2937_v26  ;;  %v1332_v61 = vpop.xlane.xlu0 %1331  ;;  %v1678_v4 = vpop.permute.xlu1 %1677 }
 0x389   : > { %2958 = vrcp.f32 %v1332_v61 }
 0x38a   : > { %2759 = vmatmul.mubr.msk.f32.vlgmr.msra.gmra.mrb[4].mxu1 %vm733_vm3, %v820_v60 }
 0x38b   : > { %v2955_v62 = vpop.eup %2954  ;;  %2767 = vmatpush3.msra.mxu1 %v3242_v12  ;;  %2768 = vmatprep.mubr.msk.f32.mxu1 %vm2985_vm2, %v2984_v10 }
 0x38c   : > { %v988_v15 = vmul.f32 %v2955_v62, %v2939_v28  ;;  %2776 = vmatprep.subr.mxu1 %v2984_v10  ;;  %v1510_v3 = vpop.permute.xlu0 %1509 }
 0x38e   : > { %2769 = vmatmul.mubr.msk.f32.vlgmr.msra.gmra.mrb[6].mxu1 %vm733_vm3, %v988_v15 }
 0x38f   : > { %v2957_v63 = vpop.eup %2956  ;;  %2777 = vmatpush3.msra.mxu1 %v1163_v55  ;;  %2778 = vmatprep.mubr.msk.f32.mxu1 %vm2985_vm2, %v2984_v10 }
 0x390   : > { %v1161_v0 = vmul.f32 %v2957_v63, %v2941_v30  ;;  %2786 = vmatprep.subr.mxu1 %v2984_v10  ;;  %v2104_v30 = vld [vmem:[%s3096_s25] sm:$0xff] }
 0x391   : > { %v2880_v33 = vpack.c.bf16 %v2105_v31, %v2104_v30  ;;  %v2665_v31 = vld [vmem:[%s3417_s27] ss:$0 sm:$0xff] }
 0x392   : > { %2779 = vmatmul.mubr.msk.f32.vlgmr.msra.gmra.mrb[8].mxu1 %vm733_vm3, %v1161_v0 }
 0x393   : > { %v2959_v1 = vpop.eup %2958  ;;  %2787 = vmatpush3.msra.mxu1 %v1336_v54  ;;  %2788 = vmatprep.mubr.msk.f32.mxu1 %vm2985_vm2, %v2984_v10 }
 0x394   : > { %v1334_v2 = vmul.f32 %v2959_v1, %v3247_v32  ;;  %2796 = vmatprep.subr.mxu1 %v2984_v10  ;;  %2881 = vmatprep.subr.bf16.mxu0 %v2880_v33 }
 0x395   : > { %2883 = vmatpush3.bf16.msra.mxu0 %v2880_v33 }
 0x396   : > { %2789 = vmatmul.mubr.msk.f32.vlgmr.msra.gmra.mrb[10].mxu1 %vm733_vm3, %v1334_v2  ;;  %2885 = vmatprep.subr.bf16.mxu0 %v2884_v37 }
 0x397   : > { %2797 = vmatpush3.msra.mxu1 %v1510_v3  ;;  %2798 = vmatprep.mubr.msk.f32.mxu1 %vm2985_vm2, %v2984_v10 }
 0x398   : > { %2806 = vmatprep.subr.mxu1 %v2984_v10 }
 0x399   : > { %2887 = vmatpush3.bf16.msra.mxu0 %v2884_v37 }
 0x3b9   : > { %v1506_v5 = vpop.xlane.xlu1 %1505 }
 0x3ba   : > { %2960 = vrcp.f32 %v1506_v5  ;;  %v2244_v5 = vld [vmem:[%s3113_s21 + $0x8] sm:$0xff] }
 0x3bd   : > { %v1846_v6 = vpop.xlane.xlu1 %1845  ;;  %v1674_v8 = vpop.xlane.xlu0 %1673 }
 0x3be   : > { %2962 = vrcp.f32 %v1674_v8  ;;  %v2245_v8 = vld [vmem:[%s3113_s21 + $0x10] sm:$0xff] }
 0x3bf   : > { %2964 = vrcp.f32 %v1846_v6 }
 0x3c1   : > { %v2018_v11 = vpop.xlane.xlu1 %2017  ;;  %v1850_v19 = vpop.permute.xlu0 %1849 }
 0x3c2   : > { %2966 = vrcp.f32 %v2018_v11  ;;  %v2246_v11 = vld [vmem:[%s3113_s21 + $0x18] sm:$0xff] }
 0x3c4   : > { %v2961_v12 = vpop.eup %2960 }
 0x3c5   : > { %v1508_v13 = vmul.f32 %v2961_v12, %v2945_v46  ;;  %v2022_v22 = vpop.permute.xlu1 %2021  ;;  %v2892_v12 = vpack.c.bf16 %v2246_v11, %v2245_v8  ;;  %v2672_v8 = vld [vmem:[%s621_s19] ss:$0 sm:$0xff] }
 0x3c7   : > { %2799 = vmatmul.mubr.msk.f32.vlgmr.msra.gmra.mrb[12].mxu1 %vm733_vm3, %v1508_v13  ;;  %v2337_v13 = vld [vmem:[%s3123_s28] sm:$0xff] }
 0x3c8   : > { %2807 = vmatpush3.msra.mxu1 %v1678_v4  ;;  %2808 = vmatprep.mubr.msk.f32.mxu1 %vm2985_vm2, %v2984_v10  ;;  %v2963_v16 = vpop.eup %2962  ;;  %v2243_v4 = vld [vmem:[%s3113_s21] sm:$0xff] }
 0x3c9   : > { %2816 = vmatprep.subr.mxu1 %v2984_v10  ;;  %v1676_v17 = vmul.f32 %v2963_v16, %v3255_v47  ;;  %v2965_v18 = vpop.eup %2964  ;;  %v2888_v6 = vpack.c.bf16 %v2244_v5, %v2243_v4  ;;  %v2338_v16 = vld [vmem:[%s3123_s28 + $0x8] sm:$0xff] }
 0x3ca   : > { %v1848_v20 = vmul.f32 %v2965_v18, %v3258_v49  ;;  %v2896_v18 = vpack.c.bf16 %v2338_v16, %v2337_v13  ;;  %v2673_v13 = vld [vmem:[%s624_s1] ss:$0 sm:$0xff] }
 0x3cb   : > { %2809 = vmatmul.mubr.msk.f32.vlgmr.msra.gmra.mrb[14].mxu1 %vm733_vm3, %v1676_v17  ;;  %v2339_v17 = vld [vmem:[%s3123_s28 + $0x10] sm:$0xff] }
 0x3cc   : > { %2817 = vmatpush3.msra.mxu1 %v1850_v19  ;;  %2818 = vmatprep.mubr.msk.f32.mxu1 %vm2985_vm2, %v2984_v10  ;;  %v2967_v21 = vpop.eup %2966  ;;  %v2340_v19 = vld [vmem:[%s3123_s28 + $0x18] sm:$0xff] }
 0x3cd   : > { %2826 = vmatprep.subr.mxu1 %v2984_v10  ;;  %v2020_v23 = vmul.f32 %v2967_v21, %v3264_v52  ;;  %v2661_v52 = vld [vmem:[%s3415_s24] ss:$0 sm:$0xff]  ;;  %2897 = vmatprep.subr.bf16.mxu0 %v2896_v18 }
 0x3ce   : > { %v2341_v21 = vld [vmem:[%s3123_s28 + $0x20] sm:$0xff] }
 0x3cf   : > { %2819 = vmatmul.mubr.msk.f32.vlgmr.msra.gmra.mrb[16].mxu1 %vm733_vm3, %v1848_v20  ;;  %v2900_v20 = vpack.c.bf16 %v2340_v19, %v2339_v17 }
 0x3d0   : > { %2827 = vmatpush3.msra.mxu1 %v2022_v22  ;;  %2828 = vmatprep.mubr.msk.f32.mxu1 %vm2985_vm2, %v2984_v10  ;;  %v2342_v22 = vld [vmem:[%s3123_s28 + $0x28] sm:$0xff] }
 0x3d1   : > { %2889 = vmatprep.subr.bf16.mxu1 %v2888_v6 }
 0x3d3   : > { %2829 = vmatmul.mubr.msk.f32.vlgmr.msra.gmra.mrb[18].mxu1 %vm733_vm3, %v2020_v23  ;;  %v2904_v23 = vpack.c.bf16 %v2342_v22, %v2341_v21 }
 0x3d4   : > { %2891 = vmatpush3.bf16.msra.mxu1 %v2888_v6 }
 0x3d5   : > { %2893 = vmatprep.subr.bf16.mxu1 %v2892_v12 }
 0x3d8   : > { %2895 = vmatpush3.bf16.msra.mxu1 %v2892_v12 }
 0x45d   : > { %v893_v24 = vpop.f32.mrb[4].mxu1 }
 0x45e   : > { %897 = vst.msk [vmem:[#allocation3] sm:$0xff] %vm733_vm3, %v893_v24  ;;  %v2760_v25 = vpop.f32.mrb[5].mxu1 }
 0x461   : > { %v1061_v26 = vpop.f32.mrb[6].mxu1 }
 0x462   : > { %1066 = vrot.lane.b32.xlu0 %v1061_v26, %s2997_s17  ;;  %v2770_v27 = vpop.f32.mrb[7].mxu1 }
 0x465   : > { %v1234_v14 = vpop.f32.mrb[8].mxu1 }
 0x466   : > { %1239 = vrot.lane.b32.xlu1 %v1234_v14, %s2998_s16  ;;  %v2780_v10 = vpop.f32.mrb[9].mxu1 }
 0x469   : > { %v1407_v28 = vpop.f32.mrb[10].mxu1 }
 0x46a   : > { %1412 = vrot.lane.b32.xlu1 %v1407_v28, %s2999_s20  ;;  %v2790_v29 = vpop.f32.mrb[11].mxu1 }
 0x46b   : > { %v2664_v29 = vld [vmem:[%s3416_s26] ss:$0 sm:$0xff] }
 0x49a   : > { %v1581_v32 = vpop.f32.mrb[12].mxu1 }
 0x49b   : > { %1585 = vst.msk [vmem:[#allocation3 + $0x8] sm:$0xff] %vm733_vm3, %v1581_v32  ;;  %v2800_v34 = vpop.f32.mrb[13].mxu1 }
 0x49e   : > { %v1749_v38 = vpop.f32.mrb[14].mxu1 }
 0x49f   : > { %1754 = vrot.lane.b32.xlu0 %v1749_v38, %s2997_s17  ;;  %v2810_v39 = vpop.f32.mrb[15].mxu1  ;;  %v2343_v38 = vld [vmem:[%s3123_s28 + $0x30] sm:$0xff]  ;;  %s3418_s17 = scalar_lea.vmem %s3394_s9, %s3083_s15 }
 0x4a0   : > { %v2344_v39 = vld [vmem:[%s3123_s28 + $0x38] sm:$0xff] }
 0x4a2   : > { %v1921_v40 = vpop.f32.mrb[16].mxu1 }
 0x4a3   : > { %1926 = vrot.lane.b32.xlu0 %v1921_v40, %s2998_s16  ;;  %v2820_v41 = vpop.f32.mrb[17].mxu1  ;;  %v2908_v40 = vpack.c.bf16 %v2344_v39, %v2343_v38 }
 0x4a4   : > { %v2666_v41 = vld [vmem:[%s3418_s17] ss:$0 sm:$0xff] }
 0x4a6   : > { %v2093_v42 = vpop.f32.mrb[18].mxu1 }
 0x4a7   : > { %2098 = vrot.lane.b32.xlu1 %v2093_v42, %s2999_s20  ;;  %v2830_v43 = vpop.f32.mrb[19].mxu1 }
 0x4d4   : > { %v1067_v44 = vpop.permute.xlu0 %1066 }
 0x4d5   : > { %1070 = vst.msk [vmem:[#allocation3] sm:$0xff] %vm1069_vm4, %v1067_v44 }
 0x4d8   : > { %v1240_v45 = vpop.permute.xlu1 %1239 }
 0x4d9   : > { %1243 = vst.msk [vmem:[#allocation3] sm:$0xff] %vm1242_vm5, %v1240_v45 }
 0x4dc   : > { %v1413_v46 = vpop.permute.xlu1 %1412 }
 0x4dd   : > { %1416 = vst.msk [vmem:[#allocation3] sm:$0xff] %vm1415_vm6, %v1413_v46 }
 0x4e4   : > { %v2102_v47 = vld [vmem:[#allocation3] sm:$0xff] }
 0x4e5   : > { %2839 = vmatprep.mubr.msk.f32.mxu0 %vm647_vm1, %v2102_v47 }
 0x511   : > { %v1755_v48 = vpop.permute.xlu0 %1754 }
 0x512   : > { %1757 = vst.msk [vmem:[#allocation3 + $0x8] sm:$0xff] %vm1069_vm4, %v1755_v48  ;;  %v2669_v48 = vld [vmem:[%s618_s0] ss:$0 sm:$0xff] }
 0x515   : > { %v1927_v49 = vpop.permute.xlu0 %1926 }
 0x516   : > { %1929 = vst.msk [vmem:[#allocation3 + $0x8] sm:$0xff] %vm1242_vm5, %v1927_v49 }
 0x519   : > { %v2099_v50 = vpop.permute.xlu1 %2098 }
 0x51a   : > { %2101 = vst.msk [vmem:[#allocation3 + $0x8] sm:$0xff] %vm1415_vm6, %v2099_v50 }
 0x521   : > { %v2103_v51 = vld [vmem:[#allocation3 + $0x8] sm:$0xff] }
 0x522   : > { %2840 = vmatmul.mubr.msk.f32.vlgmr.msra.gmra.mrb[14].mxu0 %vm647_vm1, %v2103_v51 }
 0x523   : > { %2899 = vmatpush3.bf16.msra.mxu0 %v2896_v18 }
 0x524   : > { %2901 = vmatprep.subr.bf16.mxu0 %v2900_v20 }
 0x527   : > { %2903 = vmatpush3.bf16.msra.mxu0 %v2900_v20 }
 0x528   : > { %2905 = vmatprep.subr.bf16.mxu0 %v2904_v23 }
 0x52b   : > { %2907 = vmatpush3.bf16.msra.mxu0 %v2904_v23 }
 0x52c   : > { %2909 = vmatprep.subr.bf16.mxu0 %v2908_v40 }
 0x52f   : > { %2911 = vmatpush3.bf16.msra.mxu0 %v2908_v40 }
 0x5f5   : > { %v2841_v53 = vpop.f32.mrb[14].mxu0 }
 0x5f6   : > { %v2193_v54 = vadd.f32 %v2841_v53, %v2661_v52  ;;  %v2187_v55 = vpop.f32.mrb[15].mxu0 }
 0x5f7   : > { %v2188_v56 = vadd.f32 %v2661_v52, %v2187_v55 }
 0x5f8   : > { %v2197_v57 = vadd.f32 %v2193_v54, %v3147_v9 }
 0x5f9   : > { %v2196_v58 = vadd.f32 %v2188_v56, %v3143_v7 }
 0x5fa   : > { %v2203_v59 = vsel %vm647_vm1, %v2197_v57, 0.0 }
 0x5fb   : > { %2204 = vadd.xlane.f32.xlu1 %v2203_v59  ;;  %v2200_v60 = vsel %vm647_vm1, %v2196_v58, 0.0 }
 0x5fc   : > { %2201 = vadd.xlane.f32.xlu0 %v2200_v60 }
 0x688   : > { %v2205_v61 = vpop.xlane.xlu1 %2204 }
 0x689   : > { %v2208_v62 = vmul.f32 0.03125, %v2205_v61  ;;  %v2202_v15 = vpop.xlane.xlu0 %2201 }
 0x68a   : > { %v2207_v63 = vmul.f32 0.03125, %v2202_v15 }
 0x68b   : > { %v2210_v0 = vsub.f32 %v2197_v57, %v2208_v62 }
 0x68c   : > { %v2209_v1 = vsub.f32 %v2196_v58, %v2207_v63 }
 0x68d   : > { %v2212_v9 = vmul.f32 %v2210_v0, %v2210_v0 }
 0x68e   : > { %v2211_v2 = vmul.f32 %v2209_v1, %v2209_v1 }
 0x68f   : > { %v2216_v3 = vsel %vm647_vm1, %v2212_v9, 0.0 }
 0x690   : > { %v2213_v7 = vsel %vm647_vm1, %v2211_v2, 0.0 }
 0x691   : > { %2214 = vadd.xlane.f32.xlu0 %v2213_v7 }
 0x695   : > { %2217 = vadd.xlane.f32.xlu0 %v2216_v3 }
 0x71e   : > { %v2215_v24 = vpop.xlane.xlu0 %2214 }
 0x71f   : > { %v2219_v25 = vmul.f32 0.03125, %v2215_v24 }
 0x721   : > { %v2221_v26 = vadd.f32 1e-05, %v2219_v25 }
 0x722   : > { %v2218_v27 = vpop.xlane.xlu0 %2217 }
 0x723   : > { %2968 = vrsqrt.f32 %v2221_v26  ;;  %v2220_v14 = vmul.f32 0.03125, %v2218_v27 }
 0x725   : > { %v2222_v10 = vadd.f32 1e-05, %v2220_v14 }
 0x727   : > { %2970 = vrsqrt.f32 %v2222_v10 }
 0x72d   : > { %v2969_v28 = vpop.eup %2968 }
 0x72e   : > { %v2225_v30 = vmul.f32 %v2969_v28, %v2209_v1 }
 0x730   : > { %v2233_v32 = vmul.f32 %v2664_v29, %v2225_v30 }
 0x731   : > { %v2971_v33 = vpop.eup %2970 }
 0x732   : > { %v2226_v34 = vmul.f32 %v2971_v33, %v2210_v0  ;;  %v2241_v35 = vadd.f32 %v2665_v31, %v2233_v32 }
 0x734   : > { %v2234_v36 = vmul.f32 %v2664_v29, %v2226_v34  ;;  %2850 = vmatprep.mubr.msk.f32.mxu1 %vm647_vm1, %v2241_v35 }
 0x736   : > { %v2242_v37 = vadd.f32 %v2665_v31, %v2234_v36 }
 0x738   : > { %2851 = vmatmul.mubr.msk.f32.vlgmr.msra.gmra.mrb[20].mxu1 %vm647_vm1, %v2242_v37 }
 0x80b   : > { %v2852_v42 = vpop.f32.mrb[20].mxu1 }
 0x80c   : > { %v2332_v43 = vadd.f32 %v2852_v42, %v2666_v41  ;;  %v2326_v44 = vpop.f32.mrb[21].mxu1 }
 0x80d   : > { %v2327_v45 = vadd.f32 %v2666_v41, %v2326_v44 }
 0x80e   : > { %v2336_v47 = vmax.f32 %v2332_v43, 0.0 }
 0x80f   : > { %v2335_v46 = vmax.f32 %v2327_v45, 0.0 }
 0x811   : > { %2869 = vmatprep.mubr.msk.f32.mxu0 %vm2352_vm7, %v2335_v46 }
 0x812   : > { %2870 = vmatmul.mubr.msk.f32.vlgmr.msra.gmra.mrb[16].mxu0 %vm2352_vm7, %v2336_v47 }
 0x8e5   : > { %v2871_v49 = vpop.f32.mrb[16].mxu0 }
 0x8e6   : > { %v2431_v50 = vadd.f32 %v2871_v49, %v2669_v48  ;;  %v2425_v51 = vpop.f32.mrb[17].mxu0 }
 0x8e7   : > { %v2426_v52 = vadd.f32 %v2669_v48, %v2425_v51 }
 0x8e8   : > { %v2435_v53 = vadd.f32 %v2431_v50, %v2242_v37 }
 0x8e9   : > { %v2434_v54 = vadd.f32 %v2426_v52, %v2241_v35 }
 0x8ea   : > { %v2441_v55 = vsel %vm647_vm1, %v2435_v53, 0.0 }
 0x8eb   : > { %2442 = vadd.xlane.f32.xlu0 %v2441_v55  ;;  %v2438_v56 = vsel %vm647_vm1, %v2434_v54, 0.0 }
 0x8ec   : > { %2439 = vadd.xlane.f32.xlu1 %v2438_v56 }
 0x978   : > { %v2443_v57 = vpop.xlane.xlu0 %2442 }
 0x979   : > { %v2445_v58 = vmul.f32 0.03125, %v2443_v57  ;;  %v2440_v59 = vpop.xlane.xlu1 %2439 }
 0x97a   : > { %v2444_v60 = vmul.f32 0.03125, %v2440_v59 }
 0x97b   : > { %v2447_v61 = vsub.f32 %v2435_v53, %v2445_v58 }
 0x97c   : > { %v2446_v62 = vsub.f32 %v2434_v54, %v2444_v60 }
 0x97d   : > { %v2449_v15 = vmul.f32 %v2447_v61, %v2447_v61 }
 0x97e   : > { %v2448_v63 = vmul.f32 %v2446_v62, %v2446_v62 }
 0x97f   : > { %v2453_v0 = vsel %vm647_vm1, %v2449_v15, 0.0 }
 0x980   : > { %2454 = vadd.xlane.f32.xlu0 %v2453_v0  ;;  %v2450_v1 = vsel %vm647_vm1, %v2448_v63, 0.0 }
 0x981   : > { %2451 = vadd.xlane.f32.xlu1 %v2450_v1 }
 0xa0d   : > { %v2455_v2 = vpop.xlane.xlu0 %2454 }
 0xa0e   : > { %v2457_v7 = vmul.f32 0.03125, %v2455_v2  ;;  %v2452_v9 = vpop.xlane.xlu1 %2451 }
 0xa0f   : > { %v2456_v3 = vmul.f32 0.03125, %v2452_v9 }
 0xa10   : > { %v2459_v4 = vadd.f32 1e-05, %v2457_v7 }
 0xa11   : > { %v2458_v5 = vadd.f32 1e-05, %v2456_v3 }
 0xa12   : > { %2972 = vrsqrt.f32 %v2459_v4 }
 0xa13   : > { %2974 = vrsqrt.f32 %v2458_v5 }
 0xa1c   : > { %v2973_v6 = vpop.eup %2972 }
 0xa1d   : > { %v2975_v11 = vpop.eup %2974  ;;  %v2463_v12 = vmul.f32 %v2973_v6, %v2447_v61 }
 0xa1e   : > { %v2462_v16 = vmul.f32 %v2975_v11, %v2446_v62 }
 0xa1f   : > { %v2471_v17 = vmul.f32 %v2672_v8, %v2463_v12 }
 0xa20   : > { %v2470_v18 = vmul.f32 %v2672_v8, %v2462_v16 }
 0xa21   : > { %v2479_v19 = vadd.f32 %v2673_v13, %v2471_v17 }
 0xa22   : > { %v2478_v20 = vadd.f32 %v2673_v13, %v2470_v18 }
 0xa23   : > { %2481 = vst.msk [vmem:[#allocation2 + $0x8] sm:$0xff] %vm647_vm1, %v2479_v19  ;;  %2483 = vst.msk [vmem:[%s3419_s4 + $0x8] sm:$0xff] %vm647_vm1, %v2479_v19 }
 0xa24   : > { %2480 = vst.msk [vmem:[#allocation2] sm:$0xff] %vm647_vm1, %v2478_v20  ;;  %2482 = vst.msk [vmem:[%s3419_s4] sm:$0xff] %vm647_vm1, %v2478_v20 }
 0xa25 PF: > { %s3420_s1 = sld [smem:[#allocation4_spill]] }
 0xa2b   : > { %s24_s29 = sadd.s32 1, %s3420_s1  }
 0xa2c   : > { %p21_p5 = scmp.ge.s32.totalorder %s24_s29, 4  }
 0xa2e   :  { %23 = sbr.rel (!%p21_p5) target bundleno = 6 (0x6), region = 140 }

// kernel: transformer_forward.4
= control target key start
LH: loop header
LB: loop body
LE: loop exit
PB: predicated region body
PF: predicated region fallthrough
CT: control target
= control target key end

     0   :  { %s6174_s0 = inlined_call_operand.vmem [shape: f32[16,32], index: 0, kind: input, shape index: {}]   ;;  %s6175_s1 = inlined_call_operand.vmem [shape: f32[16,32], index: 1, kind: input, shape index: {}]   ;;  %s6176_s2 = inlined_call_operand.vmem [shape: f32[2,8,8], index: 2, kind: input, shape index: {}]   ;;  %s6177_s3 = inlined_call_operand.vmem [shape: f32[2,8,8], index: 3, kind: input, shape index: {}]   ;;  %s6178_s4 = inlined_call_operand.vmem [shape: f32[2,32,96], index: 4, kind: input, shape index: {}]   ;;  %s6179_s5 = inlined_call_operand.vmem [shape: f32[2,1,96], index: 5, kind: input, shape index: {}]   ;;  %s6180_s6 = inlined_call_operand.vmem [shape: f32[2,32,32], index: 6, kind: input, shape index: {}]   ;;  %s6181_s7 = inlined_call_operand.vmem [shape: f32[2,1,32], index: 7, kind: input, shape index: {}]   ;;  %s6182_s8 = inlined_call_operand.vmem [shape: f32[2,1,32], index: 8, kind: input, shape index: {}]   ;;  %s6183_s9 = inlined_call_operand.vmem [shape: f32[2,1,32], index: 9, kind: input, shape index: {}]   ;;  %s6184_s10 = inlined_call_operand.vmem [shape: f32[2,32,32], index: 10, kind: input, shape index: {}]   ;;  %s6185_s11 = inlined_call_operand.vmem [shape: f32[2,1,32], index: 11, kind: input, shape index: {}]   ;;  %s6186_s12 = inlined_call_operand.vmem [shape: f32[2,32,64], index: 12, kind: input, shape index: {}]   ;;  %s6187_s13 = inlined_call_operand.vmem [shape: f32[2,1,64], index: 13, kind: input, shape index: {}]   ;;  %s6188_s14 = inlined_call_operand.vmem [shape: f32[2,32,32], index: 14, kind: input, shape index: {}]   ;;  %s6189_s15 = inlined_call_operand.vmem [shape: f32[2,1,32], index: 15, kind: input, shape index: {}]   ;;  %s6190_s16 = inlined_call_operand.vmem [shape: f32[2,1,32], index: 16, kind: input, shape index: {}]   ;;  %s6191_s17 = inlined_call_operand.vmem [shape: f32[2,1,32], index: 17, kind: input, shape index: {}]   ;;  %s6192_s18 = inlined_call_operand.vmem [shape: f32[2,32,64], index: 18, kind: input, shape index: {}]   ;;  %s6193_s19 = inlined_call_operand.vmem [shape: f32[2,1,64], index: 19, kind: input, shape index: {}]   ;;  %s6194_s20 = inlined_call_operand.vmem [shape: f32[2,64,32], index: 20, kind: input, shape index: {}]   ;;  %s6195_s21 = inlined_call_operand.vmem [shape: f32[2,1,32], index: 21, kind: input, shape index: {}]   ;;  %s6196_s22 = inlined_call_operand.vmem [shape: f32[2,1,32], index: 22, kind: input, shape index: {}]   ;;  %s6197_s23 = inlined_call_operand.vmem [shape: f32[2,1,32], index: 23, kind: input, shape index: {}]   ;;  %s6198_s24 = inlined_call_operand.vmem [shape: f32[16,32], index: 24, kind: output, shape index: {}]  }
   0x1   :  { %6207 = sst [smem:[#allocation7_spill]] %s6174_s0 }
   0x2   :  { %6208 = sst [smem:[#allocation8_spill]] %s6175_s1 }
   0x3   :  { %6209 = sst [smem:[#allocation9_spill]] %s6176_s2 }
   0x4   :  { %6210 = sst [smem:[#allocation10_spill]] %s6177_s3 }
   0x5   :  { %6211 = sst [smem:[#allocation11_spill]] %s6178_s4 }
   0x6   :  { %6212 = sst [smem:[#allocation12_spill]] %s6179_s5  ;;  %s5567_s5 = smov 0  }
   0x7   :  { %6213 = sst [smem:[#allocation13_spill]] %s6180_s6 }
   0x8   :  { %6214 = sst [smem:[#allocation14_spill]] %s6181_s7 }
   0x9   :  { %6215 = sst [smem:[#allocation15_spill]] %s6182_s8 }
   0xa   :  { %6216 = sst [smem:[#allocation16_spill]] %s6184_s10 }
   0xb   :  { %6217 = sst [smem:[#allocation17_spill]] %s6186_s12 }
   0xc   :  { %6218 = sst [smem:[#allocation18_spill]] %s6188_s14 }
   0xd   :  { %6219 = sst [smem:[#allocation19_spill]] %s6190_s16 }
   0xe   :  { %6220 = sst [smem:[#allocation20_spill]] %s6191_s17 }
   0xf   :  { %6221 = sst [smem:[#allocation21_spill]] %s6192_s18 }
  0x10   :  { %6222 = sst [smem:[#allocation22_spill]] %s6195_s21 }
  0x11   :  { %6223 = sst [smem:[#allocation23_spill]] %s6196_s22 }
  0x12   :  { %6224 = sst [smem:[#allocation24_spill]] %s6197_s23 }
  0x13   :  { %6225 = sst [smem:[#allocation25_spill]] %s6198_s24 }
  0x14 LB: > { %6226 = sst [smem:[#allocation4_spill]] %s5424_s5  ;;  %s5573_s26 = sadd.s32 4294967295, %s5424_s5   ;;  %s5424_s5 = sphi %s5567_s5, %s34_s5  }
  0x15   : > { %6227 = sst [smem:[#allocation5_spill]] %s5573_s26  ;;  %p4797_p0 = scmp.ge.s32.totalorder %s5424_s5, 1 }
  0x16   : > { %p821_p1 = scmp.lt.s32.totalorder %s5424_s5, 3 }
  0x18   : > { %p822_p2 = pnand %p4797_p0, %p821_p1 }
  0x1a   : > { %825 = sbr.rel (%p822_p2) target bundleno = 4423 (0x1147), region = 116 }
  0x21   : > { %p951_p3 = scmp.lt.s32.totalorder %s5573_s26, 1  ;;  %s6229_s3 = sld [smem:[#allocation11_spill]] }
  0x22   : > { %s6231_s1 = sld [smem:[#allocation13_spill]]  ;;  %s6234_s10 = sld [smem:[#allocation16_spill]] }
  0x23   : > { %s5579_s27 = scalar_select %p951_p3, %s5573_s26, 1 }
  0x24   : > { %s6235_s12 = sld [smem:[#allocation17_spill]]  ;;  %s6236_s14 = sld [smem:[#allocation18_spill]] }
  0x25   : > { %s4892_s28 = sshll.u32 %s5579_s27, 5  ;;  %s6239_s18 = sld [smem:[#allocation21_spill]] }
  0x26   : > { %s6240_s24 = sld [smem:[#allocation22_spill]]  ;;  %s6243_s30 = sld [smem:[#allocation5_spill]] }
  0x27   : > { %s5589_s25 = scalar_lea.vmem %s6229_s3, %s4892_s28 }
  0x28   : > { %6230 = sst [smem:[#allocation6_spill]] %s5589_s25  ;;  %s5594_s5 = scalar_lea.vmem %s6231_s1, %s4892_s28 }
  0x29   : > { %s5611_s8 = scalar_lea.vmem %s6234_s10, %s4892_s28 }
  0x2a   : > { %s5620_s21 = scalar_lea.vmem %s6235_s12, %s4892_s28  ;;  %s5629_s29 = scalar_lea.vmem %s6236_s14, %s4892_s28 }
  0x2b   : > { %s5646_s2 = scalar_lea.vmem %s6239_s18, %s4892_s28  ;;  %s4898_s14 = sshll.u32 %s5579_s27, 6 }
  0x2c   : > { %s5656_s22 = scalar_lea.vmem %s6194_s20, %s4898_s14  ;;  %s1018_s23 = scalar_lea.vmem %s6240_s24, %s5579_s27 }
  0x2d   : > { %p4812_p4 = scmp.ne.s32.totalorder %s6243_s30, 0 }
  0x2e   : > { %s6244_s25 = sld [smem:[#allocation7_spill]] (!%p4812_p4)  ;;  %vm1031_vm0 = vcmask (!%p4812_p4), 261120  }
  0x2f   : > { %1028 = sbr.rel (%p4812_p4) target bundleno = 54 (0x36), region = 120 }
  0x34   : > { %v1029_v0 = vld [vmem:[%s6244_s25] sm:$0xff] (!%p4812_p4)  ;;  %v1030_v1 = vld [vmem:[%s6244_s25 + $0x8] sm:$0xff] (!%p4812_p4) }
  0x35   : > { %1032 = vst.msk [vmem:[#allocation2] sm:$0xff] (!%p4812_p4), %vm1031_vm0, %v1029_v0  ;;  %1033 = vst.msk [vmem:[#allocation2 + $0x8] sm:$0xff] (!%p4812_p4), %vm1031_vm0, %v1030_v1 }
  0x36 PF: > { %s6245_s10 = sld [smem:[#allocation6_spill]]  ;;  %vm1047_vm1 = vcmask 261120   ;;  %v5426_v10 = vmov 0.0   ;;  %vm5427_vm2 = vmmov 0   ;;  %s6246_s24 = sld [smem:[#allocation12_spill]]  ;;  %vm1133_vm3 = vcmask 64512  }
  0x37   : > { %5030 = vmatprep.subr.mxu0 %v5426_v10  ;;  %5032 = vmatprep.mubr.msk.f32.mxu0 %vm5427_vm2, %v5426_v10  ;;  %s5428_s4 = smov 120   ;;  %s5429_s1 = smov 96   ;;  %vm1469_vm4 = vcmask 130112   ;;  %vm1642_vm5 = vcmask 195712   ;;  %vm1815_vm6 = vcmask 261312   ;;  %vm4445_vm7 = vcmask 523264  }
  0x38   : > { %s5430_s26 = smov 80   ;;  %s5431_s28 = smov 88  }
  0x39   : > { %s5432_s6 = smov 72   ;;  %s5433_s30 = smov 112  }
  0x3a   : > { %s5434_s7 = smov 104   ;;  %s5435_s14 = smov 56  }
  0x3b   : > { %s5436_s3 = smov 64   ;;  %s6248_s18 = sld [smem:[#allocation9_spill]] }
  0x3c   : > { %v1036_v2 = vld [vmem:[%s6245_s10] sm:$0xff]  ;;  %v1037_v3 = vld [vmem:[%s6245_s10 + $0x8] sm:$0xff]  ;;  %v1038_v4 = vld [vmem:[%s6245_s10 + $0x10] sm:$0xff]  ;;  %s6247_s0 = scalar_lea.vmem %s6246_s24, %s5579_s27  ;;  %s5438_s17 = smov 48  }
  0x3d   : > { %v5254_v5 = vpack.c.bf16 %v1037_v3, %v1036_v2  ;;  %v1039_v6 = vld [vmem:[%s6245_s10 + $0x18] sm:$0xff]  ;;  %v5681_v7 = vld [vmem:[#allocation2] sm:$0xff]  ;;  %v5685_v9 = vld [vmem:[#allocation2 + $0x8] sm:$0xff]  ;;  %s5437_s10 = smov 40   ;;  %s5441_s24 = smov 24  }
  0x3e   : > { %v5258_v8 = vpack.c.bf16 %v1039_v6, %v1038_v4  ;;  %5017 = vmatprep.mubr.msk.f32.mxu1 %vm1047_vm1, %v5681_v7  ;;  %v4813_v11 = vld [vmem:[%s6247_s0] ss:$0 sm:$0xff]  ;;  %s6254_s12 = scalar_lea.vmem %s6183_s9, %s5579_s27  ;;  %s6256_s0 = scalar_lea.vmem %s6185_s11, %s5579_s27 }
  0x3f   : > { %5255 = vmatprep.subr.bf16.mxu1 %v5254_v5  ;;  %s6265_s16 = sld [smem:[#allocation23_spill]] }
  0x40   : > { %5257 = vmatpush3.bf16.msra.mxu1 %v5254_v5 }
  0x41   : > { %5259 = vmatprep.subr.bf16.mxu1 %v5258_v8  ;;  %v1129_v32 = vld [vmem:[%s6248_s18] sm:$0xff]  ;;  %v4828_v52 = vld [vmem:[%s6248_s18 + $0x8] sm:$0xff] }
  0x44   : > { %5261 = vmatpush3.bf16.msra.mxu1 %v5258_v8 }
  0x45   : > { %5020 = vmatprep.subr.mxu1 %v5426_v10 }
  0x47   : > { %5018 = vmatmul.mubr.msk.f32.vlgmr.msra.gmra.mrb[0].mxu1 %vm1047_vm1, %v5685_v9 }
  0x48   : > { %5022 = vmatprep.mubr.msk.f32.mxu1 %vm5427_vm2, %v5426_v10 }
 0x11a   : > { %v5019_v12 = vpop.f32.mrb[0].mxu1 }
 0x11b   : > { %v1120_v13 = vpop.f32.mrb[1].mxu1  ;;  %v5714_v15 = vadd.f32 %v5019_v12, %v4813_v11 }
 0x11c   : > { %v5700_v14 = vadd.f32 %v4813_v11, %v1120_v13 }
 0x11e   : > { %1298 = vrot.lane.b32.xlu1 %v5700_v14, %s5428_s4  ;;  %1131 = vrot.lane.b32.xlu0 %v5700_v14, %s5429_s1 }
 0x122   : > { %1473 = vrot.lane.b32.xlu1 %v5700_v14, %s5430_s26  ;;  %1300 = vrot.lane.b32.xlu0 %v5700_v14, %s5431_s28 }
 0x126   : > { %1646 = vrot.lane.b32.xlu1 %v5700_v14, %s5432_s6  ;;  %1471 = vrot.lane.b32.xlu0 %v5700_v14, %s5433_s30 }
 0x12a   : > { %1820 = vrot.lane.b32.xlu1 %v5714_v15, %s5429_s1  ;;  %1644 = vrot.lane.b32.xlu0 %v5700_v14, %s5434_s7 }
 0x12e   : > { %1986 = vrot.lane.b32.xlu1 %v5714_v15, %s5428_s4  ;;  %1988 = vrot.lane.b32.xlu0 %v5714_v15, %s5431_s28 }
 0x132   : > { %2158 = vrot.lane.b32.xlu1 %v5714_v15, %s5433_s30  ;;  %2160 = vrot.lane.b32.xlu0 %v5714_v15, %s5430_s26 }
 0x136   : > { %2330 = vrot.lane.b32.xlu1 %v5714_v15, %s5434_s7  ;;  %2332 = vrot.lane.b32.xlu0 %v5714_v15, %s5432_s6 }
 0x13a   : > { %1389 = vrot.lane.b32.xlu1 %v5700_v14, %s5435_s14  ;;  %1221 = vrot.lane.b32.xlu0 %v5700_v14, %s5436_s3 }
 0x190   : > { %v1299_v16 = vpop.permute.xlu1 %1298  ;;  %v1132_v17 = vpop.permute.xlu0 %1131 }
 0x191   : > { %5021 = vmatpush3.xpose.msk.msra.mxu1 %vm1133_vm3, %v1132_v17 }
 0x192   : > { %5025 = vmatprep.subr.mxu1 %v5426_v10 }
 0x194   : > { %v1474_v18 = vpop.permute.xlu1 %1473  ;;  %5023 = vmatmul.mubr.msk.f32.vlgmr.msra.gmra.mrb[2].mxu1 %vm1133_vm3, %v5700_v14  ;;  %v1301_v19 = vpop.permute.xlu0 %1300 }
 0x195   : > { %5031 = vmatpush3.xpose.msk.msra.mxu0 %vm1133_vm3, %v1301_v19  ;;  %5027 = vmatprep.mubr.msk.f32.mxu1 %vm5427_vm2, %v5426_v10 }
 0x196   : > { %5040 = vmatprep.subr.mxu0 %v5426_v10 }
 0x198   : > { %v1647_v20 = vpop.permute.xlu1 %1646  ;;  %5033 = vmatmul.mubr.msk.f32.vlgmr.msra.gmra.mrb[0].mxu0 %vm1133_vm3, %v1299_v16  ;;  %v1472_v21 = vpop.permute.xlu0 %1471 }
 0x199   : > { %5041 = vmatpush3.xpose.msk.msra.mxu0 %vm1133_vm3, %v1474_v18  ;;  %5042 = vmatprep.mubr.msk.f32.mxu0 %vm5427_vm2, %v5426_v10 }
 0x19a   : > { %5050 = vmatprep.subr.mxu0 %v5426_v10 }
 0x19c   : > { %5043 = vmatmul.mubr.msk.f32.vlgmr.msra.gmra.mrb[2].mxu0 %vm1133_vm3, %v1472_v21  ;;  %v1645_v22 = vpop.permute.xlu0 %1644  ;;  %v1821_v23 = vpop.permute.xlu1 %1820 }
 0x19d   : > { %5051 = vmatpush3.xpose.msk.msra.mxu0 %vm1133_vm3, %v1647_v20  ;;  %5052 = vmatprep.mubr.msk.f32.mxu0 %vm5427_vm2, %v5426_v10 }
 0x19e   : > { %5060 = vmatprep.subr.mxu0 %v5426_v10 }
 0x1a0   : > { %5053 = vmatmul.mubr.msk.f32.vlgmr.msra.gmra.mrb[4].mxu0 %vm1133_vm3, %v1645_v22  ;;  %v1989_v24 = vpop.permute.xlu0 %1988  ;;  %v1987_v25 = vpop.permute.xlu1 %1986 }
 0x1a1   : > { %5061 = vmatpush3.xpose.msk.msra.mxu0 %vm1133_vm3, %v1821_v23  ;;  %5062 = vmatprep.mubr.msk.f32.mxu0 %vm5427_vm2, %v5426_v10 }
 0x1a2   : > { %5070 = vmatprep.subr.mxu0 %v5426_v10 }
 0x1a4   : > { %5063 = vmatmul.mubr.msk.f32.vlgmr.msra.gmra.mrb[6].mxu0 %vm1133_vm3, %v5714_v15  ;;  %v2161_v26 = vpop.permute.xlu0 %2160  ;;  %v2159_v28 = vpop.permute.xlu1 %2158 }
 0x1a5   : > { %5071 = vmatpush3.xpose.msk.msra.mxu0 %vm1133_vm3, %v1989_v24  ;;  %5072 = vmatprep.mubr.msk.f32.mxu0 %vm5427_vm2, %v5426_v10 }
 0x1a6   : > { %5080 = vmatprep.subr.mxu0 %v5426_v10 }
 0x1a8   : > { %5073 = vmatmul.mubr.msk.f32.vlgmr.msra.gmra.mrb[8].mxu0 %vm1133_vm3, %v1987_v25  ;;  %v2333_v27 = vpop.permute.xlu0 %2332  ;;  %v2331_v30 = vpop.permute.xlu1 %2330 }
 0x1a9   : > { %5081 = vmatpush3.xpose.msk.msra.mxu0 %vm1133_vm3, %v2161_v26  ;;  %5082 = vmatprep.mubr.msk.f32.mxu0 %vm5427_vm2, %v5426_v10 }
 0x1aa   : > { %5090 = vmatprep.subr.mxu0 %v5426_v10 }
 0x1ac   : > { %5083 = vmatmul.mubr.msk.f32.vlgmr.msra.gmra.mrb[10].mxu0 %vm1133_vm3, %v2159_v28  ;;  %v1222_v29 = vpop.permute.xlu0 %1221  ;;  %v5794_v12 = vpop.permute.xlu1 %1389 }
 0x1ad   : > { %5026 = vmatpush3.msra.mxu1 %v1222_v29  ;;  %5091 = vmatpush3.xpose.msk.msra.mxu0 %vm1133_vm3, %v2333_v27 }
 0x1ae   : > { %5092 = vmatprep.mubr.msk.f32.mxu0 %vm5427_vm2, %v5426_v10  ;;  %5035 = vmatprep.subr.mxu1 %v5426_v10 }
 0x1b0   : > { %5093 = vmatmul.mubr.msk.f32.vlgmr.msra.gmra.mrb[12].mxu0 %vm1133_vm3, %v2331_v30 }
 0x267   : > { %v1204_v31 = vpop.f32.mrb[2].mxu1 }
 0x268   : > { %v1208_v33 = vmul.f32 0.35355338, %v1204_v31  ;;  %v5024_v34 = vpop.f32.mrb[3].mxu1 }
 0x26a   : > { %v1209_v35 = vadd.f32 %v1208_v33, %v1129_v32 }
 0x26b   : > { %v1372_v36 = vpop.f32.mrb[0].mxu0 }
 0x26c   : > { %v1376_v37 = vmul.f32 0.35355338, %v1372_v36  ;;  %v5034_v38 = vpop.f32.mrb[1].mxu0  ;;  %v1210_v39 = vsel %vm1133_vm3, %v1209_v35, -inf }
 0x26d   : > { %1211 = vmax.xlane.f32.xlu0 %v1210_v39 }
 0x26e   : > { %v1377_v40 = vadd.f32 %v1376_v37, %v1129_v32 }
 0x26f   : > { %v1545_v41 = vpop.f32.mrb[2].mxu0 }
 0x270   : > { %v1549_v42 = vmul.f32 0.35355338, %v1545_v41  ;;  %v5044_v43 = vpop.f32.mrb[3].mxu0  ;;  %v1378_v44 = vsel %vm1133_vm3, %v1377_v40, -inf }
 0x271   : > { %1379 = vmax.xlane.f32.xlu1 %v1378_v44 }
 0x272   : > { %v1550_v45 = vadd.f32 %v1549_v42, %v1129_v32 }
 0x273   : > { %v1718_v46 = vpop.f32.mrb[4].mxu0 }
 0x274   : > { %v1722_v47 = vmul.f32 0.35355338, %v1718_v46  ;;  %v5054_v48 = vpop.f32.mrb[5].mxu0  ;;  %v1551_v49 = vsel %vm1133_vm3, %v1550_v45, -inf }
 0x275   : > { %1552 = vmax.xlane.f32.xlu0 %v1551_v49 }
 0x276   : > { %v1723_v50 = vadd.f32 %v1722_v47, %v1129_v32 }
 0x277   : > { %v1892_v51 = vpop.f32.mrb[6].mxu0 }
 0x278   : > { %v1896_v53 = vmul.f32 0.35355338, %v1892_v51  ;;  %v5064_v54 = vpop.f32.mrb[7].mxu0  ;;  %v1724_v55 = vsel %vm1133_vm3, %v1723_v50, -inf }
 0x279   : > { %1725 = vmax.xlane.f32.xlu0 %v1724_v55 }
 0x27a   : > { %v1897_v56 = vadd.f32 %v4828_v52, %v1896_v53 }
 0x27b   : > { %v2060_v57 = vpop.f32.mrb[8].mxu0 }
 0x27c   : > { %v2064_v58 = vmul.f32 0.35355338, %v2060_v57  ;;  %v5074_v59 = vpop.f32.mrb[9].mxu0  ;;  %v1898_v60 = vsel %vm1133_vm3, %v1897_v56, -inf }
 0x27d   : > { %1899 = vmax.xlane.f32.xlu1 %v1898_v60 }
 0x27e   : > { %v2065_v61 = vadd.f32 %v4828_v52, %v2064_v58 }
 0x27f   : > { %v2232_v62 = vpop.f32.mrb[10].mxu0 }
 0x280   : > { %v2236_v63 = vmul.f32 0.35355338, %v2232_v62  ;;  %v5084_v0 = vpop.f32.mrb[11].mxu0  ;;  %v2066_v1 = vsel %vm1133_vm3, %v2065_v61, -inf }
 0x281   : > { %2067 = vmax.xlane.f32.xlu0 %v2066_v1 }
 0x282   : > { %v2237_v2 = vadd.f32 %v4828_v52, %v2236_v63 }
 0x283   : > { %v2404_v3 = vpop.f32.mrb[12].mxu0 }
 0x284   : > { %v2408_v4 = vmul.f32 0.35355338, %v2404_v3  ;;  %v5094_v5 = vpop.f32.mrb[13].mxu0  ;;  %v2238_v6 = vsel %vm1133_vm3, %v2237_v2, -inf }
 0x285   : > { %2239 = vmax.xlane.f32.xlu1 %v2238_v6 }
 0x286   : > { %v2409_v8 = vadd.f32 %v4828_v52, %v2408_v4 }
 0x288   : > { %v2410_v11 = vsel %vm1133_vm3, %v2409_v8, -inf }
 0x289   : > { %2411 = vmax.xlane.f32.xlu0 %v2410_v11 }
 0x296   : > { %1735 = vrot.lane.b32.xlu1 %v5700_v14, %s5437_s10 }
 0x29f   : > { %1562 = vrot.lane.b32.xlu0 %v5700_v14, %s5438_s17 }
 0x2fa   : > { %v1212_v13 = vpop.xlane.xlu0 %1211 }
 0x2fb   : > { %v1213_v16 = vsub.f32 %v1209_v35, %v1212_v13 }
 0x2fd   : > { %v1214_v17 = vmul.f32 1.442695, %v1213_v16 }
 0x2fe   : > { %v1380_v18 = vpop.xlane.xlu1 %1379 }
 0x2ff   : > { %5342 = vpow2.f32 %v1214_v17  ;;  %v1381_v19 = vsub.f32 %v1377_v40, %v1380_v18 }
 0x301   : > { %v1382_v20 = vmul.f32 1.442695, %v1381_v19 }
 0x302   : > { %v1553_v21 = vpop.xlane.xlu0 %1552 }
 0x303   : > { %5344 = vpow2.f32 %v1382_v20  ;;  %v1554_v22 = vsub.f32 %v1550_v45, %v1553_v21 }
 0x305   : > { %v1555_v23 = vmul.f32 1.442695, %v1554_v22 }
 0x306   : > { %v1726_v24 = vpop.xlane.xlu0 %1725 }
 0x307   : > { %5346 = vpow2.f32 %v1555_v23  ;;  %v1727_v25 = vsub.f32 %v1723_v50, %v1726_v24 }
 0x309   : > { %v5343_v26 = vpop.eup %5342  ;;  %v1728_v27 = vmul.f32 1.442695, %v1727_v25 }
 0x30a   : > { %v1216_v14 = vsel %vm1133_vm3, %v5343_v26, 0.0  ;;  %v1900_v34 = vpop.xlane.xlu1 %1899 }
 0x30b   : > { %5348 = vpow2.f32 %v1728_v27  ;;  %1217 = vadd.xlane.f32.xlu1 %v1216_v14  ;;  %v1901_v35 = vsub.f32 %v1897_v56, %v1900_v34 }
 0x30d   : > { %v5345_v28 = vpop.eup %5344  ;;  %v1902_v39 = vmul.f32 1.442695, %v1901_v35 }
 0x30e   : > { %v1384_v29 = vsel %vm1133_vm3, %v5345_v28, 0.0  ;;  %v2068_v36 = vpop.xlane.xlu0 %2067 }
 0x30f   : > { %1385 = vadd.xlane.f32.xlu0 %v1384_v29  ;;  %v2069_v38 = vsub.f32 %v2065_v61, %v2068_v36  ;;  %5350 = vpow2.f32 %v1902_v39  ;;  %v2506_v36 = vld [vmem:[%s5594_s5 + $0x10] sm:$0xff] }
 0x311   : > { %v5347_v30 = vpop.eup %5346  ;;  %v2070_v42 = vmul.f32 1.442695, %v2069_v38 }
 0x312   : > { %v1557_v31 = vsel %vm1133_vm3, %v5347_v30, 0.0  ;;  %v2240_v37 = vpop.xlane.xlu1 %2239 }
 0x313   : > { %1558 = vadd.xlane.f32.xlu1 %v1557_v31  ;;  %v2241_v40 = vsub.f32 %v2237_v2, %v2240_v37  ;;  %5352 = vpow2.f32 %v2070_v42  ;;  %v2504_v31 = vld [vmem:[%s5594_s5] sm:$0xff]  ;;  %v2507_v37 = vld [vmem:[%s5594_s5 + $0x18] sm:$0xff] }
 0x314   : > { %v5266_v38 = vpack.c.bf16 %v2507_v37, %v2506_v36 }
 0x315   : > { %v5799_v32 = vpop.eup %5348  ;;  %v2242_v43 = vmul.f32 1.442695, %v2241_v40 }
 0x316   : > { %v1730_v33 = vsel %vm1133_vm3, %v5799_v32, 0.0  ;;  %v2412_v41 = vpop.xlane.xlu0 %2411  ;;  %v1736_v54 = vpop.permute.xlu1 %1735 }
 0x317   : > { %1731 = vadd.xlane.f32.xlu0 %v1730_v33  ;;  %v2413_v44 = vsub.f32 %v2409_v8, %v2412_v41  ;;  %5354 = vpow2.f32 %v2242_v43 }
 0x319   : > { %v2414_v45 = vmul.f32 1.442695, %v2413_v44  ;;  %v5351_v46 = vpop.eup %5350 }
 0x31a   : > { %v1904_v48 = vsel %vm1133_vm3, %v5351_v46, 0.0  ;;  %v1563_v55 = vpop.permute.xlu0 %1562 }
 0x31b   : > { %5356 = vpow2.f32 %v2414_v45 }
 0x31d   : > { %v5807_v47 = vpop.eup %5352 }
 0x31e   : > { %v2072_v51 = vsel %vm1133_vm3, %v5807_v47, 0.0 }
 0x321   : > { %v5810_v49 = vpop.eup %5354 }
 0x322   : > { %v2244_v50 = vsel %vm1133_vm3, %v5810_v49, 0.0 }
 0x324   : > { %2077 = vrot.lane.b32.xlu1 %v5714_v15, %s5435_s14  ;;  %s5439_s14 = smov 8  }
 0x325   : > { %v5816_v52 = vpop.eup %5356 }
 0x326   : > { %v2416_v53 = vsel %vm1133_vm3, %v5816_v52, 0.0 }
 0x32d   : > { %1909 = vrot.lane.b32.xlu0 %v5714_v15, %s5436_s3  ;;  %s5440_s3 = smov 16  }
 0x348   : > { %1905 = vadd.xlane.f32.xlu1 %v1904_v48 }
 0x34c   : > { %2245 = vadd.xlane.f32.xlu1 %v2244_v50  ;;  %2073 = vadd.xlane.f32.xlu0 %v2072_v51 }
 0x350   : > { %2417 = vadd.xlane.f32.xlu1 %v2416_v53 }
 0x361   : > { %2421 = vrot.lane.b32.xlu1 %v5714_v15, %s5437_s10  ;;  %s6249_s10 = sld [smem:[#allocation14_spill]] }
 0x362   : > { %2249 = vrot.lane.b32.xlu0 %v5714_v15, %s5438_s17 }
 0x367   : > { %s6250_s17 = scalar_lea.vmem %s6249_s10, %s5579_s27  ;;  %s6251_s10 = sld [smem:[#allocation8_spill]] }
 0x368   : > { %v4841_v53 = vld [vmem:[%s6250_s17] ss:$0 sm:$0xff] }
 0x398   : > { %v1218_v56 = vpop.xlane.xlu1 %1217 }
 0x399   : > { %5358 = vrcp.f32 %v1218_v56 }
 0x39c   : > { %v1386_v57 = vpop.xlane.xlu0 %1385 }
 0x39d   : > { %5360 = vrcp.f32 %v1386_v57 }
 0x3a0   : > { %v1559_v58 = vpop.xlane.xlu1 %1558 }
 0x3a1   : > { %5362 = vrcp.f32 %v1559_v58 }
 0x3a3   : > { %v5359_v59 = vpop.eup %5358 }
 0x3a4   : > { %v1220_v60 = vmul.f32 %v5359_v59, %v5343_v26  ;;  %v1732_v61 = vpop.xlane.xlu0 %1731  ;;  %v2078_v4 = vpop.permute.xlu1 %2077 }
 0x3a5   : > { %5364 = vrcp.f32 %v1732_v61 }
 0x3a6   : > { %5028 = vmatmul.mubr.msk.f32.vlgmr.msra.gmra.mrb[4].mxu1 %vm1133_vm3, %v1220_v60 }
 0x3a7   : > { %v5361_v62 = vpop.eup %5360  ;;  %5036 = vmatpush3.msra.mxu1 %v5794_v12  ;;  %5037 = vmatprep.mubr.msk.f32.mxu1 %vm5427_vm2, %v5426_v10 }
 0x3a8   : > { %v1388_v15 = vmul.f32 %v5361_v62, %v5345_v28  ;;  %5045 = vmatprep.subr.mxu1 %v5426_v10  ;;  %v1910_v3 = vpop.permute.xlu0 %1909 }
 0x3aa   : > { %5038 = vmatmul.mubr.msk.f32.vlgmr.msra.gmra.mrb[6].mxu1 %vm1133_vm3, %v1388_v15 }
 0x3ab   : > { %v5363_v63 = vpop.eup %5362  ;;  %5046 = vmatpush3.msra.mxu1 %v1563_v55  ;;  %5047 = vmatprep.mubr.msk.f32.mxu1 %vm5427_vm2, %v5426_v10 }
 0x3ac   : > { %v1561_v0 = vmul.f32 %v5363_v63, %v5347_v30  ;;  %5055 = vmatprep.subr.mxu1 %v5426_v10 }
 0x3ae   : > { %5048 = vmatmul.mubr.msk.f32.vlgmr.msra.gmra.mrb[8].mxu1 %vm1133_vm3, %v1561_v0 }
 0x3af   : > { %v5365_v1 = vpop.eup %5364  ;;  %5056 = vmatpush3.msra.mxu1 %v1736_v54  ;;  %5057 = vmatprep.mubr.msk.f32.mxu1 %vm5427_vm2, %v5426_v10 }
 0x3b0   : > { %v1734_v2 = vmul.f32 %v5365_v1, %v5799_v32  ;;  %5065 = vmatprep.subr.mxu1 %v5426_v10  ;;  %v2505_v32 = vld [vmem:[%s5594_s5 + $0x8] sm:$0xff]  ;;  %s6252_s5 = sld [smem:[#allocation15_spill]] }
 0x3b1   : > { %v5262_v34 = vpack.c.bf16 %v2505_v32, %v2504_v31  ;;  %v4845_v32 = vld [vmem:[%s6254_s12] ss:$0 sm:$0xff]  ;;  %s6261_s12 = sld [smem:[#allocation20_spill]] }
 0x3b2   : > { %5058 = vmatmul.mubr.msk.f32.vlgmr.msra.gmra.mrb[10].mxu1 %vm1133_vm3, %v1734_v2 }
 0x3b3   : > { %5066 = vmatpush3.msra.mxu1 %v1910_v3  ;;  %5067 = vmatprep.mubr.msk.f32.mxu1 %vm5427_vm2, %v5426_v10 }
 0x3b4   : > { %5075 = vmatprep.subr.mxu1 %v5426_v10  ;;  %5263 = vmatprep.subr.bf16.mxu0 %v5262_v34 }
 0x3b5   : > { %5265 = vmatpush3.bf16.msra.mxu0 %v5262_v34 }
 0x3b6   : > { %5267 = vmatprep.subr.bf16.mxu0 %v5266_v38 }
 0x3b9   : > { %5269 = vmatpush3.bf16.msra.mxu0 %v5266_v38 }
 0x3d5   : > { %v1906_v5 = vpop.xlane.xlu1 %1905 }
 0x3d6   : > { %5366 = vrcp.f32 %v1906_v5  ;;  %v2737_v5 = vld [vmem:[%s5620_s21] sm:$0xff] }
 0x3d9   : > { %v2246_v6 = vpop.xlane.xlu1 %2245  ;;  %v2074_v8 = vpop.xlane.xlu0 %2073 }
 0x3da   : > { %5368 = vrcp.f32 %v2074_v8 }
 0x3db   : > { %5370 = vrcp.f32 %v2246_v6  ;;  %v2738_v6 = vld [vmem:[%s5620_s21 + $0x8] sm:$0xff] }
 0x3dc   : > { %v5278_v8 = vpack.c.bf16 %v2738_v6, %v2737_v5 }
 0x3dd   : > { %v2418_v11 = vpop.xlane.xlu1 %2417  ;;  %v2250_v19 = vpop.permute.xlu0 %2249 }
 0x3de   : > { %5372 = vrcp.f32 %v2418_v11  ;;  %5279 = vmatprep.subr.bf16.mxu0 %v5278_v8  ;;  %v2739_v11 = vld [vmem:[%s5620_s21 + $0x10] sm:$0xff] }
 0x3e0   : > { %v5367_v12 = vpop.eup %5366 }
 0x3e1   : > { %v1908_v13 = vmul.f32 %v5367_v12, %v5351_v46  ;;  %v2422_v22 = vpop.permute.xlu1 %2421  ;;  %v2740_v12 = vld [vmem:[%s5620_s21 + $0x18] sm:$0xff]  ;;  %s6255_s21 = scalar_lea.vmem %s6187_s13, %s5579_s27 }
 0x3e3   : > { %5068 = vmatmul.mubr.msk.f32.vlgmr.msra.gmra.mrb[12].mxu1 %vm1133_vm3, %v1908_v13  ;;  %v5282_v13 = vpack.c.bf16 %v2740_v12, %v2739_v11 }
 0x3e4   : > { %5076 = vmatpush3.msra.mxu1 %v2078_v4  ;;  %5077 = vmatprep.mubr.msk.f32.mxu1 %vm5427_vm2, %v5426_v10  ;;  %v5369_v16 = vpop.eup %5368 }
 0x3e5   : > { %5085 = vmatprep.subr.mxu1 %v5426_v10  ;;  %v2076_v17 = vmul.f32 %v5369_v16, %v5807_v47  ;;  %v5371_v18 = vpop.eup %5370  ;;  %v2735_v16 = vld [vmem:[%s6251_s10] sm:$0xff] }
 0x3e6   : > { %v2248_v20 = vmul.f32 %v5371_v18, %v5810_v49  ;;  %v2644_v18 = vld [vmem:[%s5611_s8 + $0x8] sm:$0xff] }
 0x3e7   : > { %5078 = vmatmul.mubr.msk.f32.vlgmr.msra.gmra.mrb[14].mxu1 %vm1133_vm3, %v2076_v17  ;;  %v2643_v17 = vld [vmem:[%s5611_s8] sm:$0xff] }
 0x3e8   : > { %5086 = vmatpush3.msra.mxu1 %v2250_v19  ;;  %5087 = vmatprep.mubr.msk.f32.mxu1 %vm5427_vm2, %v5426_v10  ;;  %v5373_v21 = vpop.eup %5372  ;;  %v5270_v19 = vpack.c.bf16 %v2644_v18, %v2643_v17 }
 0x3e9   : > { %5095 = vmatprep.subr.mxu1 %v5426_v10  ;;  %v2420_v23 = vmul.f32 %v5373_v21, %v5816_v52  ;;  %v2645_v21 = vld [vmem:[%s5611_s8 + $0x10] sm:$0xff] }
 0x3eb   : > { %5088 = vmatmul.mubr.msk.f32.vlgmr.msra.gmra.mrb[16].mxu1 %vm1133_vm3, %v2248_v20  ;;  %v2736_v20 = vld [vmem:[%s6251_s10 + $0x8] sm:$0xff] }
 0x3ec   : > { %5096 = vmatpush3.msra.mxu1 %v2422_v22  ;;  %5097 = vmatprep.mubr.msk.f32.mxu1 %vm5427_vm2, %v5426_v10  ;;  %v2646_v22 = vld [vmem:[%s5611_s8 + $0x18] sm:$0xff]  ;;  %s6253_s8 = scalar_lea.vmem %s6252_s5, %s5579_s27 }
 0x3ed   : > { %5271 = vmatprep.subr.bf16.mxu1 %v5270_v19 }
 0x3ef   : > { %5098 = vmatmul.mubr.msk.f32.vlgmr.msra.gmra.mrb[18].mxu1 %vm1133_vm3, %v2420_v23  ;;  %v5274_v23 = vpack.c.bf16 %v2646_v22, %v2645_v21 }
 0x3f0   : > { %5273 = vmatpush3.bf16.msra.mxu1 %v5270_v19 }
 0x3f1   : > { %5275 = vmatprep.subr.bf16.mxu1 %v5274_v23 }
 0x3f4   : > { %5277 = vmatpush3.bf16.msra.mxu1 %v5274_v23 }
 0x3f5   : > { %5133 = vmatprep.subr.mxu1 %v5426_v10 }
 0x479   : > { %v1293_v24 = vpop.f32.mrb[4].mxu1 }
 0x47a   : > { %1297 = vst.msk [vmem:[#allocation3] sm:$0xff] %vm1133_vm3, %v1293_v24  ;;  %v5029_v25 = vpop.f32.mrb[5].mxu1 }
 0x47d   : > { %v1461_v26 = vpop.f32.mrb[6].mxu1 }
 0x47e   : > { %1466 = vrot.lane.b32.xlu0 %v1461_v26, %s5439_s14  ;;  %v5039_v27 = vpop.f32.mrb[7].mxu1 }
 0x481   : > { %v1634_v14 = vpop.f32.mrb[8].mxu1 }
 0x482   : > { %1639 = vrot.lane.b32.xlu1 %v1634_v14, %s5440_s3  ;;  %v5049_v28 = vpop.f32.mrb[9].mxu1 }
 0x485   : > { %v1807_v29 = vpop.f32.mrb[10].mxu1 }
 0x486   : > { %1812 = vrot.lane.b32.xlu1 %v1807_v29, %s5441_s24  ;;  %v5059_v30 = vpop.f32.mrb[11].mxu1 }
 0x487   : > { %v4844_v30 = vld [vmem:[%s6253_s8] ss:$0 sm:$0xff] }
 0x4b6   : > { %v1981_v33 = vpop.f32.mrb[12].mxu1 }
 0x4b7   : > { %1985 = vst.msk [vmem:[#allocation3 + $0x8] sm:$0xff] %vm1133_vm3, %v1981_v33  ;;  %v5069_v35 = vpop.f32.mrb[13].mxu1 }
 0x4ba   : > { %v2149_v39 = vpop.f32.mrb[14].mxu1 }
 0x4bb   : > { %2154 = vrot.lane.b32.xlu0 %v2149_v39, %s5439_s14  ;;  %v5079_v40 = vpop.f32.mrb[15].mxu1  ;;  %v4849_v39 = vld [vmem:[%s6255_s21] ss:$0 sm:$0xff]  ;;  %s6262_s21 = scalar_lea.vmem %s6261_s12, %s5579_s27 }
 0x4be   : > { %v2321_v41 = vpop.f32.mrb[16].mxu1 }
 0x4bf   : > { %2326 = vrot.lane.b32.xlu0 %v2321_v41, %s5440_s3  ;;  %v5089_v42 = vpop.f32.mrb[17].mxu1 }
 0x4c2   : > { %v2493_v43 = vpop.f32.mrb[18].mxu1 }
 0x4c3   : > { %2498 = vrot.lane.b32.xlu1 %v2493_v43, %s5441_s24  ;;  %v5099_v44 = vpop.f32.mrb[19].mxu1 }
 0x4f0   : > { %v1467_v45 = vpop.permute.xlu0 %1466 }
 0x4f1   : > { %1470 = vst.msk [vmem:[#allocation3] sm:$0xff] %vm1469_vm4, %v1467_v45  ;;  %v4846_v45 = vld [vmem:[%s6256_s0] ss:$0 sm:$0xff]  ;;  %s6263_s0 = scalar_lea.vmem %s6193_s19, %s5579_s27 }
 0x4f4   : > { %v1640_v46 = vpop.permute.xlu1 %1639 }
 0x4f5   : > { %1643 = vst.msk [vmem:[#allocation3] sm:$0xff] %vm1642_vm5, %v1640_v46 }
 0x4f8   : > { %v1813_v47 = vpop.permute.xlu1 %1812 }
 0x4f9   : > { %1816 = vst.msk [vmem:[#allocation3] sm:$0xff] %vm1815_vm6, %v1813_v47 }
 0x500   : > { %v2502_v48 = vld [vmem:[#allocation3] sm:$0xff] }
 0x501   : > { %5108 = vmatprep.mubr.msk.f32.mxu0 %vm1047_vm1, %v2502_v48 }
 0x52d   : > { %v2155_v49 = vpop.permute.xlu0 %2154 }
 0x52e   : > { %2157 = vst.msk [vmem:[#allocation3 + $0x8] sm:$0xff] %vm1469_vm4, %v2155_v49 }
 0x531   : > { %v2327_v50 = vpop.permute.xlu0 %2326 }
 0x532   : > { %2329 = vst.msk [vmem:[#allocation3 + $0x8] sm:$0xff] %vm1642_vm5, %v2327_v50 }
 0x535   : > { %v2499_v51 = vpop.permute.xlu1 %2498 }
 0x536   : > { %2501 = vst.msk [vmem:[#allocation3 + $0x8] sm:$0xff] %vm1815_vm6, %v2499_v51 }
 0x53d   : > { %v2503_v52 = vld [vmem:[#allocation3 + $0x8] sm:$0xff] }
 0x53e   : > { %5109 = vmatmul.mubr.msk.f32.vlgmr.msra.gmra.mrb[14].mxu0 %vm1047_vm1, %v2503_v52 }
 0x53f   : > { %5281 = vmatpush3.bf16.msra.mxu0 %v5278_v8  ;;  %5130 = vmatprep.mubr.msk.f32.mxu0 %vm1047_vm1, %v2735_v16 }
 0x540   : > { %5283 = vmatprep.subr.bf16.mxu0 %v5282_v13 }
 0x543   : > { %5285 = vmatpush3.bf16.msra.mxu0 %v5282_v13 }
 0x544   : > { %5143 = vmatprep.subr.mxu0 %v5426_v10 }
 0x546   : > { %5131 = vmatmul.mubr.msk.f32.vlgmr.msra.gmra.mrb[16].mxu0 %vm1047_vm1, %v2736_v20 }
 0x547   : > { %5145 = vmatprep.mubr.msk.f32.mxu0 %vm5427_vm2, %v5426_v10 }
 0x611   : > { %v5110_v54 = vpop.f32.mrb[14].mxu0 }
 0x612   : > { %v2593_v55 = vadd.f32 %v5110_v54, %v4841_v53  ;;  %v2587_v56 = vpop.f32.mrb[15].mxu0 }
 0x613   : > { %v2588_v57 = vadd.f32 %v4841_v53, %v2587_v56 }
 0x614   : > { %v2597_v58 = vadd.f32 %v2593_v55, %v5685_v9 }
 0x615   : > { %v2596_v59 = vadd.f32 %v2588_v57, %v5681_v7 }
 0x616   : > { %v2603_v60 = vsel %vm1047_vm1, %v2597_v58, 0.0 }
 0x617   : > { %2604 = vadd.xlane.f32.xlu1 %v2603_v60  ;;  %v2600_v61 = vsel %vm1047_vm1, %v2596_v59, 0.0 }
 0x618   : > { %2601 = vadd.xlane.f32.xlu0 %v2600_v61 }
 0x619   : > { %v5132_v40 = vpop.f32.mrb[16].mxu0 }
 0x61a   : > { %v5933_v41 = vadd.f32 %v5132_v40, %v4849_v39  ;;  %v2820_v42 = vpop.f32.mrb[17].mxu0 }
 0x61b   : > { %v5935_v43 = vadd.f32 %v4849_v39, %v2820_v42 }
 0x628   : > { %2998 = vrot.lane.b32.xlu1 %v5935_v43, %s5428_s4 }
 0x62c   : > { %3170 = vrot.lane.b32.xlu1 %v5935_v43, %s5433_s30 }
 0x6a4   : > { %v2605_v62 = vpop.xlane.xlu1 %2604 }
 0x6a5   : > { %v2608_v15 = vmul.f32 0.03125, %v2605_v62  ;;  %v2602_v63 = vpop.xlane.xlu0 %2601 }
 0x6a6   : > { %v2607_v0 = vmul.f32 0.03125, %v2602_v63 }
 0x6a7   : > { %v2610_v1 = vsub.f32 %v2597_v58, %v2608_v15 }
 0x6a8   : > { %v2609_v2 = vsub.f32 %v2596_v59, %v2607_v0  ;;  %v2999_v44 = vpop.permute.xlu1 %2998 }
 0x6a9   : > { %v2612_v7 = vmul.f32 %v2610_v1, %v2610_v1  ;;  %5144 = vmatpush3.xpose.msk.msra.mxu0 %vm1133_vm3, %v2999_v44 }
 0x6aa   : > { %v2611_v3 = vmul.f32 %v2609_v2, %v2609_v2  ;;  %5153 = vmatprep.subr.mxu0 %v5426_v10 }
 0x6ab   : > { %v2616_v4 = vsel %vm1047_vm1, %v2612_v7, 0.0 }
 0x6ac   : > { %v2613_v9 = vsel %vm1047_vm1, %v2611_v3, 0.0  ;;  %v3171_v50 = vpop.permute.xlu1 %3170 }
 0x6ad   : > { %2614 = vadd.xlane.f32.xlu0 %v2613_v9 }
 0x6b1   : > { %2617 = vadd.xlane.f32.xlu0 %v2616_v4 }
 0x73a   : > { %v2615_v24 = vpop.xlane.xlu0 %2614 }
 0x73b   : > { %v2619_v25 = vmul.f32 0.03125, %v2615_v24 }
 0x73d   : > { %v2621_v26 = vadd.f32 1e-05, %v2619_v25 }
 0x73e   : > { %v2618_v27 = vpop.xlane.xlu0 %2617 }
 0x73f   : > { %5374 = vrsqrt.f32 %v2621_v26  ;;  %v2620_v14 = vmul.f32 0.03125, %v2618_v27 }
 0x741   : > { %v2622_v28 = vadd.f32 1e-05, %v2620_v14 }
 0x743   : > { %5376 = vrsqrt.f32 %v2622_v28 }
 0x749   : > { %v5375_v29 = vpop.eup %5374 }
 0x74a   : > { %v2625_v31 = vmul.f32 %v5375_v29, %v2609_v2 }
 0x74c   : > { %v2633_v33 = vmul.f32 %v4844_v30, %v2625_v31 }
 0x74d   : > { %v5377_v34 = vpop.eup %5376 }
 0x74e   : > { %v2626_v35 = vmul.f32 %v5377_v34, %v2610_v1  ;;  %v5918_v36 = vadd.f32 %v4845_v32, %v2633_v33 }
 0x750   : > { %v2634_v37 = vmul.f32 %v4844_v30, %v2626_v35  ;;  %5119 = vmatprep.mubr.msk.f32.mxu1 %vm1047_vm1, %v5918_v36 }
 0x752   : > { %v5922_v38 = vadd.f32 %v4845_v32, %v2634_v37 }
 0x754   : > { %5120 = vmatmul.mubr.msk.f32.vlgmr.msra.gmra.mrb[20].mxu1 %vm1047_vm1, %v5922_v38 }
 0x755   : > { %5135 = vmatprep.mubr.msk.f32.mxu1 %vm5427_vm2, %v5426_v10  ;;  %5134 = vmatpush3.xpose.msk.msra.mxu1 %vm1133_vm3, %v5935_v43 }
 0x756   : > { %5138 = vmatprep.subr.mxu1 %v5426_v10 }
 0x827   : > { %v5121_v46 = vpop.f32.mrb[20].mxu1 }
 0x828   : > { %v2726_v47 = vpop.f32.mrb[21].mxu1  ;;  %v2732_v49 = vadd.f32 %v5121_v46, %v4846_v45 }
 0x829   : > { %v2727_v48 = vadd.f32 %v4846_v45, %v2726_v47 }
 0x82b   : > { %3168 = vrot.lane.b32.xlu1 %v2727_v48, %s5433_s30  ;;  %2996 = vrot.lane.b32.xlu0 %v2727_v48, %s5428_s4 }
 0x82c   : > { %5136 = vmatmul.mubr.msk.f32.vlgmr.msra.gmra.mrb[22].mxu1 %vm1133_vm3, %v2727_v48 }
 0x82d   : > { %5140 = vmatprep.mubr.msk.f32.mxu1 %vm5427_vm2, %v5426_v10 }
 0x82f   : > { %3340 = vrot.lane.b32.xlu1 %v2727_v48, %s5434_s7  ;;  %3342 = vrot.lane.b32.xlu0 %v5935_v43, %s5434_s7 }
 0x833   : > { %3680 = vrot.lane.b32.xlu1 %v2732_v49, %s5428_s4  ;;  %3682 = vrot.lane.b32.xlu0 %v5933_v41, %s5428_s4 }
 0x837   : > { %3852 = vrot.lane.b32.xlu1 %v2732_v49, %s5433_s30  ;;  %3854 = vrot.lane.b32.xlu0 %v5933_v41, %s5433_s30 }
 0x83b   : > { %4024 = vrot.lane.b32.xlu1 %v2732_v49, %s5434_s7  ;;  %4026 = vrot.lane.b32.xlu0 %v5933_v41, %s5434_s7  ;;  %s6257_s7 = sld [smem:[#allocation10_spill]] }
 0x83f   : > { %3087 = vrot.lane.b32.xlu1 %v5935_v43, %s5431_s28  ;;  %2919 = vrot.lane.b32.xlu0 %v5935_v43, %s5429_s1 }
 0x841   : > { %v2829_v15 = vld [vmem:[%s6257_s7] sm:$0xff]  ;;  %v4864_v21 = vld [vmem:[%s6257_s7 + $0x8] sm:$0xff] }
 0x89d   : > { %v3169_v51 = vpop.permute.xlu1 %3168  ;;  %v2997_v52 = vpop.permute.xlu0 %2996 }
 0x89e   : > { %5146 = vmatmul.mubr.msk.f32.vlgmr.msra.gmra.mrb[18].mxu0 %vm1133_vm3, %v2997_v52 }
 0x89f   : > { %5154 = vmatpush3.xpose.msk.msra.mxu0 %vm1133_vm3, %v3171_v50  ;;  %5155 = vmatprep.mubr.msk.f32.mxu0 %vm5427_vm2, %v5426_v10 }
 0x8a0   : > { %5163 = vmatprep.subr.mxu0 %v5426_v10 }
 0x8a1   : > { %v3343_v53 = vpop.permute.xlu0 %3342  ;;  %v3341_v54 = vpop.permute.xlu1 %3340 }
 0x8a2   : > { %5156 = vmatmul.mubr.msk.f32.vlgmr.msra.gmra.mrb[20].mxu0 %vm1133_vm3, %v3169_v51 }
 0x8a3   : > { %5164 = vmatpush3.xpose.msk.msra.mxu0 %vm1133_vm3, %v3343_v53  ;;  %5165 = vmatprep.mubr.msk.f32.mxu0 %vm5427_vm2, %v5426_v10 }
 0x8a4   : > { %5173 = vmatprep.subr.mxu0 %v5426_v10 }
 0x8a5   : > { %v3683_v55 = vpop.permute.xlu0 %3682  ;;  %v3681_v56 = vpop.permute.xlu1 %3680 }
 0x8a6   : > { %5166 = vmatmul.mubr.msk.f32.vlgmr.msra.gmra.mrb[22].mxu0 %vm1133_vm3, %v3341_v54 }
 0x8a7   : > { %5174 = vmatpush3.xpose.msk.msra.mxu0 %vm1133_vm3, %v5933_v41  ;;  %5175 = vmatprep.mubr.msk.f32.mxu0 %vm5427_vm2, %v5426_v10 }
 0x8a8   : > { %5183 = vmatprep.subr.mxu0 %v5426_v10 }
 0x8a9   : > { %v3855_v57 = vpop.permute.xlu0 %3854  ;;  %v3853_v59 = vpop.permute.xlu1 %3852 }
 0x8aa   : > { %5176 = vmatmul.mubr.msk.f32.vlgmr.msra.gmra.mrb[24].mxu0 %vm1133_vm3, %v2732_v49 }
 0x8ab   : > { %5184 = vmatpush3.xpose.msk.msra.mxu0 %vm1133_vm3, %v3683_v55  ;;  %5185 = vmatprep.mubr.msk.f32.mxu0 %vm5427_vm2, %v5426_v10 }
 0x8ac   : > { %5193 = vmatprep.subr.mxu0 %v5426_v10 }
 0x8ad   : > { %v4027_v58 = vpop.permute.xlu0 %4026  ;;  %v4025_v61 = vpop.permute.xlu1 %4024 }
 0x8ae   : > { %5186 = vmatmul.mubr.msk.f32.vlgmr.msra.gmra.mrb[26].mxu0 %vm1133_vm3, %v3681_v56 }
 0x8af   : > { %5194 = vmatpush3.xpose.msk.msra.mxu0 %vm1133_vm3, %v3855_v57  ;;  %5195 = vmatprep.mubr.msk.f32.mxu0 %vm5427_vm2, %v5426_v10 }
 0x8b0   : > { %5203 = vmatprep.subr.mxu0 %v5426_v10 }
 0x8b1   : > { %v2920_v60 = vpop.permute.xlu0 %2919  ;;  %v3088_v50 = vpop.permute.xlu1 %3087 }
 0x8b2   : > { %5139 = vmatpush3.msra.mxu1 %v2920_v60  ;;  %5196 = vmatmul.mubr.msk.f32.vlgmr.msra.gmra.mrb[28].mxu0 %vm1133_vm3, %v3853_v59 }
 0x8b3   : > { %5204 = vmatpush3.xpose.msk.msra.mxu0 %vm1133_vm3, %v4027_v58  ;;  %5205 = vmatprep.mubr.msk.f32.mxu0 %vm5427_vm2, %v5426_v10 }
 0x8b4   : > { %5148 = vmatprep.subr.mxu1 %v5426_v10 }
 0x8b6   : > { %5206 = vmatmul.mubr.msk.f32.vlgmr.msra.gmra.mrb[30].mxu0 %vm1133_vm3, %v4025_v61 }
 0x8ff   : > { %v2902_v62 = vpop.f32.mrb[22].mxu1 }
 0x900   : > { %v2906_v63 = vmul.f32 0.35355338, %v2902_v62  ;;  %v5137_v0 = vpop.f32.mrb[23].mxu1 }
 0x902   : > { %v2907_v1 = vadd.f32 %v2906_v63, %v2829_v15 }
 0x904   : > { %v2908_v2 = vsel %vm1133_vm3, %v2907_v1, -inf }
 0x905   : > { %2909 = vmax.xlane.f32.xlu0 %v2908_v2 }
 0x971   : > { %v3070_v3 = vpop.f32.mrb[18].mxu0 }
 0x972   : > { %v3074_v9 = vmul.f32 0.35355338, %v3070_v3  ;;  %v5147_v7 = vpop.f32.mrb[19].mxu0 }
 0x974   : > { %v3075_v4 = vadd.f32 %v3074_v9, %v2829_v15 }
 0x975   : > { %v3242_v5 = vpop.f32.mrb[20].mxu0 }
 0x976   : > { %v3246_v6 = vmul.f32 0.35355338, %v3242_v5  ;;  %v5157_v8 = vpop.f32.mrb[21].mxu0  ;;  %v3076_v11 = vsel %vm1133_vm3, %v3075_v4, -inf }
 0x977   : > { %3077 = vmax.xlane.f32.xlu1 %v3076_v11 }
 0x978   : > { %v3247_v12 = vadd.f32 %v3246_v6, %v2829_v15 }
 0x979   : > { %v3414_v13 = vpop.f32.mrb[22].mxu0 }
 0x97a   : > { %v3418_v16 = vmul.f32 0.35355338, %v3414_v13  ;;  %v5167_v17 = vpop.f32.mrb[23].mxu0  ;;  %v3248_v18 = vsel %vm1133_vm3, %v3247_v12, -inf }
 0x97b   : > { %3249 = vmax.xlane.f32.xlu0 %v3248_v18 }
 0x97c   : > { %v3419_v19 = vadd.f32 %v3418_v16, %v2829_v15 }
 0x97d   : > { %v3586_v20 = vpop.f32.mrb[24].mxu0 }
 0x97e   : > { %v3590_v22 = vmul.f32 0.35355338, %v3586_v20  ;;  %v5177_v23 = vpop.f32.mrb[25].mxu0  ;;  %v3420_v24 = vsel %vm1133_vm3, %v3419_v19, -inf }
 0x97f   : > { %3421 = vmax.xlane.f32.xlu0 %v3420_v24 }
 0x980   : > { %v3591_v25 = vadd.f32 %v4864_v21, %v3590_v22 }
 0x981   : > { %v3754_v26 = vpop.f32.mrb[26].mxu0 }
 0x982   : > { %v3758_v27 = vmul.f32 0.35355338, %v3754_v26  ;;  %v5187_v14 = vpop.f32.mrb[27].mxu0  ;;  %v3592_v28 = vsel %vm1133_vm3, %v3591_v25, -inf }
 0x983   : > { %3593 = vmax.xlane.f32.xlu1 %v3592_v28 }
 0x984   : > { %v3759_v29 = vadd.f32 %v4864_v21, %v3758_v27 }
 0x985   : > { %v3926_v30 = vpop.f32.mrb[28].mxu0 }
 0x986   : > { %v3930_v31 = vmul.f32 0.35355338, %v3926_v30  ;;  %v5197_v32 = vpop.f32.mrb[29].mxu0  ;;  %v3760_v33 = vsel %vm1133_vm3, %v3759_v29, -inf }
 0x987   : > { %3761 = vmax.xlane.f32.xlu0 %v3760_v33 }
 0x988   : > { %v3931_v34 = vadd.f32 %v4864_v21, %v3930_v31 }
 0x989   : > { %v4098_v35 = vpop.f32.mrb[30].mxu0 }
 0x98a   : > { %v4102_v37 = vmul.f32 0.35355338, %v4098_v35  ;;  %v5207_v39 = vpop.f32.mrb[31].mxu0  ;;  %v3932_v40 = vsel %vm1133_vm3, %v3931_v34, -inf }
 0x98b   : > { %3933 = vmax.xlane.f32.xlu1 %v3932_v40 }
 0x98c   : > { %v4103_v42 = vadd.f32 %v4864_v21, %v4102_v37 }
 0x98e   : > { %v4104_v44 = vsel %vm1133_vm3, %v4103_v42, -inf }
 0x98f   : > { %4105 = vmax.xlane.f32.xlu0 %v4104_v44 }
 0x992   : > { %v2910_v45 = vpop.xlane.xlu0 %2909 }
 0x993   : > { %v2911_v46 = vsub.f32 %v2907_v1, %v2910_v45 }
 0x995   : > { %v2912_v47 = vmul.f32 1.442695, %v2911_v46 }
 0x997   : > { %5378 = vpow2.f32 %v2912_v47 }
 0x99c   : > { %3431 = vrot.lane.b32.xlu1 %v5935_v43, %s5432_s6 }
 0x9a1   : > { %v5379_v48 = vpop.eup %5378 }
 0x9a2   : > { %v2914_v49 = vsel %vm1133_vm3, %v5379_v48, 0.0 }
 0x9a5   : > { %3259 = vrot.lane.b32.xlu0 %v5935_v43, %s5430_s26 }
 0x9c0   : > { %2915 = vadd.xlane.f32.xlu1 %v2914_v49 }
 0xa04   : > { %v3078_v51 = vpop.xlane.xlu1 %3077 }
 0xa05   : > { %v3079_v52 = vsub.f32 %v3075_v4, %v3078_v51 }
 0xa07   : > { %v3080_v53 = vmul.f32 1.442695, %v3079_v52 }
 0xa08   : > { %v3250_v54 = vpop.xlane.xlu0 %3249 }
 0xa09   : > { %5380 = vpow2.f32 %v3080_v53  ;;  %v3251_v55 = vsub.f32 %v3247_v12, %v3250_v54 }
 0xa0b   : > { %v3252_v56 = vmul.f32 1.442695, %v3251_v55 }
 0xa0c   : > { %v3422_v57 = vpop.xlane.xlu0 %3421 }
 0xa0d   : > { %5382 = vpow2.f32 %v3252_v56  ;;  %v3423_v58 = vsub.f32 %v3419_v19, %v3422_v57 }
 0xa0f   : > { %v3424_v43 = vmul.f32 1.442695, %v3423_v58 }
 0xa10   : > { %v3594_v0 = vpop.xlane.xlu1 %3593 }
 0xa11   : > { %5384 = vpow2.f32 %v3424_v43  ;;  %v3595_v1 = vsub.f32 %v3591_v25, %v3594_v0 }
 0xa13   : > { %v5381_v59 = vpop.eup %5380  ;;  %v3596_v7 = vmul.f32 1.442695, %v3595_v1  ;;  %v4200_v1 = vld [vmem:[%s5629_s29 + $0x10] sm:$0xff] }
 0xa14   : > { %v3082_v60 = vsel %vm1133_vm3, %v5381_v59, 0.0  ;;  %v3762_v2 = vpop.xlane.xlu0 %3761 }
 0xa15   : > { %3083 = vadd.xlane.f32.xlu0 %v3082_v60  ;;  %v3763_v9 = vsub.f32 %v3759_v29, %v3762_v2  ;;  %5386 = vpow2.f32 %v3596_v7  ;;  %v4201_v2 = vld [vmem:[%s5629_s29 + $0x18] sm:$0xff] }
 0xa17   : > { %v5383_v61 = vpop.eup %5382  ;;  %v3764_v6 = vmul.f32 1.442695, %v3763_v9 }
 0xa18   : > { %v3254_v62 = vsel %vm1133_vm3, %v5383_v61, 0.0  ;;  %v3934_v3 = vpop.xlane.xlu1 %3933 }
 0xa19   : > { %3255 = vadd.xlane.f32.xlu1 %v3254_v62  ;;  %v3935_v4 = vsub.f32 %v3931_v34, %v3934_v3  ;;  %5388 = vpow2.f32 %v3764_v6  ;;  %v4199_v62 = vld [vmem:[%s5629_s29 + $0x8] sm:$0xff]  ;;  %v5290_v3 = vpack.c.bf16 %v4201_v2, %v4200_v1 }
 0xa1b   : > { %v6025_v15 = vpop.eup %5384  ;;  %v3936_v8 = vmul.f32 1.442695, %v3935_v4 }
 0xa1c   : > { %v3426_v63 = vsel %vm1133_vm3, %v6025_v15, 0.0  ;;  %v4106_v5 = vpop.xlane.xlu0 %4105  ;;  %v3432_v13 = vpop.permute.xlu1 %3431 }
 0xa1d   : > { %3427 = vadd.xlane.f32.xlu0 %v3426_v63  ;;  %v4107_v11 = vsub.f32 %v4103_v42, %v4106_v5  ;;  %5390 = vpow2.f32 %v3936_v8 }
 0xa1f   : > { %v4108_v12 = vmul.f32 1.442695, %v4107_v11  ;;  %v5387_v16 = vpop.eup %5386 }
 0xa20   : > { %v3598_v19 = vsel %vm1133_vm3, %v5387_v16, 0.0  ;;  %v3260_v27 = vpop.permute.xlu0 %3259 }
 0xa21   : > { %5392 = vpow2.f32 %v4108_v12 }
 0xa23   : > { %v6033_v17 = vpop.eup %5388 }
 0xa24   : > { %v3766_v22 = vsel %vm1133_vm3, %v6033_v17, 0.0 }
 0xa27   : > { %v6036_v20 = vpop.eup %5390 }
 0xa28   : > { %v3938_v21 = vsel %vm1133_vm3, %v6036_v20, 0.0 }
 0xa2a   : > { %3771 = vrot.lane.b32.xlu1 %v5933_v41, %s5431_s28 }
 0xa2b   : > { %v6042_v23 = vpop.eup %5392 }
 0xa2c   : > { %v4110_v24 = vsel %vm1133_vm3, %v6042_v23, 0.0 }
 0xa33   : > { %3603 = vrot.lane.b32.xlu0 %v5933_v41, %s5429_s1 }
 0xa4d   : > { %v2916_v18 = vpop.xlane.xlu1 %2915 }
 0xa4e   : > { %5394 = vrcp.f32 %v2916_v18  ;;  %3599 = vadd.xlane.f32.xlu1 %v3598_v19 }
 0xa52   : > { %3939 = vadd.xlane.f32.xlu1 %v3938_v21  ;;  %3767 = vadd.xlane.f32.xlu0 %v3766_v22 }
 0xa56   : > { %4111 = vadd.xlane.f32.xlu1 %v4110_v24 }
 0xa58   : > { %v5395_v25 = vpop.eup %5394 }
 0xa59   : > { %v2918_v26 = vmul.f32 %v5395_v25, %v5379_v48 }
 0xa5b   : > { %5141 = vmatmul.mubr.msk.f32.vlgmr.msra.gmra.mrb[24].mxu1 %vm1133_vm3, %v2918_v26 }
 0xa5c   : > { %5149 = vmatpush3.msra.mxu1 %v3088_v50  ;;  %5150 = vmatprep.mubr.msk.f32.mxu1 %vm5427_vm2, %v5426_v10 }
 0xa5d   : > { %5158 = vmatprep.subr.mxu1 %v5426_v10 }
 0xa67   : > { %4115 = vrot.lane.b32.xlu1 %v5933_v41, %s5432_s6  ;;  %s6259_s6 = sld [smem:[#allocation19_spill]] }
 0xa68   : > { %3943 = vrot.lane.b32.xlu0 %v5933_v41, %s5430_s26  ;;  %s6258_s26 = scalar_lea.vmem %s6189_s15, %s5579_s27 }
 0xa69   : > { %v4877_v21 = vld [vmem:[%s6258_s26] ss:$0 sm:$0xff] }
 0xaa2   : > { %v3084_v14 = vpop.xlane.xlu0 %3083 }
 0xaa3   : > { %5396 = vrcp.f32 %v3084_v14 }
 0xaa6   : > { %v3256_v28 = vpop.xlane.xlu1 %3255 }
 0xaa7   : > { %5398 = vrcp.f32 %v3256_v28 }
 0xaaa   : > { %v3428_v29 = vpop.xlane.xlu0 %3427  ;;  %v3772_v37 = vpop.permute.xlu1 %3771 }
 0xaab   : > { %5400 = vrcp.f32 %v3428_v29 }
 0xaad   : > { %v5397_v30 = vpop.eup %5396 }
 0xaae   : > { %v3086_v31 = vmul.f32 %v5397_v30, %v5381_v59  ;;  %v3604_v35 = vpop.permute.xlu0 %3603 }
 0xab0   : > { %5151 = vmatmul.mubr.msk.f32.vlgmr.msra.gmra.mrb[26].mxu1 %vm1133_vm3, %v3086_v31 }
 0xab1   : > { %v5399_v32 = vpop.eup %5398  ;;  %5159 = vmatpush3.msra.mxu1 %v3260_v27  ;;  %5160 = vmatprep.mubr.msk.f32.mxu1 %vm5427_vm2, %v5426_v10 }
 0xab2   : > { %v3258_v33 = vmul.f32 %v5399_v32, %v5383_v61  ;;  %5168 = vmatprep.subr.mxu1 %v5426_v10  ;;  %v4198_v61 = vld [vmem:[%s5629_s29] sm:$0xff]  ;;  %s6266_s29 = scalar_lea.vmem %s6265_s16, %s5579_s27 }
 0xab3   : > { %v5286_v63 = vpack.c.bf16 %v4199_v62, %v4198_v61  ;;  %v4881_v62 = vld [vmem:[%s6262_s21] ss:$0 sm:$0xff] }
 0xab4   : > { %5161 = vmatmul.mubr.msk.f32.vlgmr.msra.gmra.mrb[28].mxu1 %vm1133_vm3, %v3258_v33 }
 0xab5   : > { %v5401_v41 = vpop.eup %5400  ;;  %5169 = vmatpush3.msra.mxu1 %v3432_v13  ;;  %5170 = vmatprep.mubr.msk.f32.mxu1 %vm5427_vm2, %v5426_v10 }
 0xab6   : > { %v3430_v34 = vmul.f32 %v5401_v41, %v6025_v15  ;;  %5178 = vmatprep.subr.mxu1 %v5426_v10  ;;  %5287 = vmatprep.subr.bf16.mxu0 %v5286_v63 }
 0xab7   : > { %5289 = vmatpush3.bf16.msra.mxu0 %v5286_v63 }
 0xab8   : > { %5171 = vmatmul.mubr.msk.f32.vlgmr.msra.gmra.mrb[30].mxu1 %vm1133_vm3, %v3430_v34  ;;  %5291 = vmatprep.subr.bf16.mxu0 %v5290_v3 }
 0xab9   : > { %5179 = vmatpush3.msra.mxu1 %v3604_v35  ;;  %5180 = vmatprep.mubr.msk.f32.mxu1 %vm5427_vm2, %v5426_v10 }
 0xaba   : > { %5188 = vmatprep.subr.mxu1 %v5426_v10 }
 0xabb   : > { %5293 = vmatpush3.bf16.msra.mxu0 %v5290_v3 }
 0xadb   : > { %v3600_v39 = vpop.xlane.xlu1 %3599 }
 0xadc   : > { %5402 = vrcp.f32 %v3600_v39  ;;  %v4337_v39 = vld [vmem:[%s5646_s2 + $0x8] sm:$0xff] }
 0xadf   : > { %v3940_v40 = vpop.xlane.xlu1 %3939  ;;  %v3768_v42 = vpop.xlane.xlu0 %3767 }
 0xae0   : > { %5404 = vrcp.f32 %v3768_v42  ;;  %v4338_v42 = vld [vmem:[%s5646_s2 + $0x10] sm:$0xff] }
 0xae1   : > { %5406 = vrcp.f32 %v3940_v40 }
 0xae3   : > { %v4112_v44 = vpop.xlane.xlu1 %4111  ;;  %v3944_v50 = vpop.permute.xlu0 %3943 }
 0xae4   : > { %5408 = vrcp.f32 %v4112_v44  ;;  %v4339_v44 = vld [vmem:[%s5646_s2 + $0x18] sm:$0xff] }
 0xae6   : > { %v5403_v45 = vpop.eup %5402 }
 0xae7   : > { %v3602_v46 = vmul.f32 %v5403_v45, %v5387_v16  ;;  %v4116_v53 = vpop.permute.xlu1 %4115  ;;  %v5298_v45 = vpack.c.bf16 %v4339_v44, %v4338_v42  ;;  %v4888_v42 = vld [vmem:[%s6266_s29] ss:$0 sm:$0xff] }
 0xae9   : > { %5181 = vmatmul.mubr.msk.f32.vlgmr.msra.gmra.mrb[32].mxu1 %vm1133_vm3, %v3602_v46  ;;  %v4430_v46 = vld [vmem:[%s5656_s22] sm:$0xff] }
 0xaea   : > { %5189 = vmatpush3.msra.mxu1 %v3772_v37  ;;  %5190 = vmatprep.mubr.msk.f32.mxu1 %vm5427_vm2, %v5426_v10  ;;  %v5405_v47 = vpop.eup %5404  ;;  %v4336_v37 = vld [vmem:[%s5646_s2] sm:$0xff]  ;;  %s6267_s2 = sld [smem:[#allocation24_spill]] }
 0xaeb   : > { %5198 = vmatprep.subr.mxu1 %v5426_v10  ;;  %v3770_v48 = vmul.f32 %v5405_v47, %v6033_v17  ;;  %v5407_v49 = vpop.eup %5406  ;;  %v5294_v40 = vpack.c.bf16 %v4337_v39, %v4336_v37  ;;  %v4431_v47 = vld [vmem:[%s5656_s22 + $0x8] sm:$0xff] }
 0xaec   : > { %v3942_v51 = vmul.f32 %v5407_v49, %v6036_v20  ;;  %v5302_v49 = vpack.c.bf16 %v4431_v47, %v4430_v46 }
 0xaed   : > { %5191 = vmatmul.mubr.msk.f32.vlgmr.msra.gmra.mrb[34].mxu1 %vm1133_vm3, %v3770_v48  ;;  %v4432_v48 = vld [vmem:[%s5656_s22 + $0x10] sm:$0xff] }
 0xaee   : > { %5199 = vmatpush3.msra.mxu1 %v3944_v50  ;;  %5200 = vmatprep.mubr.msk.f32.mxu1 %vm5427_vm2, %v5426_v10  ;;  %v5409_v52 = vpop.eup %5408  ;;  %v4433_v50 = vld [vmem:[%s5656_s22 + $0x18] sm:$0xff] }
 0xaef   : > { %5208 = vmatprep.subr.mxu1 %v5426_v10  ;;  %v4114_v54 = vmul.f32 %v5409_v52, %v6042_v23  ;;  %v4434_v52 = vld [vmem:[%s5656_s22 + $0x20] sm:$0xff]  ;;  %5303 = vmatprep.subr.bf16.mxu0 %v5302_v49 }
 0xaf0   : > { %s6268_s28 = scalar_lea.vmem %s6267_s2, %s5579_s27 }
 0xaf1   : > { %5201 = vmatmul.mubr.msk.f32.vlgmr.msra.gmra.mrb[36].mxu1 %vm1133_vm3, %v3942_v51  ;;  %v5306_v51 = vpack.c.bf16 %v4433_v50, %v4432_v48  ;;  %v4889_v46 = vld [vmem:[%s6268_s28] ss:$0 sm:$0xff] }
 0xaf2   : > { %5209 = vmatpush3.msra.mxu1 %v4116_v53  ;;  %5210 = vmatprep.mubr.msk.f32.mxu1 %vm5427_vm2, %v5426_v10  ;;  %v4435_v53 = vld [vmem:[%s5656_s22 + $0x28] sm:$0xff] }
 0xaf3   : > { %5295 = vmatprep.subr.bf16.mxu1 %v5294_v40 }
 0xaf5   : > { %5211 = vmatmul.mubr.msk.f32.vlgmr.msra.gmra.mrb[38].mxu1 %vm1133_vm3, %v4114_v54  ;;  %v5310_v54 = vpack.c.bf16 %v4435_v53, %v4434_v52 }
 0xaf6   : > { %5297 = vmatpush3.bf16.msra.mxu1 %v5294_v40 }
 0xaf7   : > { %5299 = vmatprep.subr.bf16.mxu1 %v5298_v45 }
 0xafa   : > { %5301 = vmatpush3.bf16.msra.mxu1 %v5298_v45 }
 0xb2e   : > { %v2991_v55 = vpop.f32.mrb[24].mxu1 }
 0xb2f   : > { %2995 = vst.msk [vmem:[#allocation3] sm:$0xff] %vm1133_vm3, %v2991_v55  ;;  %v5142_v56 = vpop.f32.mrb[25].mxu1 }
 0xb83   : > { %v3159_v57 = vpop.f32.mrb[26].mxu1 }
 0xb84   : > { %3164 = vrot.lane.b32.xlu0 %v3159_v57, %s5439_s14  ;;  %v5152_v58 = vpop.f32.mrb[27].mxu1 }
 0xb87   : > { %v3331_v43 = vpop.f32.mrb[28].mxu1 }
 0xb88   : > { %3336 = vrot.lane.b32.xlu1 %v3331_v43, %s5440_s3  ;;  %v5162_v59 = vpop.f32.mrb[29].mxu1 }
 0xb8b   : > { %v3503_v10 = vpop.f32.mrb[30].mxu1 }
 0xb8c   : > { %3508 = vrot.lane.b32.xlu1 %v3503_v10, %s5441_s24  ;;  %v5172_v60 = vpop.f32.mrb[31].mxu1 }
 0xbbc   : > { %v3675_v15 = vpop.f32.mrb[32].mxu1 }
 0xbbd   : > { %3679 = vst.msk [vmem:[#allocation3 + $0x8] sm:$0xff] %vm1133_vm3, %v3675_v15  ;;  %v5182_v0 = vpop.f32.mrb[33].mxu1 }
 0xbc0   : > { %v3843_v9 = vpop.f32.mrb[34].mxu1 }
 0xbc1   : > { %3848 = vrot.lane.b32.xlu0 %v3843_v9, %s5439_s14  ;;  %v5192_v7 = vpop.f32.mrb[35].mxu1  ;;  %s6260_s14 = scalar_lea.vmem %s6259_s6, %s5579_s27  ;;  %v4436_v9 = vld [vmem:[%s5656_s22 + $0x30] sm:$0xff] }
 0xbc2   : > { %v4880_v60 = vld [vmem:[%s6260_s14] ss:$0 sm:$0xff]  ;;  %v4437_v7 = vld [vmem:[%s5656_s22 + $0x38] sm:$0xff] }
 0xbc4   : > { %v4015_v4 = vpop.f32.mrb[36].mxu1 }
 0xbc5   : > { %4020 = vrot.lane.b32.xlu0 %v4015_v4, %s5440_s3  ;;  %v5202_v5 = vpop.f32.mrb[37].mxu1  ;;  %v5314_v4 = vpack.c.bf16 %v4437_v7, %v4436_v9  ;;  %s6269_s3 = sld [smem:[#allocation25_spill]] }
 0xbc6   : > { %v4882_v5 = vld [vmem:[%s6263_s0] ss:$0 sm:$0xff] }
 0xbc8   : > { %v4187_v6 = vpop.f32.mrb[38].mxu1 }
 0xbc9   : > { %4192 = vrot.lane.b32.xlu1 %v4187_v6, %s5441_s24  ;;  %v5212_v8 = vpop.f32.mrb[39].mxu1 }
 0xbf6   : > { %v3165_v11 = vpop.permute.xlu0 %3164 }
 0xbf7   : > { %3167 = vst.msk [vmem:[#allocation3] sm:$0xff] %vm1469_vm4, %v3165_v11 }
 0xbfa   : > { %v3337_v12 = vpop.permute.xlu1 %3336 }
 0xbfb   : > { %3339 = vst.msk [vmem:[#allocation3] sm:$0xff] %vm1642_vm5, %v3337_v12 }
 0xbfe   : > { %v3509_v13 = vpop.permute.xlu1 %3508 }
 0xbff   : > { %3511 = vst.msk [vmem:[#allocation3] sm:$0xff] %vm1815_vm6, %v3509_v13 }
 0xc06   : > { %v4196_v16 = vld [vmem:[#allocation3] sm:$0xff] }
 0xc07   : > { %5221 = vmatprep.mubr.msk.f32.mxu0 %vm1047_vm1, %v4196_v16 }
 0xc33   : > { %v3849_v17 = vpop.permute.xlu0 %3848 }
 0xc34   : > { %3851 = vst.msk [vmem:[#allocation3 + $0x8] sm:$0xff] %vm1469_vm4, %v3849_v17  ;;  %v4885_v17 = vld [vmem:[%s1018_s23] ss:$0 sm:$0xff] }
 0xc37   : > { %v4021_v18 = vpop.permute.xlu0 %4020 }
 0xc38   : > { %4023 = vst.msk [vmem:[#allocation3 + $0x8] sm:$0xff] %vm1642_vm5, %v4021_v18 }
 0xc3b   : > { %v4193_v19 = vpop.permute.xlu1 %4192 }
 0xc3c   : > { %4195 = vst.msk [vmem:[#allocation3 + $0x8] sm:$0xff] %vm1815_vm6, %v4193_v19 }
 0xc43   : > { %v4197_v20 = vld [vmem:[#allocation3 + $0x8] sm:$0xff] }
 0xc44   : > { %5222 = vmatmul.mubr.msk.f32.vlgmr.msra.gmra.mrb[32].mxu0 %vm1047_vm1, %v4197_v20 }
 0xc45   : > { %5305 = vmatpush3.bf16.msra.mxu0 %v5302_v49 }
 0xc46   : > { %5307 = vmatprep.subr.bf16.mxu0 %v5306_v51 }
 0xc49   : > { %5309 = vmatpush3.bf16.msra.mxu0 %v5306_v51 }
 0xc4a   : > { %5311 = vmatprep.subr.bf16.mxu0 %v5310_v54 }
 0xc4d   : > { %5313 = vmatpush3.bf16.msra.mxu0 %v5310_v54 }
 0xc4e   : > { %5315 = vmatprep.subr.bf16.mxu0 %v5314_v4 }
 0xc51   : > { %5317 = vmatpush3.bf16.msra.mxu0 %v5314_v4 }
 0xd17   : > { %v5223_v22 = vpop.f32.mrb[32].mxu0 }
 0xd18   : > { %v4287_v23 = vadd.f32 %v5223_v22, %v4877_v21  ;;  %v4281_v24 = vpop.f32.mrb[33].mxu0 }
 0xd19   : > { %v4282_v25 = vadd.f32 %v4877_v21, %v4281_v24 }
 0xd1a   : > { %v4291_v26 = vadd.f32 %v4287_v23, %v5922_v38 }
 0xd1b   : > { %v4290_v27 = vadd.f32 %v4282_v25, %v5918_v36 }
 0xd1c   : > { %v4297_v14 = vsel %vm1047_vm1, %v4291_v26, 0.0 }
 0xd1d   : > { %4298 = vadd.xlane.f32.xlu1 %v4297_v14  ;;  %v4294_v28 = vsel %vm1047_vm1, %v4290_v27, 0.0 }
 0xd1e   : > { %4295 = vadd.xlane.f32.xlu0 %v4294_v28 }
 0xdaa   : > { %v4299_v29 = vpop.xlane.xlu1 %4298 }
 0xdab   : > { %v4301_v30 = vmul.f32 0.03125, %v4299_v29  ;;  %v4296_v31 = vpop.xlane.xlu0 %4295 }
 0xdac   : > { %v4300_v32 = vmul.f32 0.03125, %v4296_v31 }
 0xdad   : > { %v4303_v33 = vsub.f32 %v4291_v26, %v4301_v30 }
 0xdae   : > { %v4302_v41 = vsub.f32 %v4290_v27, %v4300_v32 }
 0xdaf   : > { %v4305_v38 = vmul.f32 %v4303_v33, %v4303_v33 }
 0xdb0   : > { %v4304_v34 = vmul.f32 %v4302_v41, %v4302_v41 }
 0xdb1   : > { %v4309_v35 = vsel %vm1047_vm1, %v4305_v38, 0.0 }
 0xdb2   : > { %v4306_v36 = vsel %vm1047_vm1, %v4304_v34, 0.0 }
 0xdb3   : > { %4307 = vadd.xlane.f32.xlu0 %v4306_v36 }
 0xdb7   : > { %4310 = vadd.xlane.f32.xlu0 %v4309_v35 }
 0xe40   : > { %v4308_v55 = vpop.xlane.xlu0 %4307 }
 0xe41   : > { %v4312_v56 = vmul.f32 0.03125, %v4308_v55 }
 0xe43   : > { %v4314_v57 = vadd.f32 1e-05, %v4312_v56 }
 0xe44   : > { %v4311_v58 = vpop.xlane.xlu0 %4310 }
 0xe45   : > { %5410 = vrsqrt.f32 %v4314_v57  ;;  %v4313_v43 = vmul.f32 0.03125, %v4311_v58 }
 0xe47   : > { %v4315_v59 = vadd.f32 1e-05, %v4313_v43 }
 0xe49   : > { %5412 = vrsqrt.f32 %v4315_v59 }
 0xe4f   : > { %v5411_v10 = vpop.eup %5410 }
 0xe50   : > { %v4318_v61 = vmul.f32 %v5411_v10, %v4302_v41 }
 0xe52   : > { %v4326_v15 = vmul.f32 %v4880_v60, %v4318_v61 }
 0xe53   : > { %v5413_v63 = vpop.eup %5412 }
 0xe54   : > { %v4319_v0 = vmul.f32 %v5413_v63, %v4303_v33  ;;  %v4334_v1 = vadd.f32 %v4881_v62, %v4326_v15 }
 0xe56   : > { %v4327_v2 = vmul.f32 %v4880_v60, %v4319_v0  ;;  %5232 = vmatprep.mubr.msk.f32.mxu1 %vm1047_vm1, %v4334_v1 }
 0xe58   : > { %v4335_v3 = vadd.f32 %v4881_v62, %v4327_v2 }
 0xe5a   : > { %5233 = vmatmul.mubr.msk.f32.vlgmr.msra.gmra.mrb[40].mxu1 %vm1047_vm1, %v4335_v3 }
 0xf2d   : > { %v5234_v6 = vpop.f32.mrb[40].mxu1 }
 0xf2e   : > { %v4425_v8 = vadd.f32 %v5234_v6, %v4882_v5  ;;  %v4419_v11 = vpop.f32.mrb[41].mxu1 }
 0xf2f   : > { %v4420_v12 = vadd.f32 %v4882_v5, %v4419_v11 }
 0xf30   : > { %v4429_v16 = vmax.f32 %v4425_v8, 0.0 }
 0xf31   : > { %v4428_v13 = vmax.f32 %v4420_v12, 0.0 }
 0xf33   : > { %5251 = vmatprep.mubr.msk.f32.mxu0 %vm4445_vm7, %v4428_v13 }
 0xf34   : > { %5252 = vmatmul.mubr.msk.f32.vlgmr.msra.gmra.mrb[34].mxu0 %vm4445_vm7, %v4429_v16 }
0x1007   : > { %v5253_v18 = vpop.f32.mrb[34].mxu0 }
0x1008   : > { %v4524_v19 = vadd.f32 %v5253_v18, %v4885_v17  ;;  %v4518_v20 = vpop.f32.mrb[35].mxu0 }
0x1009   : > { %v4519_v21 = vadd.f32 %v4885_v17, %v4518_v20 }
0x100a   : > { %v4528_v22 = vadd.f32 %v4524_v19, %v4335_v3 }
0x100b   : > { %v4527_v23 = vadd.f32 %v4519_v21, %v4334_v1 }
0x100c   : > { %v4534_v24 = vsel %vm1047_vm1, %v4528_v22, 0.0 }
0x100d   : > { %4535 = vadd.xlane.f32.xlu0 %v4534_v24  ;;  %v4531_v25 = vsel %vm1047_vm1, %v4527_v23, 0.0 }
0x100e   : > { %4532 = vadd.xlane.f32.xlu1 %v4531_v25 }
0x109a   : > { %v4536_v26 = vpop.xlane.xlu0 %4535 }
0x109b   : > { %v4538_v27 = vmul.f32 0.03125, %v4536_v26  ;;  %v4533_v14 = vpop.xlane.xlu1 %4532 }
0x109c   : > { %v4537_v28 = vmul.f32 0.03125, %v4533_v14 }
0x109d   : > { %v4540_v29 = vsub.f32 %v4528_v22, %v4538_v27 }
0x109e   : > { %v4539_v30 = vsub.f32 %v4527_v23, %v4537_v28 }
0x109f   : > { %v4542_v31 = vmul.f32 %v4540_v29, %v4540_v29 }
0x10a0   : > { %v4541_v32 = vmul.f32 %v4539_v30, %v4539_v30 }
0x10a1   : > { %v4546_v33 = vsel %vm1047_vm1, %v4542_v31, 0.0 }
0x10a2   : > { %4547 = vadd.xlane.f32.xlu0 %v4546_v33  ;;  %v4543_v41 = vsel %vm1047_vm1, %v4541_v32, 0.0 }
0x10a3   : > { %4544 = vadd.xlane.f32.xlu1 %v4543_v41 }
0x112f   : > { %v4548_v34 = vpop.xlane.xlu0 %4547 }
0x1130   : > { %v4550_v36 = vmul.f32 0.03125, %v4548_v34  ;;  %v4545_v38 = vpop.xlane.xlu1 %4544 }
0x1131   : > { %v4549_v35 = vmul.f32 0.03125, %v4545_v38 }
0x1132   : > { %v4552_v37 = vadd.f32 1e-05, %v4550_v36 }
0x1133   : > { %v4551_v39 = vadd.f32 1e-05, %v4549_v35 }
0x1134   : > { %5414 = vrsqrt.f32 %v4552_v37 }
0x1135   : > { %5416 = vrsqrt.f32 %v4551_v39 }
0x113e   : > { %v5415_v40 = vpop.eup %5414 }
0x113f   : > { %v5417_v44 = vpop.eup %5416  ;;  %v4556_v45 = vmul.f32 %v5415_v40, %v4540_v29 }
0x1140   : > { %v4555_v47 = vmul.f32 %v5417_v44, %v4539_v30 }
0x1141   : > { %v4564_v48 = vmul.f32 %v4888_v42, %v4556_v45 }
0x1142   : > { %v4563_v49 = vmul.f32 %v4888_v42, %v4555_v47 }
0x1143   : > { %v4572_v50 = vadd.f32 %v4889_v46, %v4564_v48 }
0x1144   : > { %v4571_v51 = vadd.f32 %v4889_v46, %v4563_v49 }
0x1145   : > { %4574 = vst.msk [vmem:[#allocation2 + $0x8] sm:$0xff] %vm1047_vm1, %v4572_v50  ;;  %4576 = vst.msk [vmem:[%s6269_s3 + $0x8] sm:$0xff] %vm1047_vm1, %v4572_v50 }
0x1146   : > { %4573 = vst.msk [vmem:[#allocation2] sm:$0xff] %vm1047_vm1, %v4571_v51  ;;  %4575 = vst.msk [vmem:[%s6269_s3] sm:$0xff] %vm1047_vm1, %v4571_v51 }
0x1147 PF: > { %s6270_s27 = sld [smem:[#allocation4_spill]] }
0x114d   : > { %s34_s5 = sadd.s32 1, %s6270_s27  }
0x114e   : > { %p31_p5 = scmp.ge.s32.totalorder %s34_s5, 4  }
0x1150   :  { %33 = sbr.rel (!%p31_p5) target bundleno = 20 (0x14), region = 205 }

</bundles_post_ra>
